<compile_context>
chip_gen: v7x
topology: tpu7x:2x2x1
jax: 0.10.0
libtpu: 0.0.40
codegen_flags: <defaults>
</compile_context>

<pallas_src>
import functools

import jax
import jax.numpy as jnp
from jax.experimental import pallas as pl
from jax.experimental.pallas import tpu as pltpu


# ---- lane-aligned padded feature widths ----
F_IN_PAD = 128    # window_size 30  -> 128
C1_PAD   = 256    # conv1 out 250   -> 256
C2_PAD   = 512    # conv2 out 500   -> 512
H_PAD    = 128    # hidden 20       -> 128
O_PAD    = 128    # output 4        -> 128

_NEG_BIG = -3.0e38   # finite "-inf" for masked (padded) node rows in the max-pool


def _silu_f32(x):
    return x * jax.nn.sigmoid(x)


def _round_up(x, m):
    return (x + m - 1) // m * m


def _hw_config():
    """Generation-aware VMEM budget and default node tile."""
    kind = ""
    try:
        kind = jax.devices()[0].device_kind.lower()
    except Exception:
        pass
    if "v5" in kind or "v6" in kind:
        # 128 MiB physical VMEM per TensorCore -> big tiles, generous scoped limit.
        return {"vmem_limit": 100 * 1024 * 1024, "tnode_default": 2048}
    # v7x (64 MiB per TC) and unknown chips: conservative budget.
    return {"vmem_limit": 48 * 1024 * 1024, "tnode_default": 1024}


def _layer_vmem_bytes(tnode, n_pad, fin_pad, fout_pad, resident):
    """Rough per-step VMEM footprint of one layer kernel (double buffers included)."""
    a_bytes   = 2 * tnode * tnode * 2                                  # A tile bf16, 2 bufs
    in_bytes  = (2 * n_pad * fin_pad * 2) if resident else (2 * tnode * fin_pad * 2)
    w_bytes   = 2 * fin_pad * fout_pad * 2                             # projection weight
    acc_bytes = tnode * fin_pad * 4                                    # f32 accumulator
    out_bytes = 2 * tnode * fout_pad * 2                               # output tile
    return a_bytes + in_bytes + w_bytes + acc_bytes + out_bytes


# --------------------------------------------------------------------------
# Fast path: the whole forward as a single gridless kernel (small graphs).
# --------------------------------------------------------------------------
def _fused_forward_kernel(a_ref, x_ref, w1_ref, b1_ref, w2_ref, b2_ref,
                          wh_ref, bh_ref, wo_ref, bo_ref, out_ref, *, n_real):
    a = a_ref[...]                                                       # (n_pad, n_pad) bf16
    agg1 = jnp.dot(a, x_ref[...], preferred_element_type=jnp.float32)
    h1 = _silu_f32(jnp.dot(agg1.astype(jnp.bfloat16), w1_ref[...],
                           preferred_element_type=jnp.float32) + b1_ref[...])
    agg2 = jnp.dot(a, h1.astype(jnp.bfloat16), preferred_element_type=jnp.float32)
    h2 = _silu_f32(jnp.dot(agg2.astype(jnp.bfloat16), w2_ref[...],
                           preferred_element_type=jnp.float32) + b2_ref[...])
    # Mask padded node rows so they never win the node-wise max.
    row = jax.lax.broadcasted_iota(jnp.int32, h2.shape, 0)
    h2 = jnp.where(row < n_real, h2, _NEG_BIG)
    pooled = jnp.max(h2, axis=0, keepdims=True)                         # (1, C2_PAD)
    hid = _silu_f32(jnp.dot(pooled, wh_ref[...],
                            preferred_element_type=jnp.float32) + bh_ref[...])
    # TODO(synk): nn.Dropout(p=0.2) is train-mode only; eval forward is identity.
    out = jnp.dot(hid, wo_ref[...], preferred_element_type=jnp.float32) + bo_ref[...]
    out_ref[...] = jax.nn.sigmoid(out)                                   # real cols 0..3


# --------------------------------------------------------------------------
# Tiled path, kernel 1: h1 = SiLU( (A @ X) @ W1 + b1 )
# --------------------------------------------------------------------------
def _gconv_layer1_kernel(a_ref, x_ref, w1_ref, b1_ref, h1_ref, acc_ref,
                         *, tnode, resident):
    k = pl.program_id(1)

    @pl.when(k == 0)
    def _():
        acc_ref[...] = jnp.zeros_like(acc_ref)

    if resident:
        ks = pl.multiple_of(k * tnode, 128)
        x_blk = x_ref[pl.ds(ks, tnode), :]        # X held fully resident in VMEM
    else:
        x_blk = x_ref[...]                         # streamed (tnode, F) tile
    acc_ref[...] += jnp.dot(a_ref[...], x_blk, preferred_element_type=jnp.float32)

    @pl.when(k == pl.num_programs(1) - 1)
    def _():
        agg = acc_ref[...].astype(jnp.bfloat16)
        h = jnp.dot(agg, w1_ref[...], preferred_element_type=jnp.float32) + b1_ref[...]
        h1_ref[...] = _silu_f32(h).astype(h1_ref.dtype)


# --------------------------------------------------------------------------
# Tiled path, kernel 2: h2 = SiLU( (A @ h1) @ W2 + b2 ), fused per-block max-pool.
# --------------------------------------------------------------------------
def _gconv_layer2_pool_kernel(a_ref, h1_ref, w2_ref, b2_ref, pmax_ref, acc_ref,
                              *, tnode, n_real, resident):
    i = pl.program_id(0)
    k = pl.program_id(1)

    @pl.when(k == 0)
    def _():
        acc_ref[...] = jnp.zeros_like(acc_ref)

    if resident:
        ks = pl.multiple_of(k * tnode, 128)
        h1_blk = h1_ref[pl.ds(ks, tnode), :]       # h1 held fully resident in VMEM
    else:
        h1_blk = h1_ref[...]
    acc_ref[...] += jnp.dot(a_ref[...], h1_blk, preferred_element_type=jnp.float32)

    @pl.when(k == pl.num_programs(1) - 1)
    def _():
        agg = acc_ref[...].astype(jnp.bfloat16)
        h2 = jnp.dot(agg, w2_ref[...], preferred_element_type=jnp.float32)
        h2 = _silu_f32(h2 + b2_ref[...])                       # (tnode, C2_PAD) f32
        # Only the last row block can contain padded rows (n_pad - n_real < tnode),
        # so no block is ever fully masked and _NEG_BIG never reaches the pooled max.
        row = i * tnode + jax.lax.broadcasted_iota(jnp.int32, h2.shape, 0)
        h2 = jnp.where(row < n_real, h2, _NEG_BIG)
        pmax_ref[...] = jnp.max(h2, axis=0, keepdims=True)[None]   # (1, 1, C2_PAD)


# --------------------------------------------------------------------------
# Wrapper
# --------------------------------------------------------------------------
def gconvnet_forward(a_hat, feats, params, *, block_nodes=None, use_fused=None,
                     resident_ok=True):
    """Fused GConvNetBigGraph forward (eval mode).

    a_hat : (N, N) f32 symmetrically-normalized adjacency
    feats : (N, window_size) f32 node features
    """
    (w1, b1, w2, b2, wh, bh, wo, bo) = params
    n = a_hat.shape[0]
    win = feats.shape[1]
    c1 = w1.shape[1]        # 250
    c2 = w2.shape[1]        # 500
    h2d = wh.shape[1]       # 20
    od = wo.shape[1]        # 4

    hw = _hw_config()
    vmem_limit = hw["vmem_limit"]
    budget = int(0.85 * vmem_limit)

    n128 = _round_up(n, 128)
    if use_fused is None:
        use_fused = n128 <= 2048      # small-graph fast path (fits VMEM on all gens)

    # ---- shared padded weights (bf16 MXU operands, f32 biases) ----
    w1_p = jnp.zeros((F_IN_PAD, C1_PAD), jnp.bfloat16).at[:win, :c1].set(w1.astype(jnp.bfloat16))
    b1_p = jnp.zeros((1, C1_PAD), jnp.float32).at[:, :c1].set(b1.reshape(1, c1))
    w2_p = jnp.zeros((C1_PAD, C2_PAD), jnp.bfloat16).at[:c1, :c2].set(w2.astype(jnp.bfloat16))
    b2_p = jnp.zeros((1, C2_PAD), jnp.float32).at[:, :c2].set(b2.reshape(1, c2))

    # ================== small-graph fused fast path ==================
    if use_fused:
        n_pad = n128
        a_p = jnp.zeros((n_pad, n_pad), jnp.bfloat16).at[:n, :n].set(a_hat.astype(jnp.bfloat16))
        x_p = jnp.zeros((n_pad, F_IN_PAD), jnp.bfloat16).at[:n, :win].set(feats.astype(jnp.bfloat16))
        wh_p = jnp.zeros((C2_PAD, H_PAD), jnp.float32).at[:c2, :h2d].set(wh)
        bh_p = jnp.zeros((1, H_PAD), jnp.float32).at[:, :h2d].set(bh.reshape(1, h2d))
        wo_p = jnp.zeros((H_PAD, O_PAD), jnp.float32).at[:h2d, :od].set(wo)
        bo_p = jnp.zeros((1, O_PAD), jnp.float32).at[:, :od].set(bo.reshape(1, od))

        vmem = pl.BlockSpec(memory_space=pltpu.MemorySpace.VMEM)
        kernel = functools.partial(_fused_forward_kernel, n_real=n)
        out_pad = pl.pallas_call(
            kernel,
            out_shape=jax.ShapeDtypeStruct((1, O_PAD), jnp.float32),
            in_specs=[vmem] * 10,
            out_specs=vmem,
            compiler_params=pltpu.CompilerParams(vmem_limit_bytes=vmem_limit),
        )(a_p, x_p, w1_p, b1_p, w2_p, b2_p, wh_p, bh_p, wo_p, bo_p)
        return out_pad[:, :od]                               # (1, 4)

    # ================== tiled path (large graphs) ==================
    tnode_default = block_nodes if block_nodes is not None else hw["tnode_default"]
    tnode_default = max(128, _round_up(tnode_default, 128))

    # Pick tnode to minimize over-padding of the (N, N) adjacency.
    n_blocks = -(-n128 // tnode_default)                     # ceil
    tnode = _round_up(-(-n128 // n_blocks), 128)
    n_pad = tnode * n_blocks
    grid = (n_blocks, n_blocks)

    # Hold X / h1 fully resident in VMEM when the budget allows (kills re-streaming).
    res1 = resident_ok and _layer_vmem_bytes(tnode, n_pad, F_IN_PAD, C1_PAD, True) <= budget
    res2 = resident_ok and _layer_vmem_bytes(tnode, n_pad, C1_PAD, C2_PAD, True) <= budget

    a_p = jnp.zeros((n_pad, n_pad), jnp.bfloat16).at[:n, :n].set(a_hat.astype(jnp.bfloat16))
    x_p = jnp.zeros((n_pad, F_IN_PAD), jnp.bfloat16).at[:n, :win].set(feats.astype(jnp.bfloat16))

    mosaic_params = pltpu.CompilerParams(
        dimension_semantics=("parallel", "arbitrary"),   # row axis across TCs, K is reduction
        vmem_limit_bytes=vmem_limit,
    )

    a_bytes = n_pad * n_pad * 2

    # ------------------ layer 1 ------------------
    x_stream = 1 if res1 else n_blocks
    ce1 = pl.CostEstimate(
        flops=2 * n_pad * n_pad * F_IN_PAD + 2 * n_pad * F_IN_PAD * C1_PAD,
        transcendentals=n_pad * C1_PAD,
        bytes_accessed=a_bytes + x_stream * n_pad * F_IN_PAD * 2 + n_pad * C1_PAD * 2,
    )
    x_spec = (pl.BlockSpec((n_pad, F_IN_PAD), lambda i, k: (0, 0)) if res1
              else pl.BlockSpec((tnode, F_IN_PAD), lambda i, k: (k, 0)))
    kernel1 = functools.partial(_gconv_layer1_kernel, tnode=tnode, resident=res1)
    h1 = pl.pallas_call(
        kernel1,
        out_shape=jax.ShapeDtypeStruct((n_pad, C1_PAD), jnp.bfloat16),
        grid_spec=pltpu.PrefetchScalarGridSpec(
            num_scalar_prefetch=0,
            grid=grid,
            in_specs=[
                pl.BlockSpec((tnode, tnode), lambda i, k: (i, k)),        # A tile
                x_spec,                                                   # X (resident or tile)
                pl.BlockSpec((F_IN_PAD, C1_PAD), lambda i, k: (0, 0)),    # W1
                pl.BlockSpec((1, C1_PAD), lambda i, k: (0, 0)),           # b1
            ],
            out_specs=pl.BlockSpec((tnode, C1_PAD), lambda i, k: (i, 0)),
            scratch_shapes=[pltpu.VMEM((tnode, F_IN_PAD), jnp.float32)],
        ),
        compiler_params=mosaic_params,
        cost_estimate=ce1,
    )(a_p, x_p, w1_p, b1_p)

    # ------------- layer 2 + fused node max-pool -------------
    h1_stream = 1 if res2 else n_blocks
    ce2 = pl.CostEstimate(
        flops=2 * n_pad * n_pad * C1_PAD + 2 * n_pad * C1_PAD * C2_PAD,
        transcendentals=n_pad * C2_PAD,
        bytes_accessed=a_bytes + h1_stream * n_pad * C1_PAD * 2 + n_blocks * C2_PAD * 4,
    )
    h1_spec = (pl.BlockSpec((n_pad, C1_PAD), lambda i, k: (0, 0)) if res2
               else pl.BlockSpec((tnode, C1_PAD), lambda i, k: (k, 0)))
    kernel2 = functools.partial(_gconv_layer2_pool_kernel, tnode=tnode, n_real=n,
                                resident=res2)
    pmax = pl.pallas_call(
        kernel2,
        out_shape=jax.ShapeDtypeStruct((n_blocks, 1, C2_PAD), jnp.float32),
        grid_spec=pltpu.PrefetchScalarGridSpec(
            num_scalar_prefetch=0,
            grid=grid,
            in_specs=[
                pl.BlockSpec((tnode, tnode), lambda i, k: (i, k)),        # A tile
                h1_spec,                                                  # h1 (resident or tile)
                pl.BlockSpec((C1_PAD, C2_PAD), lambda i, k: (0, 0)),      # W2
                pl.BlockSpec((1, C2_PAD), lambda i, k: (0, 0)),           # b2
            ],
            out_specs=pl.BlockSpec((1, 1, C2_PAD), lambda i, k: (i, 0, 0)),
            scratch_shapes=[pltpu.VMEM((tnode, C1_PAD), jnp.float32)],
        ),
        compiler_params=mosaic_params,
        cost_estimate=ce2,
    )(a_p, h1, w2_p, b2_p)

    # ---- head: cross-block max + two (1,·) matmuls (~10 KFLOP) in plain JAX ----
    # (per perf review: the extra pallas_call launch + HBM round-trip cost more
    #  than these few thousand FLOPs; kept exact f32)
    pooled = jnp.max(pmax[:, 0, :c2], axis=0, keepdims=True)              # (1, 500)
    hid = jax.nn.silu(pooled @ wh + bh.reshape(1, h2d))
    # TODO(synk): nn.Dropout(p=0.2) is train-mode only; eval forward is identity.
    out = jax.nn.sigmoid(hid @ wo + bo.reshape(1, od))
    return out                                                            # (1, 4)


# --------------------------------------------------------------------------
# Parameters / glue / reference
# --------------------------------------------------------------------------
def make_params(key, window_size=30, hidden1=500, hidden2=20, output=4):
    """Deterministic parameter init matching the module's shapes."""
    ks = jax.random.split(key, 8)
    c1 = 250

    def u(k, shape, fan_in):
        bound = 1.0 / jnp.sqrt(fan_in)
        return jax.random.uniform(k, shape, jnp.float32, -bound, bound)

    w1 = u(ks[0], (window_size, c1), window_size)
    b1 = u(ks[1], (1, c1), window_size)
    w2 = u(ks[2], (c1, hidden1), c1)
    b2 = u(ks[3], (1, hidden1), c1)
    wh = u(ks[4], (hidden1, hidden2), hidden1)
    bh = u(ks[5], (1, hidden2), hidden1)
    wo = u(ks[6], (hidden2, output), hidden2)
    bo = u(ks[7], (1, output), hidden2)
    return (w1, b1, w2, b2, wh, bh, wo, bo)


def normalized_adjacency(adj):
    """Symmetric norm used by DGL GraphConv(norm='both'); degrees clamped to >=1."""
    deg = jnp.maximum(adj.sum(axis=1), 1.0)
    d_inv_sqrt = 1.0 / jnp.sqrt(deg)
    return adj * d_inv_sqrt[:, None] * d_inv_sqrt[None, :]


def reference_forward(a_hat, feats, params):
    """Plain-JAX f32 reference of the same forward pass (for a sanity check)."""
    (w1, b1, w2, b2, wh, bh, wo, bo) = params
    h1 = jax.nn.silu((a_hat @ feats) @ w1 + b1)
    h2 = jax.nn.silu((a_hat @ h1) @ w2 + b2)
    pooled = jnp.max(h2, axis=0, keepdims=True)
    hid = jax.nn.silu(pooled @ wh + bh)
    return jax.nn.sigmoid(hid @ wo + bo)


if __name__ == "__main__":
    key = jax.random.PRNGKey(0)
    k_adj, k_feat, k_param = jax.random.split(key, 3)

    num_nodes = 200      # pads to 256
    window_size = 30

    # Deterministic random undirected graph (binary symmetric adjacency, no self loops).
    rand = jax.random.uniform(k_adj, (num_nodes, num_nodes))
    adj = (rand < 0.15).astype(jnp.float32)
    adj = jnp.maximum(adj, adj.T)
    adj = adj * (1.0 - jnp.eye(num_nodes))
    a_hat = normalized_adjacency(adj)

    # Node features: (num_nodes, window_size)
    feats = jax.random.normal(k_feat, (num_nodes, window_size), jnp.float32)

    params = make_params(k_param, window_size=window_size)
    ref = reference_forward(a_hat, feats, params)

    # 1) small-graph fused fast path (whole forward in a single Pallas kernel)
    out_fused = jax.block_until_ready(gconvnet_forward(a_hat, feats, params))
    # 2) tiled path (2x2 grid) with X / h1 held VMEM-resident
    out_tiled = jax.block_until_ready(
        gconvnet_forward(a_hat, feats, params, use_fused=False, block_nodes=128))
    # 3) tiled path exercising the streamed (non-resident) fallback specs
    out_stream = jax.block_until_ready(
        gconvnet_forward(a_hat, feats, params, use_fused=False, block_nodes=128,
                         resident_ok=False))

    for out in (out_fused, out_tiled, out_stream):
        assert out.shape == (1, 4) and out.dtype == jnp.float32
        assert bool(jnp.all(jnp.isfinite(out)))
        max_err = float(jnp.max(jnp.abs(out - ref)))
        assert max_err < 0.08, f"kernel/reference mismatch: {max_err}"

    print("KERNEL_OK")
</pallas_src>

<mosaic_0001>
module attributes {stable_mosaic.version = 11 : i64} {
  func.func @_fused_forward_kernel(%arg0: memref<256x256xbf16, #tpu.memory_space<vmem>>, %arg1: memref<256x128xbf16, #tpu.memory_space<vmem>>, %arg2: memref<128x256xbf16, #tpu.memory_space<vmem>>, %arg3: memref<1x256xf32, #tpu.memory_space<vmem>>, %arg4: memref<256x512xbf16, #tpu.memory_space<vmem>>, %arg5: memref<1x512xf32, #tpu.memory_space<vmem>>, %arg6: memref<512x128xf32, #tpu.memory_space<vmem>>, %arg7: memref<1x128xf32, #tpu.memory_space<vmem>>, %arg8: memref<128x128xf32, #tpu.memory_space<vmem>>, %arg9: memref<1x128xf32, #tpu.memory_space<vmem>>, %arg10: memref<1x128xf32, #tpu.memory_space<vmem>>) attributes {dimension_semantics = [], scalar_prefetch = 0 : i64, scratch_operands = 0 : i64, tpu.core_type = #tpu.core_type<tc>} {
    %c0 = arith.constant 0 : index
    %c0_0 = arith.constant 0 : index
    %0 = vector.load %arg0[%c0, %c0_0] : memref<256x256xbf16, #tpu.memory_space<vmem>>, vector<256x256xbf16>
    %c0_1 = arith.constant 0 : index
    %c0_2 = arith.constant 0 : index
    %1 = vector.load %arg1[%c0_1, %c0_2] : memref<256x128xbf16, #tpu.memory_space<vmem>>, vector<256x128xbf16>
    %cst = arith.constant dense<0.000000e+00> : vector<256x128xf32>
    %2 = tpu.matmul %0, %1, %cst {dimension_numbers = #tpu.dot_dimension_numbers<[1], [0], [0], [1], [0, 0, 1, 1], [], []>} : vector<256x256xbf16>, vector<256x128xbf16>, vector<256x128xf32> -> vector<256x128xf32>
    %3 = arith.truncf %2 : vector<256x128xf32> to vector<256x128xbf16>
    %c0_3 = arith.constant 0 : index
    %c0_4 = arith.constant 0 : index
    %4 = vector.load %arg2[%c0_3, %c0_4] : memref<128x256xbf16, #tpu.memory_space<vmem>>, vector<128x256xbf16>
    %cst_5 = arith.constant dense<0.000000e+00> : vector<256x256xf32>
    %5 = tpu.matmul %3, %4, %cst_5 {dimension_numbers = #tpu.dot_dimension_numbers<[1], [0], [0], [1], [0, 0, 1, 1], [], []>} : vector<256x128xbf16>, vector<128x256xbf16>, vector<256x256xf32> -> vector<256x256xf32>
    %c0_6 = arith.constant 0 : index
    %c0_7 = arith.constant 0 : index
    %6 = vector.load %arg3[%c0_6, %c0_7] : memref<1x256xf32, #tpu.memory_space<vmem>>, vector<1x256xf32>
    %7 = vector.broadcast %6 : vector<1x256xf32> to vector<256x256xf32>
    %8 = arith.addf %5, %7 : vector<256x256xf32>
    %9 = arith.negf %8 : vector<256x256xf32>
    %10 = math.exp %9 : vector<256x256xf32>
    %cst_8 = arith.constant 1.000000e+00 : f32
    %11 = vector.broadcast %cst_8 : f32 to vector<256x256xf32>
    %12 = arith.addf %11, %10 : vector<256x256xf32>
    %13 = arith.divf %11, %12 : vector<256x256xf32>
    %14 = arith.mulf %8, %13 : vector<256x256xf32>
    %15 = arith.truncf %14 : vector<256x256xf32> to vector<256x256xbf16>
    %cst_9 = arith.constant dense<0.000000e+00> : vector<256x256xf32>
    %16 = tpu.matmul %0, %15, %cst_9 {dimension_numbers = #tpu.dot_dimension_numbers<[1], [0], [0], [1], [0, 0, 1, 1], [], []>} : vector<256x256xbf16>, vector<256x256xbf16>, vector<256x256xf32> -> vector<256x256xf32>
    %17 = arith.truncf %16 : vector<256x256xf32> to vector<256x256xbf16>
    %c0_10 = arith.constant 0 : index
    %c0_11 = arith.constant 0 : index
    %18 = vector.load %arg4[%c0_10, %c0_11] : memref<256x512xbf16, #tpu.memory_space<vmem>>, vector<256x512xbf16>
    %cst_12 = arith.constant dense<0.000000e+00> : vector<256x512xf32>
    %19 = tpu.matmul %17, %18, %cst_12 {dimension_numbers = #tpu.dot_dimension_numbers<[1], [0], [0], [1], [0, 0, 1, 1], [], []>} : vector<256x256xbf16>, vector<256x512xbf16>, vector<256x512xf32> -> vector<256x512xf32>
    %c0_13 = arith.constant 0 : index
    %c0_14 = arith.constant 0 : index
    %20 = vector.load %arg5[%c0_13, %c0_14] : memref<1x512xf32, #tpu.memory_space<vmem>>, vector<1x512xf32>
    %21 = vector.broadcast %20 : vector<1x512xf32> to vector<256x512xf32>
    %22 = arith.addf %19, %21 : vector<256x512xf32>
    %23 = arith.negf %22 : vector<256x512xf32>
    %24 = math.exp %23 : vector<256x512xf32>
    %cst_15 = arith.constant 1.000000e+00 : f32
    %25 = vector.broadcast %cst_15 : f32 to vector<256x512xf32>
    %26 = arith.addf %25, %24 : vector<256x512xf32>
    %27 = arith.divf %25, %26 : vector<256x512xf32>
    %28 = arith.mulf %22, %27 : vector<256x512xf32>
    %29 = tpu.iota {dimensions = array<i32: 0>} : vector<256x512xi32>
    %c200_i32 = arith.constant 200 : i32
    %30 = vector.broadcast %c200_i32 : i32 to vector<256x512xi32>
    %31 = arith.cmpi slt, %29, %30 : vector<256x512xi32>
    %cst_16 = arith.constant -3.000000e+38 : f32
    %32 = vector.broadcast %cst_16 : f32 to vector<256x512xf32>
    %33 = arith.select %31, %28, %32 : vector<256x512xi1>, vector<256x512xf32>
    %cst_17 = arith.constant dense<0xFF800000> : vector<512xf32>
    %34 = vector.multi_reduction <maximumf>, %33, %cst_17 [0] : vector<256x512xf32> to vector<512xf32>
    %35 = vector.shape_cast %34 : vector<512xf32> to vector<1x512xf32>
    %c0_18 = arith.constant 0 : index
    %c0_19 = arith.constant 0 : index
    %36 = vector.load %arg6[%c0_18, %c0_19] : memref<512x128xf32, #tpu.memory_space<vmem>>, vector<512x128xf32>
    %cst_20 = arith.constant dense<0.000000e+00> : vector<1x128xf32>
    %37 = tpu.matmul %35, %36, %cst_20 {dimension_numbers = #tpu.dot_dimension_numbers<[1], [0], [0], [1], [0, 0, 1, 1], [], []>} : vector<1x512xf32>, vector<512x128xf32>, vector<1x128xf32> -> vector<1x128xf32>
    %c0_21 = arith.constant 0 : index
    %c0_22 = arith.constant 0 : index
    %38 = vector.load %arg7[%c0_21, %c0_22] : memref<1x128xf32, #tpu.memory_space<vmem>>, vector<1x128xf32>
    %39 = arith.addf %37, %38 : vector<1x128xf32>
    %40 = arith.negf %39 : vector<1x128xf32>
    %41 = math.exp %40 : vector<1x128xf32>
    %cst_23 = arith.constant 1.000000e+00 : f32
    %42 = vector.broadcast %cst_23 : f32 to vector<1x128xf32>
    %43 = arith.addf %42, %41 : vector<1x128xf32>
    %44 = arith.divf %42, %43 : vector<1x128xf32>
    %45 = arith.mulf %39, %44 : vector<1x128xf32>
    %c0_24 = arith.constant 0 : index
    %c0_25 = arith.constant 0 : index
    %46 = vector.load %arg8[%c0_24, %c0_25] : memref<128x128xf32, #tpu.memory_space<vmem>>, vector<128x128xf32>
    %cst_26 = arith.constant dense<0.000000e+00> : vector<1x128xf32>
    %47 = tpu.matmul %45, %46, %cst_26 {dimension_numbers = #tpu.dot_dimension_numbers<[1], [0], [0], [1], [0, 0, 1, 1], [], []>} : vector<1x128xf32>, vector<128x128xf32>, vector<1x128xf32> -> vector<1x128xf32>
    %c0_27 = arith.constant 0 : index
    %c0_28 = arith.constant 0 : index
    %48 = vector.load %arg9[%c0_27, %c0_28] : memref<1x128xf32, #tpu.memory_space<vmem>>, vector<1x128xf32>
    %49 = arith.addf %47, %48 : vector<1x128xf32>
    %50 = arith.negf %49 : vector<1x128xf32>
    %51 = math.exp %50 : vector<1x128xf32>
    %cst_29 = arith.constant 1.000000e+00 : f32
    %52 = vector.broadcast %cst_29 : f32 to vector<1x128xf32>
    %53 = arith.addf %52, %51 : vector<1x128xf32>
    %54 = arith.divf %52, %53 : vector<1x128xf32>
    %c0_30 = arith.constant 0 : index
    %c0_31 = arith.constant 0 : index
    %55 = vector.load %arg10[%c0_30, %c0_31] : memref<1x128xf32, #tpu.memory_space<vmem>>, vector<1x128xf32>
    tpu.vector_store %arg10[%c0_30, %c0_31], %54 {strides = array<i32>} : memref<1x128xf32, #tpu.memory_space<vmem>>, vector<1x128xf32>,
    return
  }
}

</mosaic_0001>

<bundles_post_ra>
// kernel: tpu_custom_call.1
= control target key start
LH: loop header
LB: loop body
LE: loop exit
PB: predicated region body
PF: predicated region fallthrough
CT: control target
= control target key end

     0   :  { %15 = vsyncpa [#allocation3], 0  ;;  %s7109_s0 = inlined_call_operand.hbm [shape: bf16[256,256], index: 0, kind: input, shape index: {}]   ;;  %s7110_s1 = inlined_call_operand.hbm [shape: bf16[256,128], index: 1, kind: input, shape index: {}]   ;;  %s7111_s2 = inlined_call_operand.hbm [shape: bf16[128,256], index: 2, kind: input, shape index: {}]   ;;  %s7112_s3 = inlined_call_operand.vmem [shape: f32[1,256], index: 3, kind: input, shape index: {}]   ;;  %s7113_s4 = inlined_call_operand.hbm [shape: bf16[256,512], index: 4, kind: input, shape index: {}]   ;;  %s7114_s5 = inlined_call_operand.vmem [shape: f32[1,512], index: 5, kind: input, shape index: {}]   ;;  %s7115_s6 = inlined_call_operand.hbm [shape: f32[512,128], index: 6, kind: input, shape index: {}]   ;;  %s7116_s7 = inlined_call_operand.vmem [shape: f32[1,128], index: 7, kind: input, shape index: {}]   ;;  %s7117_s8 = inlined_call_operand.hbm [shape: f32[128,128], index: 8, kind: input, shape index: {}]   ;;  %s7118_s9 = inlined_call_operand.vmem [shape: f32[1,128], index: 9, kind: input, shape index: {}]   ;;  %s7119_s10 = inlined_call_operand.hbm [shape: f32[1,128], index: 10, kind: output, shape index: {}]  }
   0x1   :  { %16 = vsyncpa [#allocation6], 0 }
   0x2   :  { %17 = vsyncpa [#allocation9], 0 }
   0x3   :  { %18 = vsyncpa [#allocation12], 0 }
   0x4   :  { %19 = vsyncpa [#allocation4], 0  ;;  %s5679_s13 = smov [#allocation5]   ;;  %s5515_s17 = scalar_lea.hbm %s7110_s1, 2048 }
   0x5   :  { %s37_s14 = sshll.u32 %s5679_s13, 4  ;;  %p5516_p0 = scmp.ne.s32.totalorder %s7110_s1, %s5515_s17  ;;  %s38_s14 = int_to_ptr.vmem [resolvable:$true] %s37_s14 }
   0x6   :  { %p5519_p1 = scmp.lt.u32.totalorder %s5515_s17, %s7110_s1 }
   0x8   :  { %p5521_p2 = pnand %p5519_p1, %p5516_p0 }
   0xa   :  { %5524 = shalt.err (!%p5521_p2)
}
   0xb   :  { %s5525_s22 = scalar_lea.vmem %s38_s14, 2048  ;;  %p5530_p4 = scmp.lt.s32.totalorder %s38_s14, %s38_s14 }
   0xc   :  { %p5526_p3 = scmp.ne.s32.totalorder %s38_s14, %s5525_s22  ;;  %p5531_p5 = scmp.lt.s32.totalorder %s5525_s22, %s5525_s22 }
   0xe   :  { %p5532_p6 = por %p5531_p5, %p5530_p4 }
  0x10   :  { %p5533_p7 = pnand %p5532_p6, %p5526_p3 }
  0x12   :  { %5536 = shalt.err (!%p5533_p7)
}
  0x13   :  { %s5680_s23 = smov 64   ;;  %s5681_s24 = smov 4  }
  0x14   :  { %43 = dma.hbm_to_vmem [thread:$0]  %s7110_s1, 2048, %s38_s14, [#allocation6], %s5680_s23, %s5680_s23, %s5681_s24  }
  0x15   :  { %s5682_s27 = smov [#allocation8]   ;;  %s5537_s11 = scalar_lea.hbm %s7113_s4, 8192 }
  0x16   :  { %s63_s28 = sshll.u32 %s5682_s27, 4  ;;  %p5538_p8 = scmp.ne.s32.totalorder %s7113_s4, %s5537_s11  ;;  %s64_s28 = int_to_ptr.vmem [resolvable:$true] %s63_s28 }
  0x17   :  { %p5541_p9 = scmp.lt.u32.totalorder %s5537_s11, %s7113_s4 }
  0x19   :  { %p5543_p10 = pnand %p5541_p9, %p5538_p8 }
  0x1b   :  { %5546 = shalt.err (!%p5543_p10)
}
  0x1c   :  { %s5547_s17 = scalar_lea.vmem %s64_s28, 8192  ;;  %p5552_p12 = scmp.lt.s32.totalorder %s64_s28, %s64_s28 }
  0x1d   :  { %p5548_p11 = scmp.ne.s32.totalorder %s64_s28, %s5547_s17  ;;  %p5553_p13 = scmp.lt.s32.totalorder %s5547_s17, %s5547_s17 }
  0x1f   :  { %p5554_p0 = por %p5553_p13, %p5552_p12 }
  0x21   :  { %p5555_p1 = pnand %p5554_p0, %p5548_p11 }
  0x23   :  { %5558 = shalt.err (!%p5555_p1)
}
  0x24   :  { %s5683_s1 = smov 256   ;;  %s5684_s14 = smov 16  }
  0x25   :  { %69 = dma.hbm_to_vmem [thread:$0]  %s7113_s4, 8192, %s64_s28, [#allocation9], %s5683_s1, %s5683_s1, %s5684_s14  }
  0x26   :  { %s5685_s20 = smov [#allocation2]   ;;  %s5559_s24 = scalar_lea.hbm %s7109_s0, 4096 }
  0x27   :  { %s25_s21 = sshll.u32 %s5685_s20, 4  ;;  %p5560_p2 = scmp.ne.s32.totalorder %s7109_s0, %s5559_s24  ;;  %s26_s21 = int_to_ptr.vmem [resolvable:$true] %s25_s21 }
  0x28   :  { %p5563_p3 = scmp.lt.u32.totalorder %s5559_s24, %s7109_s0 }
  0x2a   :  { %p5565_p4 = pnand %p5563_p3, %p5560_p2 }
  0x2c   :  { %5568 = shalt.err (!%p5565_p4)
}
  0x2d   :  { %s5569_s30 = scalar_lea.vmem %s26_s21, 4096  ;;  %p5574_p6 = scmp.lt.s32.totalorder %s26_s21, %s26_s21 }
  0x2e   :  { %p5570_p5 = scmp.ne.s32.totalorder %s26_s21, %s5569_s30  ;;  %p5575_p7 = scmp.lt.s32.totalorder %s5569_s30, %s5569_s30 }
  0x30   :  { %p5576_p8 = por %p5575_p7, %p5574_p6 }
  0x32   :  { %p5577_p9 = pnand %p5576_p8, %p5570_p5 }
  0x34   :  { %5580 = shalt.err (!%p5577_p9)
}
  0x35   :  { %s5686_s4 = smov 128   ;;  %s5687_s28 = smov 8  }
  0x36   :  { %31 = dma.hbm_to_vmem [thread:$0]  %s7109_s0, 4096, %s26_s21, [#allocation3], %s5686_s4, %s5686_s4, %s5687_s28  }
  0x37   :  { %s5688_s13 = smov [#allocation7]   ;;  %s5689_s16 = smov [#allocation10]  }
  0x38   :  { %s49_s15 = sshll.u32 %s5688_s13, 4  ;;  %s77_s17 = sshll.u32 %s5689_s16, 4  ;;  %s50_s15 = int_to_ptr.vmem [resolvable:$true] %s49_s15  ;;  %s78_s17 = int_to_ptr.vmem [resolvable:$true] %s77_s17 }
  0x39   :  { %s5581_s18 = scalar_lea.hbm %s7111_s2, 2048 }
  0x3a   :  { %p5582_p10 = scmp.ne.s32.totalorder %s7111_s2, %s5581_s18  ;;  %p5585_p11 = scmp.lt.u32.totalorder %s5581_s18, %s7111_s2 }
  0x3c   :  { %p5587_p12 = pnand %p5585_p11, %p5582_p10 }
  0x3e   :  { %5590 = shalt.err (!%p5587_p12)
}
  0x3f   :  { %s5591_s0 = scalar_lea.vmem %s50_s15, 2048  ;;  %p5596_p0 = scmp.lt.s32.totalorder %s50_s15, %s50_s15 }
  0x40   :  { %p5592_p13 = scmp.ne.s32.totalorder %s50_s15, %s5591_s0  ;;  %p5597_p1 = scmp.lt.s32.totalorder %s5591_s0, %s5591_s0 }
  0x42   :  { %p5598_p2 = por %p5597_p1, %p5596_p0 }
  0x44   :  { %p5599_p3 = pnand %p5598_p2, %p5592_p13 }
  0x46   :  { %5602 = shalt.err (!%p5599_p3)
}
  0x47   :  { %55 = dma.hbm_to_vmem [thread:$0]  %s7111_s2, 2048, %s50_s15, [#allocation6], %s5686_s4, %s5686_s4, %s5687_s28  }
  0x48   :  { %s5603_s27 = scalar_lea.hbm %s7115_s6, 8192 }
  0x49   :  { %p5604_p4 = scmp.ne.s32.totalorder %s7115_s6, %s5603_s27  ;;  %p5607_p5 = scmp.lt.u32.totalorder %s5603_s27, %s7115_s6 }
  0x4b   :  { %p5609_p6 = pnand %p5607_p5, %p5604_p4 }
  0x4d   :  { %5612 = shalt.err (!%p5609_p6)
}
  0x4e   :  { %s5613_s13 = scalar_lea.vmem %s78_s17, 8192  ;;  %p5618_p8 = scmp.lt.s32.totalorder %s78_s17, %s78_s17 }
  0x4f   :  { %p5614_p7 = scmp.ne.s32.totalorder %s78_s17, %s5613_s13  ;;  %p5619_p9 = scmp.lt.s32.totalorder %s5613_s13, %s5613_s13 }
  0x51   :  { %p5620_p10 = por %p5619_p9, %p5618_p8 }
  0x53   :  { %p5621_p11 = pnand %p5620_p10, %p5614_p7 }
  0x55   :  { %5624 = shalt.err (!%p5621_p11)
}
  0x56   :  { %83 = dma.hbm_to_vmem [thread:$0]  %s7115_s6, 8192, %s78_s17, [#allocation9], %s5686_s4, %s5686_s4, %s5687_s28  }
  0x57   :  { %s5690_s16 = smov [#allocation11]   ;;  %s5625_s19 = scalar_lea.hbm %s7117_s8, 2048 }
  0x58   :  { %s91_s1 = sshll.u32 %s5690_s16, 4  ;;  %p5626_p12 = scmp.ne.s32.totalorder %s7117_s8, %s5625_s19  ;;  %s92_s1 = int_to_ptr.vmem [resolvable:$true] %s91_s1 }
  0x59   :  { %p5629_p13 = scmp.lt.u32.totalorder %s5625_s19, %s7117_s8 }
  0x5b   :  { %p5631_p0 = pnand %p5629_p13, %p5626_p12 }
  0x5d   :  { %5634 = shalt.err (!%p5631_p0)
}
  0x5e   :  { %s5635_s21 = scalar_lea.vmem %s92_s1, 2048  ;;  %p5640_p2 = scmp.lt.s32.totalorder %s92_s1, %s92_s1 }
  0x5f   :  { %p5636_p1 = scmp.ne.s32.totalorder %s92_s1, %s5635_s21  ;;  %p5641_p3 = scmp.lt.s32.totalorder %s5635_s21, %s5635_s21 }
  0x61   :  { %p5642_p4 = por %p5641_p3, %p5640_p2 }
  0x63   :  { %p5643_p5 = pnand %p5642_p4, %p5636_p1 }
  0x65   :  { %5646 = shalt.err (!%p5643_p5)
}
  0x66   :  { %97 = dma.hbm_to_vmem [thread:$0]  %s7117_s8, 2048, %s92_s1, [#allocation12], %s5686_s4, %s5686_s4, %s5687_s28  }
  0x67   :  { %5669 = dma.done.wait [#allocation3], 4096  }
  0x68   :  { %5670 = vsyncadd [#allocation3], 4294963200 }
  0x69   :  { %5671 = dma.done.wait [#allocation6], 4096  }
  0x6a   :  { %5672 = vsyncadd [#allocation6], 4294963200 }
  0x6b   :  { %5673 = dma.done.wait [#allocation9], 16384  }
  0x6c   :  { %5674 = vsyncadd [#allocation9], 4294950912 }
  0x6d   :  { %5675 = dma.done.wait [#allocation12], 2048  }
  0x6e   :  { %5676 = vsyncadd [#allocation12], 4294965248  ;;  %v4636_v0 = vld [vmem:[#allocation5 + $0x40] sm:$0xff]   ;;  %v4638_v2 = vld [vmem:[#allocation5 + $0x48] sm:$0xff]   ;;  %v5691_v57 = vmov 0   ;;  %vm5693_vm0 = vmmov 0  }
  0x6f   :  { %v4637_v1 = vld [vmem:[#allocation5] sm:$0xff]   ;;  %4297 = vmatprep.subr.bf16.mxu0 %v4636_v0  ;;  %v4639_v3 = vld [vmem:[#allocation5 + $0x8] sm:$0xff]   ;;  %v4640_v4 = vld [vmem:[#allocation5 + $0x50] sm:$0xff]   ;;  %756 = vmatprep.mubr.bf16.mxu1 %v5691_v57 }
  0x70   :  { %4298 = vmatpush3.bf16.msra.mxu0 %v4637_v1  ;;  %v4641_v5 = vld [vmem:[#allocation5 + $0x10] sm:$0xff]   ;;  %v4642_v6 = vld [vmem:[#allocation5 + $0x58] sm:$0xff]   ;;  %v4644_v8 = vld [vmem:[#allocation5 + $0x60] sm:$0xff]  }
  0x71   :  { %4299 = vmatprep.subr.bf16.mxu0 %v4638_v2  ;;  %v4643_v7 = vld [vmem:[#allocation5 + $0x18] sm:$0xff]   ;;  %v4645_v9 = vld [vmem:[#allocation5 + $0x20] sm:$0xff]   ;;  %v4646_v10 = vld [vmem:[#allocation5 + $0x68] sm:$0xff]  }
  0x72   :  { %v5835_v11 = vld [vmem:[#allocation2 + $0x4] ss:$8 sps:$4 sm:$0xff]   ;;  %v4648_v13 = vld [vmem:[#allocation5 + $0x70] sm:$0xff]   ;;  %v4650_v15 = vld [vmem:[#allocation5 + $0x78] sm:$0xff]  }
  0x73   :  { %v4647_v12 = vld [vmem:[#allocation5 + $0x28] sm:$0xff]   ;;  %471 = vmatprep.mubr.bf16.mxu0 %v5835_v11  ;;  %v4649_v14 = vld [vmem:[#allocation5 + $0x30] sm:$0xff]   ;;  %v4651_v16 = vld [vmem:[#allocation5 + $0x38] sm:$0xff]  }
  0x74   :  { %4300 = vmatpush3.bf16.msra.mxu0 %v4639_v3  ;;  %v4652_v17 = vld [vmem:[#allocation2] ss:$8 sps:$4 sm:$0xff]   ;;  %v4655_v18 = vld [vmem:[#allocation2 + $0x14] ss:$8 sps:$4 sm:$0xff]   ;;  %v4657_v19 = vld [vmem:[#allocation2 + $0x10] ss:$8 sps:$4 sm:$0xff]  }
  0x75   :  { %4301 = vmatprep.subr.bf16.mxu0 %v4640_v4  ;;  %v4700_v20 = vld [vmem:[#allocation7 + $0x4] ss:$8 sps:$4 sm:$0xff]   ;;  %v4702_v21 = vld [vmem:[#allocation7] ss:$8 sps:$4 sm:$0xff]   ;;  %v4703_v23 = vld [vmem:[#allocation7 + $0x14] ss:$8 sps:$4 sm:$0xff]  }
  0x76   :  { %v4658_v22 = vld [vmem:[#allocation2 + $0x24] ss:$8 sps:$4 sm:$0xff]   ;;  %724 = vmatprep.subr.bf16.mxu1 %v4700_v20  ;;  %v4705_v24 = vld [vmem:[#allocation7 + $0x10] ss:$8 sps:$4 sm:$0xff]   ;;  %v4660_v26 = vld [vmem:[#allocation2 + $0x20] ss:$8 sps:$4 sm:$0xff]  }
  0x77   :  { %725 = vmatpush1.bf16.msra.mxu1 %v4702_v21  ;;  %v4706_v25 = vld [vmem:[#allocation7 + $0x24] ss:$8 sps:$4 sm:$0xff]   ;;  %v4708_v27 = vld [vmem:[#allocation7 + $0x20] ss:$8 sps:$4 sm:$0xff]   ;;  %v4661_v28 = vld [vmem:[#allocation2 + $0x34] ss:$8 sps:$4 sm:$0xff]  }
  0x78   :  { %4302 = vmatpush3.bf16.msra.mxu0 %v4641_v5  ;;  %726 = vmatprep.subr.bf16.mxu1 %v4703_v23  ;;  %v4709_v29 = vld [vmem:[#allocation7 + $0x34] ss:$8 sps:$4 sm:$0xff]   ;;  %v4711_v30 = vld [vmem:[#allocation7 + $0x30] ss:$8 sps:$4 sm:$0xff]   ;;  %v4712_v31 = vld [vmem:[#allocation7 + $0x44] ss:$8 sps:$4 sm:$0xff]  }
  0x79   :  { %4303 = vmatprep.subr.bf16.mxu0 %v4642_v6  ;;  %v4714_v32 = vld [vmem:[#allocation7 + $0x40] ss:$8 sps:$4 sm:$0xff]   ;;  %v4663_v33 = vld [vmem:[#allocation2 + $0x30] ss:$8 sps:$4 sm:$0xff]   ;;  %v4715_v34 = vld [vmem:[#allocation7 + $0x54] ss:$8 sps:$4 sm:$0xff]  }
  0x7a   :  { %v4664_v35 = vld [vmem:[#allocation2 + $0x44] ss:$8 sps:$4 sm:$0xff]   ;;  %v4717_v36 = vld [vmem:[#allocation7 + $0x50] ss:$8 sps:$4 sm:$0xff]   ;;  %v4666_v37 = vld [vmem:[#allocation2 + $0x40] ss:$8 sps:$4 sm:$0xff]  }
  0x7b   :  { %727 = vmatpush1.bf16.msra.mxu1 %v4705_v24  ;;  %v4667_v38 = vld [vmem:[#allocation2 + $0x54] ss:$8 sps:$4 sm:$0xff]   ;;  %v4669_v39 = vld [vmem:[#allocation2 + $0x50] ss:$8 sps:$4 sm:$0xff]   ;;  %v4670_v40 = vld [vmem:[#allocation2 + $0x64] ss:$8 sps:$4 sm:$0xff]  }
  0x7c   :  { %4304 = vmatpush3.bf16.msra.mxu0 %v4643_v7  ;;  %728 = vmatprep.subr.bf16.mxu1 %v4706_v25  ;;  %v4672_v41 = vld [vmem:[#allocation2 + $0x60] ss:$8 sps:$4 sm:$0xff]   ;;  %v4673_v42 = vld [vmem:[#allocation2 + $0x74] ss:$8 sps:$4 sm:$0xff]   ;;  %v4675_v43 = vld [vmem:[#allocation2 + $0x70] ss:$8 sps:$4 sm:$0xff]  }
  0x7d   :  { %4305 = vmatprep.subr.bf16.mxu0 %v4644_v8  ;;  %v4676_v44 = vld [vmem:[#allocation2 + $0x84] ss:$8 sps:$4 sm:$0xff]   ;;  %v4678_v45 = vld [vmem:[#allocation2 + $0x80] ss:$8 sps:$4 sm:$0xff]   ;;  %v4679_v46 = vld [vmem:[#allocation2 + $0x94] ss:$8 sps:$4 sm:$0xff]  }
  0x7e   :  { %v4681_v47 = vld [vmem:[#allocation2 + $0x90] ss:$8 sps:$4 sm:$0xff]   ;;  %v4682_v48 = vld [vmem:[#allocation2 + $0xa4] ss:$8 sps:$4 sm:$0xff]   ;;  %v4684_v49 = vld [vmem:[#allocation2 + $0xa0] ss:$8 sps:$4 sm:$0xff]  }
  0x7f   :  { %729 = vmatpush1.bf16.msra.mxu1 %v4708_v27  ;;  %v4685_v50 = vld [vmem:[#allocation2 + $0xb4] ss:$8 sps:$4 sm:$0xff]   ;;  %v4718_v51 = vld [vmem:[#allocation7 + $0x64] ss:$8 sps:$4 sm:$0xff]   ;;  %v4720_v52 = vld [vmem:[#allocation7 + $0x60] ss:$8 sps:$4 sm:$0xff]  }
  0x80   :  { %4306 = vmatpush3.bf16.msra.mxu0 %v4645_v9  ;;  %730 = vmatprep.subr.bf16.mxu1 %v4709_v29  ;;  %v4687_v53 = vld [vmem:[#allocation2 + $0xb0] ss:$8 sps:$4 sm:$0xff]   ;;  %v4688_v54 = vld [vmem:[#allocation2 + $0xc4] ss:$8 sps:$4 sm:$0xff]   ;;  %v4721_v55 = vld [vmem:[#allocation7 + $0x74] ss:$8 sps:$4 sm:$0xff]  }
  0x81   :  { %4307 = vmatprep.subr.bf16.mxu0 %v4646_v10  ;;  %v4723_v56 = vld [vmem:[#allocation7 + $0x70] ss:$8 sps:$4 sm:$0xff]   ;;  %v4690_v58 = vld [vmem:[#allocation2 + $0xc0] ss:$8 sps:$4 sm:$0xff]   ;;  %v4691_v59 = vld [vmem:[#allocation2 + $0xd4] ss:$8 sps:$4 sm:$0xff]  }
  0x82   :  { %v4693_v60 = vld [vmem:[#allocation2 + $0xd0] ss:$8 sps:$4 sm:$0xff]   ;;  %v4694_v61 = vld [vmem:[#allocation2 + $0xe4] ss:$8 sps:$4 sm:$0xff]   ;;  %v4696_v62 = vld [vmem:[#allocation2 + $0xe0] ss:$8 sps:$4 sm:$0xff]  }
  0x83   :  { %731 = vmatpush1.bf16.msra.mxu1 %v4711_v30  ;;  %v4697_v63 = vld [vmem:[#allocation2 + $0xf4] ss:$8 sps:$4 sm:$0xff]   ;;  %v4699_v0 = vld [vmem:[#allocation2 + $0xf0] ss:$8 sps:$4 sm:$0xff]  }
  0x84   :  { %4308 = vmatpush3.bf16.msra.mxu0 %v4647_v12  ;;  %732 = vmatprep.subr.bf16.mxu1 %v4712_v31 }
  0x85   :  { %4309 = vmatprep.subr.bf16.mxu0 %v4648_v13 }
  0x87   :  { %733 = vmatpush1.bf16.msra.mxu1 %v4714_v32 }
  0x88   :  { %4310 = vmatpush3.bf16.msra.mxu0 %v4649_v14  ;;  %734 = vmatprep.subr.bf16.mxu1 %v4715_v34 }
  0x89   :  { %4311 = vmatprep.subr.bf16.mxu0 %v4650_v15 }
  0x8b   :  { %735 = vmatpush1.bf16.msra.mxu1 %v4717_v36 }
  0x8c   :  { %4312 = vmatpush3.bf16.msra.mxu0 %v4651_v16  ;;  %736 = vmatprep.subr.bf16.mxu1 %v4718_v51 }
  0x8f   :  { %472 = vmatmul.mubr.bf16.vlgmr.msra.gmra.mrb[0].mxu0 %v4652_v17  ;;  %737 = vmatpush1.bf16.msra.mxu1 %v4720_v52 }
  0x90   :  { %479 = vmatprep.mubr.bf16.mxu0 %v4655_v18  ;;  %738 = vmatprep.subr.bf16.mxu1 %v4721_v55 }
  0x93   :  { %739 = vmatpush1.bf16.msra.mxu1 %v4723_v56 }
  0x97   :  { %480 = vmatmul.mubr.bf16.gmra.mrb[4].mxu0 %v4657_v19 }
  0x98   :  { %487 = vmatprep.mubr.bf16.mxu0 %v4658_v22 }
  0x9f   :  { %488 = vmatmul.mubr.bf16.gmra.mrb[8].mxu0 %v4660_v26 }
  0xa0   :  { %495 = vmatprep.mubr.bf16.mxu0 %v4661_v28 }
  0xa7   :  { %496 = vmatmul.mubr.bf16.gmra.mrb[12].mxu0 %v4663_v33 }
  0xa8   :  { %503 = vmatprep.mubr.bf16.mxu0 %v4664_v35 }
  0xaf   :  { %504 = vmatmul.mubr.bf16.gmra.mrb[16].mxu0 %v4666_v37 }
  0xb0   :  { %511 = vmatprep.mubr.bf16.mxu0 %v4667_v38 }
  0xb7   :  { %512 = vmatmul.mubr.bf16.gmra.mrb[20].mxu0 %v4669_v39 }
  0xb8   :  { %519 = vmatprep.mubr.bf16.mxu0 %v4670_v40 }
  0xbf   :  { %520 = vmatmul.mubr.bf16.gmra.mrb[24].mxu0 %v4672_v41 }
  0xc0   :  { %527 = vmatprep.mubr.bf16.mxu0 %v4673_v42 }
  0xc7   :  { %528 = vmatmul.mubr.bf16.gmra.mrb[28].mxu0 %v4675_v43 }
  0xc8   :  { %535 = vmatprep.mubr.bf16.mxu0 %v4676_v44 }
  0xcf   :  { %536 = vmatmul.mubr.bf16.gmra.mrb[32].mxu0 %v4678_v45 }
  0xd0   :  { %543 = vmatprep.mubr.bf16.mxu0 %v4679_v46 }
  0xd7   :  { %544 = vmatmul.mubr.bf16.gmra.mrb[36].mxu0 %v4681_v47 }
  0xd8   :  { %551 = vmatprep.mubr.bf16.mxu0 %v4682_v48 }
  0xdf   :  { %552 = vmatmul.mubr.bf16.gmra.mrb[40].mxu0 %v4684_v49 }
  0xe0   :  { %559 = vmatprep.mubr.bf16.mxu0 %v4685_v50 }
  0xe7   :  { %560 = vmatmul.mubr.bf16.gmra.mrb[44].mxu0 %v4687_v53 }
  0xe8   :  { %567 = vmatprep.mubr.bf16.mxu0 %v4688_v54 }
  0xef   :  { %568 = vmatmul.mubr.bf16.gmra.mrb[48].mxu0 %v4690_v58 }
  0xf0   :  { %575 = vmatprep.mubr.bf16.mxu0 %v4691_v59 }
  0xf7   :  { %576 = vmatmul.mubr.bf16.gmra.mrb[52].mxu0 %v4693_v60 }
  0xf8   :  { %583 = vmatprep.mubr.bf16.mxu0 %v4694_v61 }
  0xff   :  { %584 = vmatmul.mubr.bf16.gmra.mrb[56].mxu0 %v4696_v62 }
 0x100   :  { %591 = vmatprep.mubr.bf16.mxu0 %v4697_v63 }
 0x107   :  { %592 = vmatmul.mubr.bf16.gmra.mrb[60].mxu0 %v4699_v0 }
 0x108   :  { %1429 = vmatprep.mubr.bf16.mxu0 %v5835_v11 }
 0x162   :  { %v4313_v1 = vpop.f32.mrb[0].mxu0 }
 0x163   :  { %v4314_v2 = vpop.f32.mrb[1].mxu0 }
 0x164   :  { %v4315_v3 = vadd.f32 %v4314_v2, %v4313_v1  ;;  %v4316_v4 = vpop.f32.mrb[2].mxu0 }
 0x165   :  { %v4317_v5 = vpop.f32.mrb[3].mxu0 }
 0x166   :  { %v4318_v6 = vadd.f32 %v4317_v5, %v4316_v4 }
 0x168   :  { %v600_v7 = vpack.c.bf16 %v4318_v6, %v4315_v3 }
 0x16a   :  { %v4319_v8 = vpop.f32.mrb[4].mxu0  ;;  %757 = vmatmul.mubr.bf16.vlgmr.msra.gmra.mrb[0].mxu1 %v600_v7 }
 0x16b   :  { %v4320_v9 = vpop.f32.mrb[5].mxu0  ;;  %766 = vmatprep.mubr.bf16.mxu1 %v5691_v57 }
 0x16c   :  { %v4321_v10 = vadd.f32 %v4320_v9, %v4319_v8  ;;  %v4322_v12 = vpop.f32.mrb[6].mxu0 }
 0x16d   :  { %v4323_v13 = vpop.f32.mrb[7].mxu0 }
 0x16e   :  { %v4324_v14 = vadd.f32 %v4323_v13, %v4322_v12 }
 0x170   :  { %v601_v15 = vpack.c.bf16 %v4324_v14, %v4321_v10 }
 0x172   :  { %v4325_v16 = vpop.f32.mrb[8].mxu0  ;;  %767 = vmatmul.mubr.bf16.gmra.mrb[4].mxu1 %v601_v15 }
 0x173   :  { %v4326_v11 = vpop.f32.mrb[9].mxu0  ;;  %776 = vmatprep.mubr.bf16.mxu1 %v5691_v57 }
 0x174   :  { %v4327_v17 = vadd.f32 %v4326_v11, %v4325_v16  ;;  %v4328_v18 = vpop.f32.mrb[10].mxu0 }
 0x175   :  { %v4329_v19 = vpop.f32.mrb[11].mxu0 }
 0x176   :  { %v4330_v20 = vadd.f32 %v4329_v19, %v4328_v18 }
 0x178   :  { %v602_v21 = vpack.c.bf16 %v4330_v20, %v4327_v17 }
 0x17a   :  { %v4331_v22 = vpop.f32.mrb[12].mxu0  ;;  %777 = vmatmul.mubr.bf16.gmra.mrb[8].mxu1 %v602_v21 }
 0x17b   :  { %v4332_v23 = vpop.f32.mrb[13].mxu0  ;;  %786 = vmatprep.mubr.bf16.mxu1 %v5691_v57 }
 0x17c   :  { %v4333_v24 = vadd.f32 %v4332_v23, %v4331_v22  ;;  %v4334_v25 = vpop.f32.mrb[14].mxu0 }
 0x17d   :  { %v4335_v26 = vpop.f32.mrb[15].mxu0 }
 0x17e   :  { %v4336_v27 = vadd.f32 %v4335_v26, %v4334_v25 }
 0x180   :  { %v603_v28 = vpack.c.bf16 %v4336_v27, %v4333_v24 }
 0x182   :  { %v4337_v29 = vpop.f32.mrb[16].mxu0  ;;  %787 = vmatmul.mubr.bf16.gmra.mrb[12].mxu1 %v603_v28 }
 0x183   :  { %v4338_v30 = vpop.f32.mrb[17].mxu0  ;;  %796 = vmatprep.mubr.bf16.mxu1 %v5691_v57 }
 0x184   :  { %v4339_v31 = vadd.f32 %v4338_v30, %v4337_v29  ;;  %v4340_v32 = vpop.f32.mrb[18].mxu0 }
 0x185   :  { %v4341_v33 = vpop.f32.mrb[19].mxu0 }
 0x186   :  { %v4342_v34 = vadd.f32 %v4341_v33, %v4340_v32 }
 0x188   :  { %v604_v35 = vpack.c.bf16 %v4342_v34, %v4339_v31 }
 0x18a   :  { %v4343_v36 = vpop.f32.mrb[20].mxu0  ;;  %797 = vmatmul.mubr.bf16.gmra.mrb[16].mxu1 %v604_v35 }
 0x18b   :  { %v4344_v37 = vpop.f32.mrb[21].mxu0  ;;  %806 = vmatprep.mubr.bf16.mxu1 %v5691_v57 }
 0x18c   :  { %v4345_v38 = vadd.f32 %v4344_v37, %v4343_v36  ;;  %v4346_v39 = vpop.f32.mrb[22].mxu0 }
 0x18d   :  { %v4347_v40 = vpop.f32.mrb[23].mxu0 }
 0x18e   :  { %v4348_v41 = vadd.f32 %v4347_v40, %v4346_v39 }
 0x190   :  { %v605_v42 = vpack.c.bf16 %v4348_v41, %v4345_v38 }
 0x192   :  { %v4349_v43 = vpop.f32.mrb[24].mxu0  ;;  %807 = vmatmul.mubr.bf16.gmra.mrb[20].mxu1 %v605_v42 }
 0x193   :  { %v4350_v44 = vpop.f32.mrb[25].mxu0  ;;  %816 = vmatprep.mubr.bf16.mxu1 %v5691_v57 }
 0x194   :  { %v4351_v45 = vadd.f32 %v4350_v44, %v4349_v43  ;;  %v4352_v46 = vpop.f32.mrb[26].mxu0 }
 0x195   :  { %v4353_v47 = vpop.f32.mrb[27].mxu0 }
 0x196   :  { %v4354_v48 = vadd.f32 %v4353_v47, %v4352_v46 }
 0x198   :  { %v606_v49 = vpack.c.bf16 %v4354_v48, %v4351_v45 }
 0x19a   :  { %v4355_v50 = vpop.f32.mrb[28].mxu0  ;;  %817 = vmatmul.mubr.bf16.gmra.mrb[24].mxu1 %v606_v49 }
 0x19b   :  { %v4356_v51 = vpop.f32.mrb[29].mxu0  ;;  %826 = vmatprep.mubr.bf16.mxu1 %v5691_v57 }
 0x19c   :  { %v4357_v52 = vadd.f32 %v4356_v51, %v4355_v50  ;;  %v4358_v53 = vpop.f32.mrb[30].mxu0  ;;  %v634_v50 = vlaneseq }
 0x19d   :  { %v4359_v54 = vpop.f32.mrb[31].mxu0 }
 0x19e   :  { %v4360_v55 = vadd.f32 %v4359_v54, %v4358_v53  ;;  %v5855_v51 = vshrl.u32 %v634_v50, 7  ;;  %v632_v53 = vld [vmem:[%s7112_s3] sm:$0x3] }
 0x1a0   :  { %v607_v56 = vpack.c.bf16 %v4360_v55, %v4357_v52  ;;  %v636_v52 = vsub.s32 0, %v5855_v51  ;;  %v640_v54 = vsub.s32 1, %v5855_v51 }
 0x1a2   :  { %v4361_v58 = vpop.f32.mrb[32].mxu0  ;;  %827 = vmatmul.mubr.bf16.gmra.mrb[28].mxu1 %v607_v56  ;;  %v5868_v55 = vrot.slane %v632_v53, %v640_v54 }
 0x1a3   :  { %v4362_v59 = vpop.f32.mrb[33].mxu0  ;;  %836 = vmatprep.mubr.bf16.mxu1 %v5691_v57 }
 0x1a4   :  { %v4363_v60 = vadd.f32 %v4362_v59, %v4361_v58  ;;  %v4364_v61 = vpop.f32.mrb[34].mxu0 }
 0x1a5   :  { %v4365_v62 = vpop.f32.mrb[35].mxu0 }
 0x1a6   :  { %v4366_v63 = vadd.f32 %v4365_v62, %v4364_v61 }
 0x1a8   :  { %v608_v0 = vpack.c.bf16 %v4366_v63, %v4363_v60 }
 0x1aa   :  { %v4367_v1 = vpop.f32.mrb[36].mxu0  ;;  %837 = vmatmul.mubr.bf16.gmra.mrb[32].mxu1 %v608_v0 }
 0x1ab   :  { %v4368_v2 = vpop.f32.mrb[37].mxu0  ;;  %846 = vmatprep.mubr.bf16.mxu1 %v5691_v57 }
 0x1ac   :  { %v4369_v3 = vadd.f32 %v4368_v2, %v4367_v1  ;;  %v4370_v4 = vpop.f32.mrb[38].mxu0 }
 0x1ad   :  { %v4371_v5 = vpop.f32.mrb[39].mxu0 }
 0x1ae   :  { %v4372_v6 = vadd.f32 %v4371_v5, %v4370_v4 }
 0x1b0   :  { %v609_v7 = vpack.c.bf16 %v4372_v6, %v4369_v3 }
 0x1b2   :  { %v4373_v8 = vpop.f32.mrb[40].mxu0  ;;  %847 = vmatmul.mubr.bf16.gmra.mrb[36].mxu1 %v609_v7 }
 0x1b3   :  { %v4374_v9 = vpop.f32.mrb[41].mxu0  ;;  %856 = vmatprep.mubr.bf16.mxu1 %v5691_v57 }
 0x1b4   :  { %v4375_v10 = vadd.f32 %v4374_v9, %v4373_v8  ;;  %v4376_v12 = vpop.f32.mrb[42].mxu0 }
 0x1b5   :  { %v4377_v13 = vpop.f32.mrb[43].mxu0 }
 0x1b6   :  { %v4378_v14 = vadd.f32 %v4377_v13, %v4376_v12 }
 0x1b8   :  { %v610_v15 = vpack.c.bf16 %v4378_v14, %v4375_v10 }
 0x1ba   :  { %v4379_v16 = vpop.f32.mrb[44].mxu0  ;;  %857 = vmatmul.mubr.bf16.gmra.mrb[40].mxu1 %v610_v15 }
 0x1bb   :  { %v4380_v11 = vpop.f32.mrb[45].mxu0  ;;  %866 = vmatprep.mubr.bf16.mxu1 %v5691_v57 }
 0x1bc   :  { %v4381_v17 = vadd.f32 %v4380_v11, %v4379_v16  ;;  %v4382_v18 = vpop.f32.mrb[46].mxu0 }
 0x1bd   :  { %v4383_v19 = vpop.f32.mrb[47].mxu0 }
 0x1be   :  { %v4384_v20 = vadd.f32 %v4383_v19, %v4382_v18 }
 0x1c0   :  { %v611_v21 = vpack.c.bf16 %v4384_v20, %v4381_v17 }
 0x1c2   :  { %v4385_v22 = vpop.f32.mrb[48].mxu0  ;;  %867 = vmatmul.mubr.bf16.gmra.mrb[44].mxu1 %v611_v21 }
 0x1c3   :  { %v4386_v23 = vpop.f32.mrb[49].mxu0  ;;  %876 = vmatprep.mubr.bf16.mxu1 %v5691_v57 }
 0x1c4   :  { %v4387_v24 = vadd.f32 %v4386_v23, %v4385_v22  ;;  %v4388_v25 = vpop.f32.mrb[50].mxu0 }
 0x1c5   :  { %v4389_v26 = vpop.f32.mrb[51].mxu0 }
 0x1c6   :  { %v4390_v27 = vadd.f32 %v4389_v26, %v4388_v25 }
 0x1c8   :  { %v612_v28 = vpack.c.bf16 %v4390_v27, %v4387_v24 }
 0x1ca   :  { %v4391_v29 = vpop.f32.mrb[52].mxu0  ;;  %877 = vmatmul.mubr.bf16.gmra.mrb[48].mxu1 %v612_v28 }
 0x1cb   :  { %v4392_v30 = vpop.f32.mrb[53].mxu0  ;;  %886 = vmatprep.mubr.bf16.mxu1 %v5691_v57 }
 0x1cc   :  { %v4393_v31 = vadd.f32 %v4392_v30, %v4391_v29  ;;  %v4394_v32 = vpop.f32.mrb[54].mxu0 }
 0x1cd   :  { %v4395_v33 = vpop.f32.mrb[55].mxu0 }
 0x1ce   :  { %v4396_v34 = vadd.f32 %v4395_v33, %v4394_v32 }
 0x1d0   :  { %v613_v35 = vpack.c.bf16 %v4396_v34, %v4393_v31 }
 0x1d2   :  { %v4397_v36 = vpop.f32.mrb[56].mxu0  ;;  %887 = vmatmul.mubr.bf16.gmra.mrb[52].mxu1 %v613_v35 }
 0x1d3   :  { %v4398_v37 = vpop.f32.mrb[57].mxu0  ;;  %896 = vmatprep.mubr.bf16.mxu1 %v5691_v57 }
 0x1d4   :  { %v4399_v38 = vadd.f32 %v4398_v37, %v4397_v36  ;;  %v4400_v39 = vpop.f32.mrb[58].mxu0 }
 0x1d5   :  { %v4401_v40 = vpop.f32.mrb[59].mxu0 }
 0x1d6   :  { %v4402_v41 = vadd.f32 %v4401_v40, %v4400_v39 }
 0x1d8   :  { %v614_v42 = vpack.c.bf16 %v4402_v41, %v4399_v38 }
 0x1da   :  { %v4403_v43 = vpop.f32.mrb[60].mxu0  ;;  %897 = vmatmul.mubr.bf16.gmra.mrb[56].mxu1 %v614_v42 }
 0x1db   :  { %v4404_v44 = vpop.f32.mrb[61].mxu0  ;;  %906 = vmatprep.mubr.bf16.mxu1 %v5691_v57  ;;  %v5864_v57 = vrot.slane %v632_v53, %v636_v52 }
 0x1dc   :  { %v4405_v45 = vadd.f32 %v4404_v44, %v4403_v43  ;;  %v4406_v46 = vpop.f32.mrb[62].mxu0 }
 0x1dd   :  { %v4407_v47 = vpop.f32.mrb[63].mxu0 }
 0x1de   :  { %v4408_v48 = vadd.f32 %v4407_v47, %v4406_v46 }
 0x1e0   :  { %v615_v49 = vpack.c.bf16 %v4408_v48, %v4405_v45 }
 0x1e2   :  { %907 = vmatmul.mubr.bf16.gmra.mrb[60].mxu1 %v615_v49 }
 0x23d   :  { %v758_v56 = vpop.f32.mrb[0].mxu1 }
 0x23e   :  { %v5871_v58 = vadd.f32 %v758_v56, %v5864_v57  ;;  %v760_v59 = vpop.f32.mrb[1].mxu1 }
 0x23f   :  { %v5874_v60 = vadd.f32 %v760_v59, %v5868_v55  ;;  %v762_v61 = vpop.f32.mrb[2].mxu1 }
 0x240   :  { %v4039_v62 = vmul.f32 -1.442695, %v5871_v58  ;;  %v5878_v63 = vadd.f32 %v762_v61, %v5864_v57  ;;  %v764_v0 = vpop.f32.mrb[3].mxu1 }
 0x241   :  { %v4040_v1 = vmul.f32 -1.442695, %v5874_v60  ;;  %v5882_v2 = vadd.f32 %v764_v0, %v5868_v55 }
 0x242   :  { %4820 = vpow2.f32 %v4039_v62  ;;  %v4041_v3 = vmul.f32 -1.442695, %v5878_v63 }
 0x243   :  { %4822 = vpow2.f32 %v4040_v1  ;;  %v4042_v4 = vmul.f32 -1.442695, %v5882_v2 }
 0x244   :  { %4824 = vpow2.f32 %v4041_v3 }
 0x245   :  { %4826 = vpow2.f32 %v4042_v4  ;;  %v768_v5 = vpop.f32.mrb[4].mxu1 }
 0x246   :  { %v5887_v6 = vadd.f32 %v768_v5, %v5864_v57  ;;  %v770_v7 = vpop.f32.mrb[5].mxu1 }
 0x247   :  { %v5890_v8 = vadd.f32 %v770_v7, %v5868_v55  ;;  %v772_v9 = vpop.f32.mrb[6].mxu1 }
 0x248   :  { %v4043_v10 = vmul.f32 -1.442695, %v5887_v6  ;;  %v5894_v12 = vadd.f32 %v772_v9, %v5864_v57  ;;  %v774_v13 = vpop.f32.mrb[7].mxu1 }
 0x249   :  { %v4044_v14 = vmul.f32 -1.442695, %v5890_v8  ;;  %v5898_v15 = vadd.f32 %v774_v13, %v5868_v55 }
 0x24a   :  { %4828 = vpow2.f32 %v4043_v10  ;;  %v4045_v16 = vmul.f32 -1.442695, %v5894_v12 }
 0x24b   :  { %4830 = vpow2.f32 %v4044_v14  ;;  %v4046_v11 = vmul.f32 -1.442695, %v5898_v15 }
 0x24c   :  { %v4821_v17 = vpop.eup %4820  ;;  %4832 = vpow2.f32 %v4045_v16 }
 0x24d   :  { %v4823_v18 = vpop.eup %4822  ;;  %v1109_v19 = vadd.f32 1.0, %v4821_v17  ;;  %4834 = vpow2.f32 %v4046_v11  ;;  %v778_v20 = vpop.f32.mrb[8].mxu1 }
 0x24e   :  { %v4825_v21 = vpop.eup %4824  ;;  %v1110_v22 = vadd.f32 1.0, %v4823_v18  ;;  %v5903_v23 = vadd.f32 %v778_v20, %v5864_v57  ;;  %v780_v24 = vpop.f32.mrb[9].mxu1 }
 0x24f   :  { %v4827_v25 = vpop.eup %4826  ;;  %4836 = vrcp.f32 %v1109_v19  ;;  %v1111_v26 = vadd.f32 1.0, %v4825_v21  ;;  %v5906_v27 = vadd.f32 %v780_v24, %v5868_v55  ;;  %v782_v28 = vpop.f32.mrb[10].mxu1 }
 0x250   :  { %4838 = vrcp.f32 %v1110_v22  ;;  %v1112_v29 = vadd.f32 1.0, %v4827_v25  ;;  %v4047_v30 = vmul.f32 -1.442695, %v5903_v23  ;;  %v5910_v31 = vadd.f32 %v782_v28, %v5864_v57  ;;  %v784_v32 = vpop.f32.mrb[11].mxu1 }
 0x251   :  { %4840 = vrcp.f32 %v1111_v26  ;;  %v4048_v33 = vmul.f32 -1.442695, %v5906_v27  ;;  %v5914_v34 = vadd.f32 %v784_v32, %v5868_v55 }
 0x252   :  { %4842 = vrcp.f32 %v1112_v29  ;;  %v4049_v35 = vmul.f32 -1.442695, %v5910_v31 }
 0x253   :  { %4844 = vpow2.f32 %v4047_v30  ;;  %v4050_v36 = vmul.f32 -1.442695, %v5914_v34 }
 0x254   :  { %v4829_v37 = vpop.eup %4828  ;;  %4846 = vpow2.f32 %v4048_v33 }
 0x255   :  { %v4831_v38 = vpop.eup %4830  ;;  %v1113_v39 = vadd.f32 1.0, %v4829_v37  ;;  %4848 = vpow2.f32 %v4049_v35  ;;  %v788_v40 = vpop.f32.mrb[12].mxu1 }
 0x256   :  { %v4833_v41 = vpop.eup %4832  ;;  %v1114_v42 = vadd.f32 1.0, %v4831_v38  ;;  %4850 = vpow2.f32 %v4050_v36  ;;  %v5919_v43 = vadd.f32 %v788_v40, %v5864_v57  ;;  %v790_v44 = vpop.f32.mrb[13].mxu1 }
 0x257   :  { %v4835_v45 = vpop.eup %4834  ;;  %4852 = vrcp.f32 %v1113_v39  ;;  %v1115_v46 = vadd.f32 1.0, %v4833_v41  ;;  %v5922_v47 = vadd.f32 %v790_v44, %v5868_v55  ;;  %v792_v48 = vpop.f32.mrb[14].mxu1 }
 0x258   :  { %4854 = vrcp.f32 %v1114_v42  ;;  %v1116_v49 = vadd.f32 1.0, %v4835_v45  ;;  %v4051_v50 = vmul.f32 -1.442695, %v5919_v43  ;;  %v5926_v53 = vadd.f32 %v792_v48, %v5864_v57  ;;  %v794_v56 = vpop.f32.mrb[15].mxu1 }
 0x259   :  { %v4837_v59 = vpop.eup %4836  ;;  %4856 = vrcp.f32 %v1115_v46  ;;  %v4052_v61 = vmul.f32 -1.442695, %v5922_v47  ;;  %v5930_v62 = vadd.f32 %v794_v56, %v5868_v55 }
 0x25a   :  { %v4839_v0 = vpop.eup %4838  ;;  %4858 = vrcp.f32 %v1116_v49  ;;  %v4053_v1 = vmul.f32 -1.442695, %v5926_v53  ;;  %v1301_v7 = vmul.f32 %v4837_v59, %v5871_v58 }
 0x25b   :  { %v4841_v3 = vpop.eup %4840  ;;  %4860 = vpow2.f32 %v4051_v50  ;;  %v4054_v4 = vmul.f32 -1.442695, %v5930_v62  ;;  %v1302_v13 = vmul.f32 %v4839_v0, %v5874_v60 }
 0x25c   :  { %v4843_v5 = vpop.eup %4842  ;;  %v1303_v9 = vmul.f32 %v4841_v3, %v5878_v63  ;;  %4862 = vpow2.f32 %v4052_v61 }
 0x25d   :  { %v4845_v10 = vpop.eup %4844  ;;  %v1304_v14 = vmul.f32 %v4843_v5, %v5882_v2  ;;  %4864 = vpow2.f32 %v4053_v1  ;;  %v798_v16 = vpop.f32.mrb[16].mxu1 }
 0x25e   :  { %v4847_v11 = vpop.eup %4846  ;;  %v1365_v17 = vpack.c.bf16 %v1303_v9, %v1301_v7  ;;  %v1117_v18 = vadd.f32 1.0, %v4845_v10  ;;  %4866 = vpow2.f32 %v4054_v4  ;;  %v5939_v19 = vadd.f32 %v798_v16, %v5864_v57  ;;  %v800_v20 = vpop.f32.mrb[17].mxu1 }
 0x25f   :  { %v4849_v21 = vpop.eup %4848  ;;  %v1118_v58 = vadd.f32 1.0, %v4847_v11  ;;  %v5942_v63 = vadd.f32 %v800_v20, %v5868_v55  ;;  %v802_v22 = vpop.f32.mrb[18].mxu1  ;;  %v1366_v24 = vpack.c.bf16 %v1304_v14, %v1302_v13 }
 0x260   :  { %v4851_v60 = vpop.eup %4850  ;;  %4868 = vrcp.f32 %v1117_v18  ;;  %v1119_v2 = vadd.f32 1.0, %v4849_v21  ;;  %v4055_v25 = vmul.f32 -1.442695, %v5939_v19  ;;  %v5946_v26 = vadd.f32 %v802_v22, %v5864_v57  ;;  %v804_v28 = vpop.f32.mrb[19].mxu1 }
 0x261   :  { %v4853_v29 = vpop.eup %4852  ;;  %4870 = vrcp.f32 %v1118_v58  ;;  %v1120_v30 = vadd.f32 1.0, %v4851_v60  ;;  %v4056_v32 = vmul.f32 -1.442695, %v5942_v63  ;;  %v5950_v33 = vadd.f32 %v804_v28, %v5868_v55  ;;  %1397 = vmatprep.subr.bf16.mxu0 %v1366_v24 }
 0x262   :  { %v4855_v35 = vpop.eup %4854  ;;  %4872 = vrcp.f32 %v1119_v2  ;;  %v4057_v36 = vmul.f32 -1.442695, %v5946_v26  ;;  %1398 = vmatpush1.bf16.msra.mxu0 %v1365_v17  ;;  %v1305_v40 = vmul.f32 %v4853_v29, %v5887_v6 }
 0x263   :  { %v4857_v37 = vpop.eup %4856  ;;  %4874 = vrcp.f32 %v1120_v30  ;;  %v4058_v38 = vmul.f32 -1.442695, %v5950_v33  ;;  %v1306_v44 = vmul.f32 %v4855_v35, %v5890_v8 }
 0x264   :  { %v4859_v39 = vpop.eup %4858  ;;  %v1307_v41 = vmul.f32 %v4857_v37, %v5894_v12  ;;  %4876 = vpow2.f32 %v4055_v25 }
 0x265   :  { %v4861_v42 = vpop.eup %4860  ;;  %v1308_v45 = vmul.f32 %v4859_v39, %v5898_v15  ;;  %4878 = vpow2.f32 %v4056_v32  ;;  %v808_v46 = vpop.f32.mrb[20].mxu1 }
 0x266   :  { %v4863_v48 = vpop.eup %4862  ;;  %v1367_v49 = vpack.c.bf16 %v1307_v41, %v1305_v40  ;;  %v1121_v50 = vadd.f32 1.0, %v4861_v42  ;;  %4880 = vpow2.f32 %v4057_v36  ;;  %v5959_v56 = vadd.f32 %v808_v46, %v5864_v57  ;;  %v810_v59 = vpop.f32.mrb[21].mxu1 }
 0x267   :  { %v4865_v61 = vpop.eup %4864  ;;  %v1122_v6 = vadd.f32 1.0, %v4863_v48  ;;  %4882 = vpow2.f32 %v4058_v38  ;;  %v5962_v12 = vadd.f32 %v810_v59, %v5868_v55  ;;  %v812_v0 = vpop.f32.mrb[22].mxu1  ;;  %v1368_v8 = vpack.c.bf16 %v1308_v45, %v1306_v44 }
 0x268   :  { %v4867_v1 = vpop.eup %4866  ;;  %4884 = vrcp.f32 %v1121_v50  ;;  %v1123_v15 = vadd.f32 1.0, %v4865_v61  ;;  %v4059_v3 = vmul.f32 -1.442695, %v5959_v56  ;;  %v5966_v4 = vadd.f32 %v812_v0, %v5864_v57  ;;  %v814_v5 = vpop.f32.mrb[23].mxu1 }
 0x269   :  { %4886 = vrcp.f32 %v1122_v6  ;;  %v1124_v7 = vadd.f32 1.0, %v4867_v1  ;;  %v4060_v9 = vmul.f32 -1.442695, %v5962_v12  ;;  %v5970_v10 = vadd.f32 %v814_v5, %v5868_v55  ;;  %1399 = vmatprep.subr.bf16.mxu0 %v1368_v8 }
 0x26a   :  { %v4869_v13 = vpop.eup %4868  ;;  %4888 = vrcp.f32 %v1123_v15  ;;  %v4061_v14 = vmul.f32 -1.442695, %v5966_v4  ;;  %1400 = vmatpush1.bf16.msra.mxu0 %v1367_v49 }
 0x26b   :  { %v4871_v16 = vpop.eup %4870  ;;  %4890 = vrcp.f32 %v1124_v7  ;;  %v4062_v11 = vmul.f32 -1.442695, %v5970_v10  ;;  %v1309_v20 = vmul.f32 %v4869_v13, %v5903_v23 }
 0x26c   :  { %v4873_v17 = vpop.eup %4872  ;;  %4892 = vpow2.f32 %v4059_v3  ;;  %v1310_v24 = vmul.f32 %v4871_v16, %v5906_v27 }
 0x26d   :  { %v4875_v18 = vpop.eup %4874  ;;  %v1311_v21 = vmul.f32 %v4873_v17, %v5910_v31  ;;  %4894 = vpow2.f32 %v4060_v9  ;;  %v818_v58 = vpop.f32.mrb[24].mxu1 }
 0x26e   :  { %v4877_v22 = vpop.eup %4876  ;;  %v1312_v60 = vmul.f32 %v4875_v18, %v5914_v34  ;;  %4896 = vpow2.f32 %v4061_v14  ;;  %v5979_v2 = vadd.f32 %v818_v58, %v5864_v57  ;;  %v820_v25 = vpop.f32.mrb[25].mxu1 }
 0x26f   :  { %v4879_v28 = vpop.eup %4878  ;;  %v1369_v29 = vpack.c.bf16 %v1311_v21, %v1309_v20  ;;  %v1125_v30 = vadd.f32 1.0, %v4877_v22  ;;  %4898 = vpow2.f32 %v4062_v11  ;;  %v5982_v23 = vadd.f32 %v820_v25, %v5868_v55  ;;  %v822_v31 = vpop.f32.mrb[26].mxu1 }
 0x270   :  { %v4881_v32 = vpop.eup %4880  ;;  %v1126_v35 = vadd.f32 1.0, %v4879_v28  ;;  %v5985_v36 = vadd.f32 %v822_v31, %v5864_v57  ;;  %v824_v27 = vpop.f32.mrb[27].mxu1  ;;  %v1370_v34 = vpack.c.bf16 %v1312_v60, %v1310_v24  ;;  %v4063_v39 = vmul.f32 -1.442695, %v5979_v2 }
 0x271   :  { %v4883_v37 = vpop.eup %4882  ;;  %4900 = vrcp.f32 %v1125_v30  ;;  %v1127_v38 = vadd.f32 1.0, %v4881_v32  ;;  %v5989_v40 = vadd.f32 %v824_v27, %v5868_v55  ;;  %v4064_v44 = vmul.f32 -1.442695, %v5982_v23 }
 0x272   :  { %v4885_v41 = vpop.eup %4884  ;;  %4902 = vrcp.f32 %v1126_v35  ;;  %v1128_v42 = vadd.f32 1.0, %v4883_v37  ;;  %1401 = vmatprep.subr.bf16.mxu0 %v1370_v34  ;;  %v4065_v46 = vmul.f32 -1.442695, %v5985_v36 }
 0x273   :  { %v4887_v45 = vpop.eup %4886  ;;  %4904 = vrcp.f32 %v1127_v38  ;;  %1402 = vmatpush1.bf16.msra.mxu0 %v1369_v29  ;;  %v4066_v49 = vmul.f32 -1.442695, %v5989_v40  ;;  %v1313_v59 = vmul.f32 %v4885_v41, %v5919_v43 }
 0x274   :  { %v4889_v48 = vpop.eup %4888  ;;  %4906 = vrcp.f32 %v1128_v42 }
 0x275   :  { %v4891_v50 = vpop.eup %4890  ;;  %v1315_v61 = vmul.f32 %v4889_v48, %v5926_v53  ;;  %4908 = vpow2.f32 %v4063_v39  ;;  %v828_v6 = vpop.f32.mrb[28].mxu1  ;;  %v1314_v53 = vmul.f32 %v4887_v45, %v5922_v47 }
 0x276   :  { %v4893_v0 = vpop.eup %4892  ;;  %v1316_v8 = vmul.f32 %v4891_v50, %v5930_v62  ;;  %4910 = vpow2.f32 %v4064_v44  ;;  %v5998_v1 = vadd.f32 %v828_v6, %v5864_v57  ;;  %v830_v15 = vpop.f32.mrb[29].mxu1 }
 0x277   :  { %v4895_v3 = vpop.eup %4894  ;;  %v1371_v5 = vpack.c.bf16 %v1315_v61, %v1313_v59  ;;  %v1129_v7 = vadd.f32 1.0, %v4893_v0  ;;  %4912 = vpow2.f32 %v4065_v46  ;;  %v6001_v9 = vadd.f32 %v830_v15, %v5868_v55  ;;  %v832_v43 = vpop.f32.mrb[30].mxu1 }
 0x278   :  { %v4897_v13 = vpop.eup %4896  ;;  %v1130_v14 = vadd.f32 1.0, %v4895_v3  ;;  %4914 = vpow2.f32 %v4066_v49  ;;  %v6005_v62 = vadd.f32 %v832_v43, %v5864_v57  ;;  %v834_v16 = vpop.f32.mrb[31].mxu1  ;;  %v4067_v18 = vmul.f32 -1.442695, %v5998_v1 }
 0x279   :  { %v4899_v11 = vpop.eup %4898  ;;  %4916 = vrcp.f32 %v1129_v7  ;;  %v1131_v17 = vadd.f32 1.0, %v4897_v13  ;;  %v6009_v20 = vadd.f32 %v834_v16, %v5868_v55  ;;  %v4068_v58 = vmul.f32 -1.442695, %v6001_v9 }
 0x27a   :  { %4918 = vrcp.f32 %v1130_v14  ;;  %v1132_v21 = vadd.f32 1.0, %v4899_v11  ;;  %v1372_v22 = vpack.c.bf16 %v1316_v8, %v1314_v53  ;;  %v4069_v24 = vmul.f32 -1.442695, %v6005_v62 }
 0x27b   :  { %v4901_v47 = vpop.eup %4900  ;;  %4920 = vrcp.f32 %v1131_v17  ;;  %v4070_v25 = vmul.f32 -1.442695, %v6009_v20 }
 0x27c   :  { %v4903_v60 = vpop.eup %4902  ;;  %4922 = vrcp.f32 %v1132_v21  ;;  %1403 = vmatprep.subr.bf16.mxu0 %v1372_v22  ;;  %v1317_v31 = vmul.f32 %v4901_v47, %v5939_v19 }
 0x27d   :  { %v4905_v28 = vpop.eup %4904  ;;  %4924 = vpow2.f32 %v4067_v18  ;;  %1404 = vmatpush1.bf16.msra.mxu0 %v1371_v5  ;;  %v838_v29 = vpop.f32.mrb[32].mxu1  ;;  %v1318_v42 = vmul.f32 %v4903_v60, %v5942_v63 }
 0x27e   :  { %v4907_v30 = vpop.eup %4906  ;;  %v1319_v32 = vmul.f32 %v4905_v28, %v5946_v26  ;;  %4926 = vpow2.f32 %v4068_v58  ;;  %v6017_v35 = vadd.f32 %v838_v29, %v5864_v57  ;;  %v840_v27 = vpop.f32.mrb[33].mxu1 }
 0x27f   :  { %v4909_v34 = vpop.eup %4908  ;;  %v1320_v37 = vmul.f32 %v4907_v30, %v5950_v33  ;;  %4928 = vpow2.f32 %v4069_v24  ;;  %v6021_v38 = vadd.f32 %v840_v27, %v5868_v55  ;;  %v842_v39 = vpop.f32.mrb[34].mxu1 }
 0x280   :  { %v4911_v41 = vpop.eup %4910  ;;  %v1373_v44 = vpack.c.bf16 %v1319_v32, %v1317_v31  ;;  %v1133_v19 = vadd.f32 1.0, %v4909_v34  ;;  %4930 = vpow2.f32 %v4070_v25  ;;  %v844_v26 = vpop.f32.mrb[35].mxu1  ;;  %v6025_v48 = vadd.f32 %v842_v39, %v5864_v57 }
 0x281   :  { %v4913_v45 = vpop.eup %4912  ;;  %v1134_v46 = vadd.f32 1.0, %v4911_v41  ;;  %v6028_v49 = vadd.f32 %v844_v26, %v5868_v55  ;;  %v4071_v59 = vmul.f32 -1.442695, %v6017_v35  ;;  %v1374_v61 = vpack.c.bf16 %v1320_v37, %v1318_v42 }
 0x282   :  { %v4915_v33 = vpop.eup %4914  ;;  %4932 = vrcp.f32 %v1133_v19  ;;  %v1135_v50 = vadd.f32 1.0, %v4913_v45  ;;  %v4072_v0 = vmul.f32 -1.442695, %v6021_v38  ;;  %v4073_v15 = vmul.f32 -1.442695, %v6025_v48 }
 0x283   :  { %v4917_v6 = vpop.eup %4916  ;;  %4934 = vrcp.f32 %v1134_v46  ;;  %v1136_v63 = vadd.f32 1.0, %v4915_v33  ;;  %1405 = vmatprep.subr.bf16.mxu0 %v1374_v61  ;;  %v4074_v5 = vmul.f32 -1.442695, %v6028_v49 }
 0x284   :  { %v4919_v8 = vpop.eup %4918  ;;  %4936 = vrcp.f32 %v1135_v50  ;;  %1406 = vmatpush1.bf16.msra.mxu0 %v1373_v44  ;;  %v1321_v13 = vmul.f32 %v4917_v6, %v5959_v56 }
 0x285   :  { %v4921_v3 = vpop.eup %4920  ;;  %4938 = vrcp.f32 %v1136_v63  ;;  %v848_v7 = vpop.f32.mrb[36].mxu1  ;;  %v1322_v22 = vmul.f32 %v4919_v8, %v5962_v12 }
 0x286   :  { %v4923_v43 = vpop.eup %4922  ;;  %v1323_v53 = vmul.f32 %v4921_v3, %v5966_v4  ;;  %4940 = vpow2.f32 %v4071_v59  ;;  %v6037_v14 = vadd.f32 %v848_v7, %v5864_v57  ;;  %v850_v16 = vpop.f32.mrb[37].mxu1 }
 0x287   :  { %v4925_v11 = vpop.eup %4924  ;;  %v1324_v17 = vmul.f32 %v4923_v43, %v5970_v10  ;;  %4942 = vpow2.f32 %v4072_v0  ;;  %v6041_v18 = vadd.f32 %v850_v16, %v5868_v55  ;;  %v852_v21 = vpop.f32.mrb[38].mxu1 }
 0x288   :  { %v4927_v58 = vpop.eup %4926  ;;  %v1375_v47 = vpack.c.bf16 %v1323_v53, %v1321_v13  ;;  %v1137_v56 = vadd.f32 1.0, %v4925_v11  ;;  %4944 = vpow2.f32 %v4073_v15  ;;  %v854_v4 = vpop.f32.mrb[39].mxu1  ;;  %v4075_v25 = vmul.f32 -1.442695, %v6037_v14 }
 0x289   :  { %v4929_v24 = vpop.eup %4928  ;;  %v1138_v60 = vadd.f32 1.0, %v4927_v58  ;;  %4946 = vpow2.f32 %v4074_v5  ;;  %v6046_v28 = vadd.f32 %v852_v21, %v5864_v57  ;;  %v6049_v30 = vadd.f32 %v854_v4, %v5868_v55 }
 0x28a   :  { %v4931_v10 = vpop.eup %4930  ;;  %4948 = vrcp.f32 %v1137_v56  ;;  %v1139_v29 = vadd.f32 1.0, %v4929_v24  ;;  %v1376_v31 = vpack.c.bf16 %v1324_v17, %v1322_v22  ;;  %v4076_v32 = vmul.f32 -1.442695, %v6041_v18 }
 0x28b   :  { %4950 = vrcp.f32 %v1138_v60  ;;  %v1140_v12 = vadd.f32 1.0, %v4931_v10  ;;  %v4077_v34 = vmul.f32 -1.442695, %v6046_v28  ;;  %v4078_v39 = vmul.f32 -1.442695, %v6049_v30 }
 0x28c   :  { %v4933_v27 = vpop.eup %4932  ;;  %4952 = vrcp.f32 %v1139_v29  ;;  %1407 = vmatprep.subr.bf16.mxu0 %v1376_v31 }
 0x28d   :  { %v4935_v37 = vpop.eup %4934  ;;  %4954 = vrcp.f32 %v1140_v12  ;;  %1408 = vmatpush1.bf16.msra.mxu0 %v1375_v47  ;;  %v858_v41 = vpop.f32.mrb[40].mxu1  ;;  %v1325_v45 = vmul.f32 %v4933_v27, %v5979_v2 }
 0x28e   :  { %v4937_v42 = vpop.eup %4936  ;;  %4956 = vpow2.f32 %v4075_v25  ;;  %v6055_v44 = vadd.f32 %v858_v41, %v5864_v57  ;;  %v860_v19 = vpop.f32.mrb[41].mxu1  ;;  %v1326_v2 = vmul.f32 %v4935_v37, %v5982_v23 }
 0x28f   :  { %v4939_v26 = vpop.eup %4938  ;;  %v1327_v46 = vmul.f32 %v4937_v42, %v5985_v36  ;;  %4958 = vpow2.f32 %v4076_v32  ;;  %v6060_v33 = vadd.f32 %v860_v19, %v5868_v55  ;;  %v862_v50 = vpop.f32.mrb[42].mxu1 }
 0x290   :  { %v4941_v59 = vpop.eup %4940  ;;  %v1328_v61 = vmul.f32 %v4939_v26, %v5989_v40  ;;  %4960 = vpow2.f32 %v4077_v34  ;;  %v4079_v6 = vmul.f32 -1.442695, %v6055_v44  ;;  %v6065_v63 = vadd.f32 %v862_v50, %v5864_v57  ;;  %v864_v0 = vpop.f32.mrb[43].mxu1 }
 0x291   :  { %v4943_v8 = vpop.eup %4942  ;;  %v1377_v15 = vpack.c.bf16 %v1327_v46, %v1325_v45  ;;  %v1141_v36 = vadd.f32 1.0, %v4941_v59  ;;  %4962 = vpow2.f32 %v4078_v39  ;;  %v6069_v7 = vadd.f32 %v864_v0, %v5868_v55 }
 0x292   :  { %v4945_v3 = vpop.eup %4944  ;;  %v1142_v5 = vadd.f32 1.0, %v4943_v8  ;;  %4964 = vpow2.f32 %v4079_v6  ;;  %v4080_v13 = vmul.f32 -1.442695, %v6060_v33  ;;  %v1378_v53 = vpack.c.bf16 %v1328_v61, %v1326_v2 }
 0x293   :  { %v4947_v40 = vpop.eup %4946  ;;  %4966 = vrcp.f32 %v1141_v36  ;;  %v1143_v43 = vadd.f32 1.0, %v4945_v3  ;;  %v4081_v23 = vmul.f32 -1.442695, %v6065_v63  ;;  %v4082_v21 = vmul.f32 -1.442695, %v6069_v7 }
 0x294   :  { %v4949_v16 = vpop.eup %4948  ;;  %4968 = vrcp.f32 %v1142_v5  ;;  %v1144_v11 = vadd.f32 1.0, %v4947_v40  ;;  %1409 = vmatprep.subr.bf16.mxu0 %v1378_v53 }
 0x295   :  { %v4951_v17 = vpop.eup %4950  ;;  %4970 = vrcp.f32 %v1143_v43  ;;  %v868_v58 = vpop.f32.mrb[44].mxu1  ;;  %1410 = vmatpush1.bf16.msra.mxu0 %v1377_v15  ;;  %v1329_v24 = vmul.f32 %v4949_v16, %v5998_v1 }
 0x296   :  { %v4953_v22 = vpop.eup %4952  ;;  %4972 = vrcp.f32 %v1144_v11  ;;  %v6075_v47 = vadd.f32 %v868_v58, %v5864_v57  ;;  %v870_v56 = vpop.f32.mrb[45].mxu1  ;;  %v1330_v60 = vmul.f32 %v4951_v17, %v6001_v9 }
 0x297   :  { %v4955_v4 = vpop.eup %4954  ;;  %v1331_v25 = vmul.f32 %v4953_v22, %v6005_v62  ;;  %4974 = vpow2.f32 %v4080_v13  ;;  %v872_v10 = vpop.f32.mrb[46].mxu1  ;;  %v6083_v32 = vadd.f32 %v870_v56, %v5868_v55 }
 0x298   :  { %v4957_v29 = vpop.eup %4956  ;;  %v1332_v31 = vmul.f32 %v4955_v4, %v6009_v20  ;;  %4976 = vpow2.f32 %v4081_v23  ;;  %v4083_v12 = vmul.f32 -1.442695, %v6075_v47  ;;  %v874_v27 = vpop.f32.mrb[47].mxu1  ;;  %v6086_v1 = vadd.f32 %v872_v10, %v5864_v57 }
 0x299   :  { %v4959_v34 = vpop.eup %4958  ;;  %v1379_v37 = vpack.c.bf16 %v1331_v25, %v1329_v24  ;;  %v1145_v39 = vadd.f32 1.0, %v4957_v29  ;;  %4978 = vpow2.f32 %v4082_v21  ;;  %v6089_v41 = vadd.f32 %v874_v27, %v5868_v55 }
 0x29a   :  { %v4961_v9 = vpop.eup %4960  ;;  %v1146_v62 = vadd.f32 1.0, %v4959_v34  ;;  %4980 = vpow2.f32 %v4083_v12  ;;  %v1380_v19 = vpack.c.bf16 %v1332_v31, %v1330_v60  ;;  %v4084_v46 = vmul.f32 -1.442695, %v6083_v32 }
 0x29b   :  { %v4963_v20 = vpop.eup %4962  ;;  %4982 = vrcp.f32 %v1145_v39  ;;  %v1147_v42 = vadd.f32 1.0, %v4961_v9  ;;  %v4085_v61 = vmul.f32 -1.442695, %v6086_v1  ;;  %v4086_v8 = vmul.f32 -1.442695, %v6089_v41 }
 0x29c   :  { %v4965_v26 = vpop.eup %4964  ;;  %4984 = vrcp.f32 %v1146_v62  ;;  %v1148_v45 = vadd.f32 1.0, %v4963_v20  ;;  %1411 = vmatprep.subr.bf16.mxu0 %v1380_v19 }
 0x29d   :  { %v4967_v50 = vpop.eup %4966  ;;  %4986 = vrcp.f32 %v1147_v42  ;;  %v1149_v59 = vadd.f32 1.0, %v4965_v26  ;;  %v878_v6 = vpop.f32.mrb[48].mxu1  ;;  %1412 = vmatpush1.bf16.msra.mxu0 %v1379_v37 }
 0x29e   :  { %v4969_v0 = vpop.eup %4968  ;;  %4988 = vrcp.f32 %v1148_v45  ;;  %v6095_v2 = vadd.f32 %v878_v6, %v5864_v57  ;;  %v880_v15 = vpop.f32.mrb[49].mxu1  ;;  %v1333_v3 = vmul.f32 %v4967_v50, %v6017_v35 }
 0x29f   :  { %v4971_v36 = vpop.eup %4970  ;;  %4990 = vrcp.f32 %v1149_v59  ;;  %v882_v5 = vpop.f32.mrb[50].mxu1  ;;  %v6101_v53 = vadd.f32 %v880_v15, %v5868_v55  ;;  %v1334_v23 = vmul.f32 %v4969_v0, %v6021_v38 }
 0x2a0   :  { %v4973_v40 = vpop.eup %4972  ;;  %v1335_v43 = vmul.f32 %v4971_v36, %v6025_v48  ;;  %4992 = vpow2.f32 %v4084_v46  ;;  %v4087_v13 = vmul.f32 -1.442695, %v6095_v2  ;;  %v884_v16 = vpop.f32.mrb[51].mxu1  ;;  %v6106_v35 = vadd.f32 %v882_v5, %v5864_v57 }
 0x2a1   :  { %v4975_v11 = vpop.eup %4974  ;;  %v1336_v17 = vmul.f32 %v4973_v40, %v6028_v49  ;;  %4994 = vpow2.f32 %v4085_v61  ;;  %v6109_v48 = vadd.f32 %v884_v16, %v5868_v55  ;;  %v4088_v49 = vmul.f32 -1.442695, %v6101_v53 }
 0x2a2   :  { %v4977_v21 = vpop.eup %4976  ;;  %v1381_v58 = vpack.c.bf16 %v1335_v43, %v1333_v3  ;;  %v1150_v22 = vadd.f32 1.0, %v4975_v11  ;;  %4996 = vpow2.f32 %v4086_v8  ;;  %v4089_v29 = vmul.f32 -1.442695, %v6106_v35 }
 0x2a3   :  { %v4979_v56 = vpop.eup %4978  ;;  %v1151_v4 = vadd.f32 1.0, %v4977_v21  ;;  %4998 = vpow2.f32 %v4087_v13  ;;  %v1382_v24 = vpack.c.bf16 %v1336_v17, %v1334_v23  ;;  %v4090_v27 = vmul.f32 -1.442695, %v6109_v48 }
 0x2a4   :  { %v4981_v60 = vpop.eup %4980  ;;  %5000 = vrcp.f32 %v1150_v22  ;;  %v1152_v38 = vadd.f32 1.0, %v4979_v56 }
 0x2a5   :  { %v4983_v25 = vpop.eup %4982  ;;  %5002 = vrcp.f32 %v1151_v4  ;;  %v1153_v10 = vadd.f32 1.0, %v4981_v60  ;;  %1413 = vmatprep.subr.bf16.mxu0 %v1382_v24  ;;  %v888_v31 = vpop.f32.mrb[52].mxu1 }
 0x2a6   :  { %v4985_v12 = vpop.eup %4984  ;;  %5004 = vrcp.f32 %v1152_v38  ;;  %1414 = vmatpush1.bf16.msra.mxu0 %v1381_v58  ;;  %v6115_v34 = vadd.f32 %v888_v31, %v5864_v57  ;;  %v890_v37 = vpop.f32.mrb[53].mxu1  ;;  %v1337_v9 = vmul.f32 %v4983_v25, %v6037_v14 }
 0x2a7   :  { %v4987_v39 = vpop.eup %4986  ;;  %5006 = vrcp.f32 %v1153_v10  ;;  %v6119_v62 = vadd.f32 %v890_v37, %v5868_v55  ;;  %v892_v20 = vpop.f32.mrb[54].mxu1  ;;  %v1338_v19 = vmul.f32 %v4985_v12, %v6041_v18 }
 0x2a8   :  { %v4989_v42 = vpop.eup %4988  ;;  %v1339_v26 = vmul.f32 %v4987_v39, %v6046_v28  ;;  %5008 = vpow2.f32 %v4088_v49  ;;  %v4091_v45 = vmul.f32 -1.442695, %v6115_v34  ;;  %v894_v46 = vpop.f32.mrb[55].mxu1  ;;  %v6127_v61 = vadd.f32 %v892_v20, %v5864_v57 }
 0x2a9   :  { %v4991_v50 = vpop.eup %4990  ;;  %v1340_v59 = vmul.f32 %v4989_v42, %v6049_v30  ;;  %5010 = vpow2.f32 %v4089_v29  ;;  %v4092_v14 = vmul.f32 -1.442695, %v6119_v62  ;;  %v6130_v18 = vadd.f32 %v894_v46, %v5868_v55 }
 0x2aa   :  { %v4993_v6 = vpop.eup %4992  ;;  %v1383_v0 = vpack.c.bf16 %v1339_v26, %v1337_v9  ;;  %5012 = vpow2.f32 %v4090_v27  ;;  %v4093_v40 = vmul.f32 -1.442695, %v6127_v61  ;;  %v1341_v4 = vmul.f32 %v4991_v50, %v6055_v44 }
 0x2ab   :  { %v4995_v28 = vpop.eup %4994  ;;  %v1154_v8 = vadd.f32 1.0, %v4993_v6  ;;  %5014 = vpow2.f32 %v4091_v45  ;;  %v1384_v15 = vpack.c.bf16 %v1340_v59, %v1338_v19  ;;  %v4094_v11 = vmul.f32 -1.442695, %v6130_v18 }
 0x2ac   :  { %v4997_v36 = vpop.eup %4996  ;;  %v1155_v3 = vadd.f32 1.0, %v4995_v28  ;;  %5016 = vpow2.f32 %v4092_v14 }
 0x2ad   :  { %v4999_v30 = vpop.eup %4998  ;;  %5018 = vrcp.f32 %v1154_v8  ;;  %v1156_v5 = vadd.f32 1.0, %v4997_v36  ;;  %1415 = vmatprep.subr.bf16.mxu0 %v1384_v15  ;;  %v898_v43 = vpop.f32.mrb[56].mxu1 }
 0x2ae   :  { %v5001_v13 = vpop.eup %5000  ;;  %5020 = vrcp.f32 %v1155_v3  ;;  %v1157_v16 = vadd.f32 1.0, %v4999_v30  ;;  %1416 = vmatpush1.bf16.msra.mxu0 %v1383_v0  ;;  %v6135_v23 = vadd.f32 %v898_v43, %v5864_v57  ;;  %v900_v17 = vpop.f32.mrb[57].mxu1 }
 0x2af   :  { %v5003_v21 = vpop.eup %5002  ;;  %5022 = vrcp.f32 %v1156_v5  ;;  %v6138_v58 = vadd.f32 %v900_v17, %v5868_v55  ;;  %v902_v22 = vpop.f32.mrb[58].mxu1  ;;  %v1342_v25 = vmul.f32 %v5001_v13, %v6060_v33 }
 0x2b0   :  { %v5005_v56 = vpop.eup %5004  ;;  %v1343_v24 = vmul.f32 %v5003_v21, %v6065_v63  ;;  %5024 = vrcp.f32 %v1157_v16  ;;  %v4095_v60 = vmul.f32 -1.442695, %v6135_v23  ;;  %v904_v38 = vpop.f32.mrb[59].mxu1  ;;  %v6147_v27 = vadd.f32 %v902_v22, %v5864_v57 }
 0x2b1   :  { %v5007_v49 = vpop.eup %5006  ;;  %v1344_v10 = vmul.f32 %v5005_v56, %v6069_v7  ;;  %5026 = vpow2.f32 %v4093_v40  ;;  %v4096_v29 = vmul.f32 -1.442695, %v6138_v58  ;;  %v6150_v37 = vadd.f32 %v904_v38, %v5868_v55 }
 0x2b2   :  { %v5009_v31 = vpop.eup %5008  ;;  %v1385_v12 = vpack.c.bf16 %v1343_v24, %v1341_v4  ;;  %5028 = vpow2.f32 %v4094_v11  ;;  %v4097_v45 = vmul.f32 -1.442695, %v6147_v27  ;;  %v1345_v30 = vmul.f32 %v5007_v49, %v6075_v47  ;;  %v4724_v47 = vld [vmem:[#allocation8] ss:$16 sps:$4 sm:$0xff]  }
 0x2b3   :  { %v5011_v44 = vpop.eup %5010  ;;  %v1158_v63 = vadd.f32 1.0, %v5009_v31  ;;  %5030 = vpow2.f32 %v4095_v60  ;;  %v1386_v39 = vpack.c.bf16 %v1344_v10, %v1342_v25  ;;  %v4098_v6 = vmul.f32 -1.442695, %v6150_v37 }
 0x2b4   :  { %v5013_v9 = vpop.eup %5012  ;;  %v1159_v33 = vadd.f32 1.0, %v5011_v44  ;;  %5032 = vpow2.f32 %v4096_v29 }
 0x2b5   :  { %v5015_v7 = vpop.eup %5014  ;;  %5034 = vrcp.f32 %v1158_v63  ;;  %v1160_v20 = vadd.f32 1.0, %v5013_v9  ;;  %1417 = vmatprep.subr.bf16.mxu0 %v1386_v39  ;;  %v908_v42 = vpop.f32.mrb[60].mxu1 }
 0x2b6   :  { %v5017_v19 = vpop.eup %5016  ;;  %5036 = vrcp.f32 %v1159_v33  ;;  %v1161_v26 = vadd.f32 1.0, %v5015_v7  ;;  %1418 = vmatpush1.bf16.msra.mxu0 %v1385_v12  ;;  %v6154_v46 = vadd.f32 %v908_v42, %v5864_v57  ;;  %v910_v50 = vpop.f32.mrb[61].mxu1  ;;  %v4727_v7 = vld [vmem:[#allocation8 + $0x20] ss:$16 sps:$4 sm:$0xff]  }
 0x2b7   :  { %v5019_v59 = vpop.eup %5018  ;;  %5038 = vrcp.f32 %v1160_v20  ;;  %v1162_v14 = vadd.f32 1.0, %v5017_v19  ;;  %v6158_v0 = vadd.f32 %v910_v50, %v5868_v55  ;;  %v912_v28 = vpop.f32.mrb[62].mxu1  ;;  %v4729_v20 = vld [vmem:[#allocation8 + $0x24] ss:$16 sps:$4 sm:$0xff]  }
 0x2b8   :  { %v5021_v8 = vpop.eup %5020  ;;  %5040 = vrcp.f32 %v1161_v26  ;;  %v4099_v15 = vmul.f32 -1.442695, %v6154_v46  ;;  %v914_v36 = vpop.f32.mrb[63].mxu1  ;;  %v1346_v13 = vmul.f32 %v5019_v59, %v6083_v32  ;;  %v6167_v11 = vadd.f32 %v912_v28, %v5864_v57  ;;  %v4732_v26 = vld [vmem:[#allocation8 + $0x44] ss:$16 sps:$4 sm:$0xff]  }
 0x2b9   :  { %v5023_v3 = vpop.eup %5022  ;;  %v1347_v5 = vmul.f32 %v5021_v8, %v6086_v1  ;;  %5042 = vrcp.f32 %v1162_v14  ;;  %v4100_v40 = vmul.f32 -1.442695, %v6158_v0  ;;  %v6170_v22 = vadd.f32 %v914_v36, %v5868_v55  ;;  %v4726_v1 = vld [vmem:[#allocation8 + $0x4] ss:$16 sps:$4 sm:$0xff]  }
 0x2ba   :  { %v5025_v43 = vpop.eup %5024  ;;  %v1348_v16 = vmul.f32 %v5023_v3, %v6089_v41  ;;  %5044 = vpow2.f32 %v4097_v45  ;;  %2028 = vmatprep.subr.bf16.mxu1 %v4726_v1  ;;  %v4101_v57 = vmul.f32 -1.442695, %v6167_v11  ;;  %v4735_v59 = vld [vmem:[#allocation8 + $0x64] ss:$16 sps:$4 sm:$0xff]  }
 0x2bb   :  { %v5027_v17 = vpop.eup %5026  ;;  %v1387_v21 = vpack.c.bf16 %v1347_v5, %v1345_v30  ;;  %5046 = vpow2.f32 %v4098_v6  ;;  %2029 = vmatpush1.bf16.msra.mxu1 %v4724_v47  ;;  %v4102_v55 = vmul.f32 -1.442695, %v6170_v22  ;;  %v1349_v10 = vmul.f32 %v5025_v43, %v6095_v2  ;;  %v4733_v5 = vld [vmem:[#allocation8 + $0x60] ss:$16 sps:$4 sm:$0xff]   ;;  %v4741_v43 = vld [vmem:[#allocation8 + $0x84] ss:$16 sps:$4 sm:$0xff]  }
 0x2bc   :  { %v5029_v56 = vpop.eup %5028  ;;  %v1163_v4 = vadd.f32 1.0, %v5027_v17  ;;  %5048 = vpow2.f32 %v4099_v15  ;;  %v1388_v24 = vpack.c.bf16 %v1348_v16, %v1346_v13  ;;  %2030 = vmatprep.subr.bf16.mxu1 %v4729_v20  ;;  %v4771_v20 = vld [vmem:[#allocation8 + $0x124] ss:$16 sps:$4 sm:$0xff]  }
 0x2bd   :  { %v5031_v60 = vpop.eup %5030  ;;  %v1164_v32 = vadd.f32 1.0, %v5029_v56  ;;  %5050 = vpow2.f32 %v4100_v40 }
 0x2be   :  { %v5033_v41 = vpop.eup %5032  ;;  %5052 = vrcp.f32 %v1163_v4  ;;  %1419 = vmatprep.subr.bf16.mxu0 %v1388_v24  ;;  %v1165_v31 = vadd.f32 1.0, %v5031_v60  ;;  %v4745_v60 = vld [vmem:[#allocation8 + $0xa0] ss:$16 sps:$4 sm:$0xff]  }
 0x2bf   :  { %v5035_v38 = vpop.eup %5034  ;;  %5054 = vrcp.f32 %v1164_v32  ;;  %1420 = vmatpush1.bf16.msra.mxu0 %v1387_v21  ;;  %v1166_v39 = vadd.f32 1.0, %v5033_v41  ;;  %2031 = vmatpush1.bf16.msra.mxu1 %v4727_v7  ;;  %v4763_v7 = vld [vmem:[#allocation8 + $0x100] ss:$16 sps:$4 sm:$0xff]  }
 0x2c0   :  { %v5037_v49 = vpop.eup %5036  ;;  %v1350_v44 = vmul.f32 %v5035_v38, %v6101_v53  ;;  %5056 = vpow2.f32 %v4101_v57  ;;  %v4730_v53 = vld [vmem:[#allocation8 + $0x40] ss:$16 sps:$4 sm:$0xff]   ;;  %2032 = vmatprep.subr.bf16.mxu1 %v4732_v26  ;;  %v4753_v57 = vld [vmem:[#allocation8 + $0xc4] ss:$16 sps:$4 sm:$0xff]   ;;  %v4742_v26 = vld [vmem:[#allocation8 + $0x28] ss:$16 sps:$4 sm:$0xff]  }
 0x2c1   :  { %v5039_v25 = vpop.eup %5038  ;;  %v1351_v29 = vmul.f32 %v5037_v49, %v6106_v35  ;;  %5058 = vpow2.f32 %v4102_v55  ;;  %v4751_v49 = vld [vmem:[#allocation8 + $0xc0] ss:$16 sps:$4 sm:$0xff]  }
 0x2c2   :  { %v5041_v12 = vpop.eup %5040  ;;  %v1352_v63 = vmul.f32 %v5039_v25, %v6109_v48  ;;  %5060 = vrcp.f32 %v1165_v31 }
 0x2c3   :  { %v5043_v9 = vpop.eup %5042  ;;  %v1389_v33 = vpack.c.bf16 %v1351_v29, %v1349_v10  ;;  %5062 = vrcp.f32 %v1166_v39  ;;  %v1353_v28 = vmul.f32 %v5041_v12, %v6115_v34  ;;  %2033 = vmatpush1.bf16.msra.mxu1 %v4730_v53  ;;  %v4759_v10 = vld [vmem:[#allocation8 + $0xe4] ss:$16 sps:$4 sm:$0xff]   ;;  %v4756_v53 = vld [vmem:[#allocation8 + $0x6c] ss:$16 sps:$4 sm:$0xff]  }
 0x2c4   :  { %v5045_v42 = vpop.eup %5044  ;;  %v1390_v19 = vpack.c.bf16 %v1352_v63, %v1350_v44  ;;  %v1354_v36 = vmul.f32 %v5043_v9, %v6119_v62  ;;  %2034 = vmatprep.subr.bf16.mxu1 %v4735_v59  ;;  %v4747_v62 = vld [vmem:[#allocation8 + $0xa4] ss:$16 sps:$4 sm:$0xff]   ;;  %v5486_v59 = vld [vmem:[#allocation2 + $0x10] ss:$8 sps:$4 sm:$0xff]  }
 0x2c5   :  { %v5047_v45 = vpop.eup %5046  ;;  %v1167_v2 = vadd.f32 1.0, %v5045_v42  ;;  %v4765_v63 = vld [vmem:[#allocation8 + $0x104] ss:$16 sps:$4 sm:$0xff]   ;;  %v4769_v42 = vld [vmem:[#allocation8 + $0x120] ss:$16 sps:$4 sm:$0xff]  }
 0x2c6   :  { %v5049_v35 = vpop.eup %5048  ;;  %v1168_v50 = vadd.f32 1.0, %v5047_v45  ;;  %1421 = vmatprep.subr.bf16.mxu0 %v1390_v19  ;;  %v5484_v19 = vld [vmem:[#allocation2] ss:$8 sps:$4 sm:$0xff]   ;;  %v4750_v45 = vld [vmem:[#allocation8 + $0x4c] ss:$16 sps:$4 sm:$0xff]  }
 0x2c7   :  { %v5051_v48 = vpop.eup %5050  ;;  %5064 = vrcp.f32 %v1167_v2  ;;  %1422 = vmatpush1.bf16.msra.mxu0 %v1389_v33  ;;  %v1169_v15 = vadd.f32 1.0, %v5049_v35  ;;  %2035 = vmatpush1.bf16.msra.mxu1 %v4733_v5  ;;  %v4738_v33 = vld [vmem:[#allocation8 + $0xc] ss:$16 sps:$4 sm:$0xff]   ;;  %v4775_v2 = vld [vmem:[#allocation8 + $0x140] ss:$16 sps:$4 sm:$0xff]  }
 0x2c8   :  { %v5053_v14 = vpop.eup %5052  ;;  %5066 = vrcp.f32 %v1168_v50  ;;  %v1170_v30 = vadd.f32 1.0, %v5051_v48  ;;  %2036 = vmatprep.subr.bf16.mxu1 %v4741_v43  ;;  %v4783_v35 = vld [vmem:[#allocation8 + $0x164] ss:$16 sps:$4 sm:$0xff]   ;;  %v4748_v50 = vld [vmem:[#allocation8 + $0x48] ss:$16 sps:$4 sm:$0xff]  }
 0x2c9   :  { %v5055_v6 = vpop.eup %5054  ;;  %v1355_v8 = vmul.f32 %v5053_v14, %v6127_v61  ;;  %5068 = vrcp.f32 %v1169_v15  ;;  %v4739_v61 = vld [vmem:[#allocation8 + $0x80] ss:$16 sps:$4 sm:$0xff]   ;;  %v4789_v14 = vld [vmem:[#allocation8 + $0x184] ss:$16 sps:$4 sm:$0xff]  }
 0x2ca   :  { %v1356_v3 = vmul.f32 %v5055_v6, %v6130_v18  ;;  %v5057_v13 = vpop.eup %5056  ;;  %5070 = vrcp.f32 %v1170_v30  ;;  %v4781_v48 = vld [vmem:[#allocation8 + $0x160] ss:$16 sps:$4 sm:$0xff]   ;;  %v5487_v6 = vld [vmem:[#allocation2 + $0x24] ss:$8 sps:$4 sm:$0xff]  }
 0x2cb   :  { %v1391_v40 = vpack.c.bf16 %v1355_v8, %v1353_v28  ;;  %v5059_v17 = vpop.eup %5058  ;;  %v1171_v21 = vadd.f32 1.0, %v5057_v13  ;;  %2037 = vmatpush1.bf16.msra.mxu1 %v4739_v61  ;;  %v4754_v28 = vld [vmem:[#allocation8 + $0x68] ss:$16 sps:$4 sm:$0xff]   ;;  %v4762_v8 = vld [vmem:[#allocation8 + $0x8c] ss:$16 sps:$4 sm:$0xff]  }
 0x2cc   :  { %v1392_v16 = vpack.c.bf16 %v1356_v3, %v1354_v36  ;;  %v1172_v34 = vadd.f32 1.0, %v5059_v17  ;;  %v5061_v47 = vpop.eup %5060  ;;  %2038 = vmatprep.subr.bf16.mxu1 %v4747_v62  ;;  %v4787_v15 = vld [vmem:[#allocation8 + $0x180] ss:$16 sps:$4 sm:$0xff]   ;;  %v4798_v36 = vld [vmem:[#allocation8 + $0x1a4] ss:$16 sps:$4 sm:$0xff]  }
 0x2cd   :  { %5072 = vrcp.f32 %v1171_v21  ;;  %v5063_v18 = vpop.eup %5062  ;;  %v1357_v4 = vmul.f32 %v5061_v47, %v6135_v23  ;;  %v4760_v3 = vld [vmem:[#allocation8 + $0x88] ss:$16 sps:$4 sm:$0xff]   ;;  %v4768_v30 = vld [vmem:[#allocation8 + $0xac] ss:$16 sps:$4 sm:$0xff]   ;;  %v4796_v5 = vld [vmem:[#allocation8 + $0x1a0] ss:$16 sps:$4 sm:$0xff]  }
 0x2ce   :  { %1423 = vmatprep.subr.bf16.mxu0 %v1392_v16  ;;  %5074 = vrcp.f32 %v1172_v34  ;;  %v1358_v32 = vmul.f32 %v5063_v18, %v6138_v58  ;;  %v4807_v43 = vld [vmem:[#allocation8 + $0x1c4] ss:$16 sps:$4 sm:$0xff]   ;;  %v4766_v16 = vld [vmem:[#allocation8 + $0xa8] ss:$16 sps:$4 sm:$0xff]   ;;  %v4774_v17 = vld [vmem:[#allocation8 + $0xcc] ss:$16 sps:$4 sm:$0xff]  }
 0x2cf   :  { %1424 = vmatpush1.bf16.msra.mxu0 %v1391_v40  ;;  %2039 = vmatpush1.bf16.msra.mxu1 %v4745_v60  ;;  %v5488_v40 = vld [vmem:[#allocation2 + $0x20] ss:$8 sps:$4 sm:$0xff]   ;;  %v5489_v13 = vld [vmem:[#allocation2 + $0x34] ss:$8 sps:$4 sm:$0xff]   ;;  %v5490_v47 = vld [vmem:[#allocation2 + $0x30] ss:$8 sps:$4 sm:$0xff]  }
 0x2d0   :  { %2040 = vmatprep.subr.bf16.mxu1 %v4753_v57  ;;  %v4805_v21 = vld [vmem:[#allocation8 + $0x1c0] ss:$16 sps:$4 sm:$0xff]   ;;  %v4772_v34 = vld [vmem:[#allocation8 + $0xc8] ss:$16 sps:$4 sm:$0xff]   ;;  %v4780_v61 = vld [vmem:[#allocation8 + $0xec] ss:$16 sps:$4 sm:$0xff]  }
 0x2d1   :  { %v5065_v1 = vpop.eup %5064  ;;  %v5491_v62 = vld [vmem:[#allocation2 + $0x44] ss:$8 sps:$4 sm:$0xff]   ;;  %v4778_v18 = vld [vmem:[#allocation8 + $0xe8] ss:$16 sps:$4 sm:$0xff]   ;;  %v5493_v60 = vld [vmem:[#allocation2 + $0x54] ss:$8 sps:$4 sm:$0xff]  }
 0x2d2   :  { %v5067_v56 = vpop.eup %5066  ;;  %v1359_v24 = vmul.f32 %v5065_v1, %v6147_v27  ;;  %v4786_v1 = vld [vmem:[#allocation8 + $0x10c] ss:$16 sps:$4 sm:$0xff]   ;;  %v4793_v57 = vld [vmem:[#allocation8 + $0x148] ss:$16 sps:$4 sm:$0xff]  }
 0x2d3   :  { %v1360_v41 = vmul.f32 %v5067_v56, %v6150_v37  ;;  %v5069_v25 = vpop.eup %5068  ;;  %2041 = vmatpush1.bf16.msra.mxu1 %v4751_v49  ;;  %v4757_v37 = vld [vmem:[#allocation8 + $0xe0] ss:$16 sps:$4 sm:$0xff]   ;;  %v4784_v56 = vld [vmem:[#allocation8 + $0x108] ss:$16 sps:$4 sm:$0xff]   ;;  %v5495_v49 = vld [vmem:[#allocation2 + $0x64] ss:$8 sps:$4 sm:$0xff]  }
 0x2d4   :  { %v1393_v38 = vpack.c.bf16 %v1359_v24, %v1357_v4  ;;  %v5071_v29 = vpop.eup %5070  ;;  %v1361_v31 = vmul.f32 %v5069_v25, %v6154_v46  ;;  %2042 = vmatprep.subr.bf16.mxu1 %v4759_v10  ;;  %v4736_v46 = vld [vmem:[#allocation8 + $0x8] ss:$16 sps:$4 sm:$0xff]   ;;  %v4792_v4 = vld [vmem:[#allocation8 + $0x12c] ss:$16 sps:$4 sm:$0xff]  }
 0x2d5   :  { %v1394_v55 = vpack.c.bf16 %v1360_v41, %v1358_v32  ;;  %v1362_v12 = vmul.f32 %v5071_v29, %v6158_v0  ;;  %v4777_v0 = vld [vmem:[#allocation8 + $0x144] ss:$16 sps:$4 sm:$0xff]   ;;  %v5492_v24 = vld [vmem:[#allocation2 + $0x40] ss:$8 sps:$4 sm:$0xff]   ;;  %v4795_v41 = vld [vmem:[#allocation8 + $0x14c] ss:$16 sps:$4 sm:$0xff]  }
 0x2d6   :  { %v4790_v32 = vld [vmem:[#allocation8 + $0x128] ss:$16 sps:$4 sm:$0xff]   ;;  %v4804_v10 = vld [vmem:[#allocation8 + $0x18c] ss:$16 sps:$4 sm:$0xff]  }
 0x2d7   :  { %1425 = vmatprep.subr.bf16.mxu0 %v1394_v55  ;;  %v5073_v23 = vpop.eup %5072  ;;  %2043 = vmatpush1.bf16.msra.mxu1 %v4757_v37  ;;  %v5494_v55 = vld [vmem:[#allocation2 + $0x50] ss:$8 sps:$4 sm:$0xff]   ;;  %v4813_v37 = vld [vmem:[#allocation8 + $0x1cc] ss:$16 sps:$4 sm:$0xff]  }
 0x2d8   :  { %1426 = vmatpush1.bf16.msra.mxu0 %v1393_v38  ;;  %v5075_v27 = vpop.eup %5074  ;;  %v1363_v58 = vmul.f32 %v5073_v23, %v6167_v11  ;;  %2044 = vmatprep.subr.bf16.mxu1 %v4765_v63  ;;  %v4744_v11 = vld [vmem:[#allocation8 + $0x2c] ss:$16 sps:$4 sm:$0xff]   ;;  %v4799_v25 = vld [vmem:[#allocation8 + $0x168] ss:$16 sps:$4 sm:$0xff]  }
 0x2d9   :  { %v1364_v44 = vmul.f32 %v5075_v27, %v6170_v22  ;;  %v5485_v22 = vld [vmem:[#allocation2 + $0x14] ss:$8 sps:$4 sm:$0xff]   ;;  %v4802_v29 = vld [vmem:[#allocation8 + $0x188] ss:$16 sps:$4 sm:$0xff]   ;;  %v5499_v63 = vld [vmem:[#allocation2 + $0x84] ss:$8 sps:$4 sm:$0xff]  }
 0x2da   :  { %v1395_v39 = vpack.c.bf16 %v1363_v58, %v1361_v31  ;;  %v4801_v38 = vld [vmem:[#allocation8 + $0x16c] ss:$16 sps:$4 sm:$0xff]   ;;  %v5496_v27 = vld [vmem:[#allocation2 + $0x60] ss:$8 sps:$4 sm:$0xff]  }
 0x2db   :  { %v1396_v9 = vpack.c.bf16 %v1364_v44, %v1362_v12  ;;  %2045 = vmatpush1.bf16.msra.mxu1 %v4763_v7  ;;  %v4810_v23 = vld [vmem:[#allocation8 + $0x1ac] ss:$16 sps:$4 sm:$0xff]   ;;  %v4808_v58 = vld [vmem:[#allocation8 + $0x1a8] ss:$16 sps:$4 sm:$0xff]  }
 0x2dc   :  { %2046 = vmatprep.subr.bf16.mxu1 %v4771_v20  ;;  %v5497_v31 = vld [vmem:[#allocation2 + $0x74] ss:$8 sps:$4 sm:$0xff]   ;;  %v4811_v12 = vld [vmem:[#allocation8 + $0x1c8] ss:$16 sps:$4 sm:$0xff]   ;;  %v5503_v7 = vld [vmem:[#allocation2 + $0xa4] ss:$8 sps:$4 sm:$0xff]  }
 0x2dd   :  { %1427 = vmatprep.subr.bf16.mxu0 %v1396_v9  ;;  %v5498_v44 = vld [vmem:[#allocation2 + $0x70] ss:$8 sps:$4 sm:$0xff]   ;;  %v5501_v9 = vld [vmem:[#allocation2 + $0x94] ss:$8 sps:$4 sm:$0xff]   ;;  %v5504_v20 = vld [vmem:[#allocation2 + $0xa0] ss:$8 sps:$4 sm:$0xff]  }
 0x2de   :  { %1428 = vmatpush1.bf16.msra.mxu0 %v1395_v39  ;;  %v5500_v39 = vld [vmem:[#allocation2 + $0x80] ss:$8 sps:$4 sm:$0xff]  }
 0x2df   :  { %2221 = vmatprep.subr.bf16.mxu0 %v4738_v33  ;;  %2047 = vmatpush1.bf16.msra.mxu1 %v4769_v42  ;;  %v5502_v33 = vld [vmem:[#allocation2 + $0x90] ss:$8 sps:$4 sm:$0xff]   ;;  %v4819_v42 = vld [vmem:[#allocation8 + $0x1ec] ss:$16 sps:$4 sm:$0xff]  }
 0x2e0   :  { %2048 = vmatprep.subr.bf16.mxu1 %v4777_v0  ;;  %v4817_v0 = vld [vmem:[#allocation8 + $0x1e8] ss:$16 sps:$4 sm:$0xff]  }
 0x2e1   :  { %1430 = vmatmul.mubr.bf16.vlgmr.msra.gmra.mrb[64].mxu0 %v5484_v19  ;;  %v4814_v19 = vld [vmem:[#allocation8 + $0x1e0] ss:$16 sps:$4 sm:$0xff]  }
 0x2e2   :  { %1439 = vmatprep.mubr.bf16.mxu0 %v5485_v22  ;;  %2222 = vmatpush1.bf16.msra.mxu0 %v4736_v46  ;;  %v5505_v46 = vld [vmem:[#allocation2 + $0xb4] ss:$8 sps:$4 sm:$0xff]   ;;  %v5506_v22 = vld [vmem:[#allocation2 + $0xb0] ss:$8 sps:$4 sm:$0xff]  }
 0x2e3   :  { %2223 = vmatprep.subr.bf16.mxu0 %v4744_v11  ;;  %2049 = vmatpush1.bf16.msra.mxu1 %v4775_v2  ;;  %v4816_v11 = vld [vmem:[#allocation8 + $0x1e4] ss:$16 sps:$4 sm:$0xff]  }
 0x2e4   :  { %2050 = vmatprep.subr.bf16.mxu1 %v4783_v35  ;;  %v5509_v2 = vld [vmem:[#allocation2 + $0xd4] ss:$8 sps:$4 sm:$0xff]   ;;  %v5510_v35 = vld [vmem:[#allocation2 + $0xd0] ss:$8 sps:$4 sm:$0xff]  }
 0x2e6   :  { %2224 = vmatpush1.bf16.msra.mxu0 %v4742_v26  ;;  %v5507_v26 = vld [vmem:[#allocation2 + $0xc4] ss:$8 sps:$4 sm:$0xff]  }
 0x2e7   :  { %2225 = vmatprep.subr.bf16.mxu0 %v4750_v45  ;;  %2051 = vmatpush1.bf16.msra.mxu1 %v4781_v48  ;;  %v5508_v45 = vld [vmem:[#allocation2 + $0xc0] ss:$8 sps:$4 sm:$0xff]   ;;  %v5513_v48 = vld [vmem:[#allocation2 + $0xf4] ss:$8 sps:$4 sm:$0xff]  }
 0x2e8   :  { %2052 = vmatprep.subr.bf16.mxu1 %v4789_v14 }
 0x2e9   :  { %1440 = vmatmul.mubr.bf16.gmra.mrb[68].mxu0 %v5486_v59  ;;  %v5514_v59 = vld [vmem:[#allocation2 + $0xf0] ss:$8 sps:$4 sm:$0xff]  }
 0x2ea   :  { %1449 = vmatprep.mubr.bf16.mxu0 %v5487_v6  ;;  %2226 = vmatpush1.bf16.msra.mxu0 %v4748_v50  ;;  %v5511_v50 = vld [vmem:[#allocation2 + $0xe4] ss:$8 sps:$4 sm:$0xff]  }
 0x2eb   :  { %2227 = vmatprep.subr.bf16.mxu0 %v4756_v53  ;;  %2053 = vmatpush1.bf16.msra.mxu1 %v4787_v15  ;;  %v5512_v53 = vld [vmem:[#allocation2 + $0xe0] ss:$8 sps:$4 sm:$0xff]  }
 0x2ec   :  { %2054 = vmatprep.subr.bf16.mxu1 %v4798_v36 }
 0x2ee   :  { %2228 = vmatpush1.bf16.msra.mxu0 %v4754_v28 }
 0x2ef   :  { %2229 = vmatprep.subr.bf16.mxu0 %v4762_v8  ;;  %2055 = vmatpush1.bf16.msra.mxu1 %v4796_v5 }
 0x2f0   :  { %2056 = vmatprep.subr.bf16.mxu1 %v4807_v43 }
 0x2f1   :  { %1450 = vmatmul.mubr.bf16.gmra.mrb[72].mxu0 %v5488_v40 }
 0x2f2   :  { %1459 = vmatprep.mubr.bf16.mxu0 %v5489_v13  ;;  %2230 = vmatpush1.bf16.msra.mxu0 %v4760_v3 }
 0x2f3   :  { %2231 = vmatprep.subr.bf16.mxu0 %v4768_v30  ;;  %2057 = vmatpush1.bf16.msra.mxu1 %v4805_v21 }
 0x2f4   :  { %2058 = vmatprep.subr.bf16.mxu1 %v4816_v11 }
 0x2f6   :  { %2232 = vmatpush1.bf16.msra.mxu0 %v4766_v16 }
 0x2f7   :  { %2233 = vmatprep.subr.bf16.mxu0 %v4774_v17  ;;  %2059 = vmatpush1.bf16.msra.mxu1 %v4814_v19 }
 0x2f9   :  { %1460 = vmatmul.mubr.bf16.gmra.mrb[76].mxu0 %v5490_v47 }
 0x2fa   :  { %1469 = vmatprep.mubr.bf16.mxu0 %v5491_v62  ;;  %2234 = vmatpush1.bf16.msra.mxu0 %v4772_v34 }
 0x2fb   :  { %2235 = vmatprep.subr.bf16.mxu0 %v4780_v61 }
 0x2fe   :  { %2236 = vmatpush1.bf16.msra.mxu0 %v4778_v18 }
 0x2ff   :  { %2237 = vmatprep.subr.bf16.mxu0 %v4786_v1 }
 0x301   :  { %1470 = vmatmul.mubr.bf16.gmra.mrb[80].mxu0 %v5492_v24 }
 0x302   :  { %1479 = vmatprep.mubr.bf16.mxu0 %v5493_v60  ;;  %2238 = vmatpush1.bf16.msra.mxu0 %v4784_v56 }
 0x303   :  { %2239 = vmatprep.subr.bf16.mxu0 %v4792_v4 }
 0x306   :  { %2240 = vmatpush1.bf16.msra.mxu0 %v4790_v32 }
 0x307   :  { %2241 = vmatprep.subr.bf16.mxu0 %v4795_v41 }
 0x309   :  { %1480 = vmatmul.mubr.bf16.gmra.mrb[84].mxu0 %v5494_v55 }
 0x30a   :  { %1489 = vmatprep.mubr.bf16.mxu0 %v5495_v49  ;;  %2242 = vmatpush1.bf16.msra.mxu0 %v4793_v57 }
 0x30b   :  { %2243 = vmatprep.subr.bf16.mxu0 %v4801_v38 }
 0x30e   :  { %2244 = vmatpush1.bf16.msra.mxu0 %v4799_v25 }
 0x30f   :  { %2245 = vmatprep.subr.bf16.mxu0 %v4804_v10 }
 0x311   :  { %1490 = vmatmul.mubr.bf16.gmra.mrb[88].mxu0 %v5496_v27 }
 0x312   :  { %1499 = vmatprep.mubr.bf16.mxu0 %v5497_v31  ;;  %2246 = vmatpush1.bf16.msra.mxu0 %v4802_v29 }
 0x313   :  { %2247 = vmatprep.subr.bf16.mxu0 %v4810_v23 }
 0x316   :  { %2248 = vmatpush1.bf16.msra.mxu0 %v4808_v58 }
 0x317   :  { %2249 = vmatprep.subr.bf16.mxu0 %v4813_v37 }
 0x319   :  { %1500 = vmatmul.mubr.bf16.gmra.mrb[92].mxu0 %v5498_v44 }
 0x31a   :  { %1509 = vmatprep.mubr.bf16.mxu0 %v5499_v63  ;;  %2250 = vmatpush1.bf16.msra.mxu0 %v4811_v12 }
 0x31b   :  { %2251 = vmatprep.subr.bf16.mxu0 %v4819_v42 }
 0x31e   :  { %2252 = vmatpush1.bf16.msra.mxu0 %v4817_v0 }
 0x321   :  { %1510 = vmatmul.mubr.bf16.gmra.mrb[96].mxu0 %v5500_v39 }
 0x322   :  { %1519 = vmatprep.mubr.bf16.mxu0 %v5501_v9 }
 0x329   :  { %1520 = vmatmul.mubr.bf16.gmra.mrb[100].mxu0 %v5502_v33 }
 0x32a   :  { %1529 = vmatprep.mubr.bf16.mxu0 %v5503_v7 }
 0x331   :  { %1530 = vmatmul.mubr.bf16.gmra.mrb[104].mxu0 %v5504_v20 }
 0x332   :  { %1539 = vmatprep.mubr.bf16.mxu0 %v5505_v46 }
 0x339   :  { %1540 = vmatmul.mubr.bf16.gmra.mrb[108].mxu0 %v5506_v22 }
 0x33a   :  { %1549 = vmatprep.mubr.bf16.mxu0 %v5507_v26 }
 0x341   :  { %1550 = vmatmul.mubr.bf16.gmra.mrb[112].mxu0 %v5508_v45 }
 0x342   :  { %1559 = vmatprep.mubr.bf16.mxu0 %v5509_v2 }
 0x349   :  { %1560 = vmatmul.mubr.bf16.gmra.mrb[116].mxu0 %v5510_v35 }
 0x34a   :  { %1569 = vmatprep.mubr.bf16.mxu0 %v5511_v50 }
 0x351   :  { %1570 = vmatmul.mubr.bf16.gmra.mrb[120].mxu0 %v5512_v53 }
 0x352   :  { %1579 = vmatprep.mubr.bf16.mxu0 %v5513_v48 }
 0x359   :  { %1580 = vmatmul.mubr.bf16.gmra.mrb[124].mxu0 %v5514_v59 }
 0x3b4   :  { %v1431_v14 = vpop.f32.mrb[64].mxu0 }
 0x3b5   :  { %v1433_v6 = vpop.f32.mrb[65].mxu0 }
 0x3b6   :  { %v1435_v28 = vpop.f32.mrb[66].mxu0 }
 0x3b7   :  { %v1590_v8 = vpack.c.bf16 %v1435_v28, %v1431_v14  ;;  %v1437_v15 = vpop.f32.mrb[67].mxu0 }
 0x3b8   :  { %v1591_v36 = vpack.c.bf16 %v1437_v15, %v1433_v6 }
 0x3ba   :  { %2060 = vmatprep.mubr.bf16.mxu1 %v1591_v36  ;;  %2253 = vmatprep.mubr.bf16.mxu0 %v1591_v36 }
 0x3bb   :  { %2061 = vmatmul.mubr.bf16.vlgmr.msra.gmra.mrb[64].mxu1 %v1590_v8  ;;  %2254 = vmatmul.mubr.bf16.vlgmr.msra.gmra.mrb[128].mxu0 %v1590_v8 }
 0x3bc   :  { %v1441_v3 = vpop.f32.mrb[68].mxu0 }
 0x3bd   :  { %v1443_v30 = vpop.f32.mrb[69].mxu0 }
 0x3be   :  { %v1445_v5 = vpop.f32.mrb[70].mxu0 }
 0x3bf   :  { %v1592_v40 = vpack.c.bf16 %v1445_v5, %v1441_v3  ;;  %v1447_v43 = vpop.f32.mrb[71].mxu0 }
 0x3c0   :  { %v1593_v13 = vpack.c.bf16 %v1447_v43, %v1443_v30 }
 0x3c2   :  { %2070 = vmatprep.mubr.bf16.mxu1 %v1593_v13  ;;  %2263 = vmatprep.mubr.bf16.mxu0 %v1593_v13 }
 0x3c3   :  { %2071 = vmatmul.mubr.bf16.gmra.mrb[68].mxu1 %v1592_v40  ;;  %2264 = vmatmul.mubr.bf16.gmra.mrb[132].mxu0 %v1592_v40 }
 0x3c4   :  { %v1451_v16 = vpop.f32.mrb[72].mxu0 }
 0x3c5   :  { %v1453_v17 = vpop.f32.mrb[73].mxu0 }
 0x3c6   :  { %v1455_v21 = vpop.f32.mrb[74].mxu0 }
 0x3c7   :  { %v1594_v34 = vpack.c.bf16 %v1455_v21, %v1451_v16  ;;  %v1457_v61 = vpop.f32.mrb[75].mxu0 }
 0x3c8   :  { %v1595_v47 = vpack.c.bf16 %v1457_v61, %v1453_v17 }
 0x3ca   :  { %2080 = vmatprep.mubr.bf16.mxu1 %v1595_v47  ;;  %2273 = vmatprep.mubr.bf16.mxu0 %v1595_v47 }
 0x3cb   :  { %2081 = vmatmul.mubr.bf16.gmra.mrb[72].mxu1 %v1594_v34  ;;  %2274 = vmatmul.mubr.bf16.gmra.mrb[136].mxu0 %v1594_v34 }
 0x3cc   :  { %v1461_v62 = vpop.f32.mrb[76].mxu0 }
 0x3cd   :  { %v1463_v18 = vpop.f32.mrb[77].mxu0 }
 0x3ce   :  { %v1465_v1 = vpop.f32.mrb[78].mxu0 }
 0x3cf   :  { %v1596_v56 = vpack.c.bf16 %v1465_v1, %v1461_v62  ;;  %v1467_v4 = vpop.f32.mrb[79].mxu0 }
 0x3d0   :  { %v1597_v24 = vpack.c.bf16 %v1467_v4, %v1463_v18 }
 0x3d2   :  { %2090 = vmatprep.mubr.bf16.mxu1 %v1597_v24  ;;  %2283 = vmatprep.mubr.bf16.mxu0 %v1597_v24 }
 0x3d3   :  { %2091 = vmatmul.mubr.bf16.gmra.mrb[76].mxu1 %v1596_v56  ;;  %2284 = vmatmul.mubr.bf16.gmra.mrb[140].mxu0 %v1596_v56 }
 0x3d4   :  { %v1471_v60 = vpop.f32.mrb[80].mxu0 }
 0x3d5   :  { %v1473_v32 = vpop.f32.mrb[81].mxu0 }
 0x3d6   :  { %v1475_v41 = vpop.f32.mrb[82].mxu0 }
 0x3d7   :  { %v1598_v57 = vpack.c.bf16 %v1475_v41, %v1471_v60  ;;  %v1477_v38 = vpop.f32.mrb[83].mxu0 }
 0x3d8   :  { %v1599_v55 = vpack.c.bf16 %v1477_v38, %v1473_v32 }
 0x3da   :  { %2100 = vmatprep.mubr.bf16.mxu1 %v1599_v55  ;;  %2293 = vmatprep.mubr.bf16.mxu0 %v1599_v55 }
 0x3db   :  { %2101 = vmatmul.mubr.bf16.gmra.mrb[80].mxu1 %v1598_v57  ;;  %2294 = vmatmul.mubr.bf16.gmra.mrb[144].mxu0 %v1598_v57 }
 0x3dc   :  { %v1481_v49 = vpop.f32.mrb[84].mxu0 }
 0x3dd   :  { %v1483_v25 = vpop.f32.mrb[85].mxu0 }
 0x3de   :  { %v1485_v10 = vpop.f32.mrb[86].mxu0 }
 0x3df   :  { %v1600_v29 = vpack.c.bf16 %v1485_v10, %v1481_v49  ;;  %v1487_v23 = vpop.f32.mrb[87].mxu0 }
 0x3e0   :  { %v1601_v27 = vpack.c.bf16 %v1487_v23, %v1483_v25 }
 0x3e2   :  { %2110 = vmatprep.mubr.bf16.mxu1 %v1601_v27  ;;  %2303 = vmatprep.mubr.bf16.mxu0 %v1601_v27  ;;  %v3667_v27 = vld [vmem:[#allocation10 + $0x80] sm:$0xff] }
 0x3e3   :  { %2111 = vmatmul.mubr.bf16.gmra.mrb[84].mxu1 %v1600_v29  ;;  %2304 = vmatmul.mubr.bf16.gmra.mrb[148].mxu0 %v1600_v29 }
 0x3e4   :  { %v1491_v31 = vpop.f32.mrb[88].mxu0 }
 0x3e5   :  { %v1493_v58 = vpop.f32.mrb[89].mxu0 }
 0x3e6   :  { %v1495_v37 = vpop.f32.mrb[90].mxu0 }
 0x3e7   :  { %v1602_v12 = vpack.c.bf16 %v1495_v37, %v1491_v31  ;;  %v1497_v44 = vpop.f32.mrb[91].mxu0  ;;  %v3668_v31 = vld [vmem:[#allocation10 + $0x88] sm:$0xff]  ;;  %v3651_v37 = vld [vmem:[#allocation10] sm:$0xff] }
 0x3e8   :  { %v1603_v63 = vpack.c.bf16 %v1497_v44, %v1493_v58  ;;  %v4531_v58 = vpack.c.bf16 %v3668_v31, %v3667_v27 }
 0x3ea   :  { %2120 = vmatprep.mubr.bf16.mxu1 %v1603_v63  ;;  %2313 = vmatprep.mubr.bf16.mxu0 %v1603_v63  ;;  %v1698_v63 = vsub.s32 2, %v5855_v51 }
 0x3eb   :  { %2121 = vmatmul.mubr.bf16.gmra.mrb[88].mxu1 %v1602_v12  ;;  %2314 = vmatmul.mubr.bf16.gmra.mrb[152].mxu0 %v1602_v12  ;;  %v3652_v12 = vld [vmem:[#allocation10 + $0x8] sm:$0xff] }
 0x3ec   :  { %v1501_v39 = vpop.f32.mrb[92].mxu0  ;;  %4532 = vmatprep.subr.bf16.mxu1 %v4531_v58  ;;  %v4533_v44 = vpack.c.bf16 %v3652_v12, %v3651_v37 }
 0x3ed   :  { %v1503_v9 = vpop.f32.mrb[93].mxu0 }
 0x3ee   :  { %v1505_v33 = vpop.f32.mrb[94].mxu0  ;;  %4534 = vmatpush3.bf16.msra.mxu1 %v4533_v44 }
 0x3ef   :  { %v1604_v7 = vpack.c.bf16 %v1505_v33, %v1501_v39  ;;  %v1507_v20 = vpop.f32.mrb[95].mxu0  ;;  %v3669_v39 = vld [vmem:[#allocation10 + $0x90] sm:$0xff]  ;;  %v1686_v33 = vld [vmem:[%s7114_s5] sm:$0xf] }
 0x3f0   :  { %v1605_v46 = vpack.c.bf16 %v1507_v20, %v1503_v9  ;;  %v3670_v9 = vld [vmem:[#allocation10 + $0x98] sm:$0xff] }
 0x3f1   :  { %v4535_v20 = vpack.c.bf16 %v3670_v9, %v3669_v39 }
 0x3f2   :  { %2130 = vmatprep.mubr.bf16.mxu1 %v1605_v46  ;;  %2323 = vmatprep.mubr.bf16.mxu0 %v1605_v46  ;;  %v6197_v46 = vrot.slane %v1686_v33, %v636_v52 }
 0x3f3   :  { %2131 = vmatmul.mubr.bf16.gmra.mrb[92].mxu1 %v1604_v7  ;;  %2324 = vmatmul.mubr.bf16.gmra.mrb[156].mxu0 %v1604_v7  ;;  %v1702_v7 = vsub.s32 3, %v5855_v51 }
 0x3f4   :  { %v1511_v11 = vpop.f32.mrb[96].mxu0  ;;  %4536 = vmatprep.subr.bf16.mxu1 %v4535_v20 }
 0x3f5   :  { %v1513_v42 = vpop.f32.mrb[97].mxu0 }
 0x3f6   :  { %v1515_v19 = vpop.f32.mrb[98].mxu0 }
 0x3f7   :  { %v1606_v0 = vpack.c.bf16 %v1515_v19, %v1511_v11  ;;  %v1517_v22 = vpop.f32.mrb[99].mxu0  ;;  %v6199_v11 = vrot.slane %v1686_v33, %v1698_v63  ;;  %v6205_v19 = vrot.slane %v1686_v33, %v1702_v7 }
 0x3f8   :  { %v1607_v26 = vpack.c.bf16 %v1517_v22, %v1513_v42  ;;  %v6203_v42 = vrot.slane %v1686_v33, %v640_v54 }
 0x3fa   :  { %2140 = vmatprep.mubr.bf16.mxu1 %v1607_v26  ;;  %2333 = vmatprep.mubr.bf16.mxu0 %v1607_v26 }
 0x3fb   :  { %2141 = vmatmul.mubr.bf16.gmra.mrb[96].mxu1 %v1606_v0  ;;  %2334 = vmatmul.mubr.bf16.gmra.mrb[160].mxu0 %v1606_v0 }
 0x3fc   :  { %v1521_v45 = vpop.f32.mrb[100].mxu0 }
 0x3fd   :  { %v1523_v2 = vpop.f32.mrb[101].mxu0 }
 0x3fe   :  { %v1525_v35 = vpop.f32.mrb[102].mxu0 }
 0x3ff   :  { %v1608_v50 = vpack.c.bf16 %v1525_v35, %v1521_v45  ;;  %v1527_v53 = vpop.f32.mrb[103].mxu0 }
 0x400   :  { %v1609_v48 = vpack.c.bf16 %v1527_v53, %v1523_v2 }
 0x402   :  { %2150 = vmatprep.mubr.bf16.mxu1 %v1609_v48  ;;  %2343 = vmatprep.mubr.bf16.mxu0 %v1609_v48 }
 0x403   :  { %2151 = vmatmul.mubr.bf16.gmra.mrb[100].mxu1 %v1608_v50  ;;  %2344 = vmatmul.mubr.bf16.gmra.mrb[164].mxu0 %v1608_v50 }
 0x404   :  { %v1531_v59 = vpop.f32.mrb[104].mxu0 }
 0x405   :  { %v1533_v14 = vpop.f32.mrb[105].mxu0 }
 0x406   :  { %v1535_v6 = vpop.f32.mrb[106].mxu0 }
 0x407   :  { %v1610_v28 = vpack.c.bf16 %v1535_v6, %v1531_v59  ;;  %v1537_v8 = vpop.f32.mrb[107].mxu0 }
 0x408   :  { %v1611_v15 = vpack.c.bf16 %v1537_v8, %v1533_v14 }
 0x40a   :  { %2160 = vmatprep.mubr.bf16.mxu1 %v1611_v15  ;;  %2353 = vmatprep.mubr.bf16.mxu0 %v1611_v15 }
 0x40b   :  { %2161 = vmatmul.mubr.bf16.gmra.mrb[104].mxu1 %v1610_v28  ;;  %2354 = vmatmul.mubr.bf16.gmra.mrb[168].mxu0 %v1610_v28 }
 0x40c   :  { %v1541_v36 = vpop.f32.mrb[108].mxu0 }
 0x40d   :  { %v1543_v3 = vpop.f32.mrb[109].mxu0 }
 0x40e   :  { %v1545_v30 = vpop.f32.mrb[110].mxu0 }
 0x40f   :  { %v1612_v5 = vpack.c.bf16 %v1545_v30, %v1541_v36  ;;  %v1547_v40 = vpop.f32.mrb[111].mxu0 }
 0x410   :  { %v1613_v43 = vpack.c.bf16 %v1547_v40, %v1543_v3 }
 0x412   :  { %2170 = vmatprep.mubr.bf16.mxu1 %v1613_v43  ;;  %2363 = vmatprep.mubr.bf16.mxu0 %v1613_v43 }
 0x413   :  { %2171 = vmatmul.mubr.bf16.gmra.mrb[108].mxu1 %v1612_v5  ;;  %2364 = vmatmul.mubr.bf16.gmra.mrb[172].mxu0 %v1612_v5 }
 0x414   :  { %v1551_v13 = vpop.f32.mrb[112].mxu0 }
 0x415   :  { %v1553_v16 = vpop.f32.mrb[113].mxu0 }
 0x416   :  { %v1555_v17 = vpop.f32.mrb[114].mxu0 }
 0x417   :  { %v1614_v21 = vpack.c.bf16 %v1555_v17, %v1551_v13  ;;  %v1557_v34 = vpop.f32.mrb[115].mxu0  ;;  %v3653_v17 = vld [vmem:[#allocation10 + $0x10] sm:$0xff] }
 0x418   :  { %v1615_v61 = vpack.c.bf16 %v1557_v34, %v1553_v16 }
 0x41a   :  { %2180 = vmatprep.mubr.bf16.mxu1 %v1615_v61  ;;  %2373 = vmatprep.mubr.bf16.mxu0 %v1615_v61 }
 0x41b   :  { %2181 = vmatmul.mubr.bf16.gmra.mrb[112].mxu1 %v1614_v21  ;;  %2374 = vmatmul.mubr.bf16.gmra.mrb[176].mxu0 %v1614_v21  ;;  %v3654_v21 = vld [vmem:[#allocation10 + $0x18] sm:$0xff] }
 0x41c   :  { %v1561_v47 = vpop.f32.mrb[116].mxu0 }
 0x41d   :  { %v1563_v62 = vpop.f32.mrb[117].mxu0 }
 0x41e   :  { %v1565_v18 = vpop.f32.mrb[118].mxu0 }
 0x41f   :  { %v1616_v1 = vpack.c.bf16 %v1565_v18, %v1561_v47  ;;  %v1567_v56 = vpop.f32.mrb[119].mxu0  ;;  %v4537_v18 = vpack.c.bf16 %v3654_v21, %v3653_v17 }
 0x420   :  { %v1617_v4 = vpack.c.bf16 %v1567_v56, %v1563_v62 }
 0x421   :  { %4538 = vmatpush3.bf16.msra.mxu1 %v4537_v18 }
 0x422   :  { %2190 = vmatprep.mubr.bf16.mxu1 %v1617_v4  ;;  %2383 = vmatprep.mubr.bf16.mxu0 %v1617_v4 }
 0x423   :  { %2191 = vmatmul.mubr.bf16.gmra.mrb[116].mxu1 %v1616_v1  ;;  %2384 = vmatmul.mubr.bf16.gmra.mrb[180].mxu0 %v1616_v1 }
 0x424   :  { %v1571_v24 = vpop.f32.mrb[120].mxu0 }
 0x425   :  { %v1573_v60 = vpop.f32.mrb[121].mxu0 }
 0x426   :  { %v1575_v32 = vpop.f32.mrb[122].mxu0 }
 0x427   :  { %v1618_v41 = vpack.c.bf16 %v1575_v32, %v1571_v24  ;;  %v1577_v57 = vpop.f32.mrb[123].mxu0 }
 0x428   :  { %v1619_v38 = vpack.c.bf16 %v1577_v57, %v1573_v60 }
 0x42a   :  { %2200 = vmatprep.mubr.bf16.mxu1 %v1619_v38  ;;  %2393 = vmatprep.mubr.bf16.mxu0 %v1619_v38 }
 0x42b   :  { %2201 = vmatmul.mubr.bf16.gmra.mrb[120].mxu1 %v1618_v41  ;;  %2394 = vmatmul.mubr.bf16.gmra.mrb[184].mxu0 %v1618_v41 }
 0x42c   :  { %v1581_v55 = vpop.f32.mrb[124].mxu0 }
 0x42d   :  { %v1583_v49 = vpop.f32.mrb[125].mxu0 }
 0x42e   :  { %v1585_v25 = vpop.f32.mrb[126].mxu0 }
 0x42f   :  { %v1620_v10 = vpack.c.bf16 %v1585_v25, %v1581_v55  ;;  %v1587_v29 = vpop.f32.mrb[127].mxu0 }
 0x430   :  { %v1621_v23 = vpack.c.bf16 %v1587_v29, %v1583_v49 }
 0x432   :  { %2210 = vmatprep.mubr.bf16.mxu1 %v1621_v23  ;;  %2403 = vmatprep.mubr.bf16.mxu0 %v1621_v23 }
 0x433   :  { %2211 = vmatmul.mubr.bf16.gmra.mrb[124].mxu1 %v1620_v10  ;;  %2404 = vmatmul.mubr.bf16.gmra.mrb[188].mxu0 %v1620_v10 }
 0x48e   :  { %v2062_v0 = vpop.f32.mrb[64].mxu1  ;;  %v2255_v22 = vpop.f32.mrb[128].mxu0 }
 0x48f   :  { %v6208_v26 = vadd.f32 %v2062_v0, %v6197_v46  ;;  %v6211_v45 = vadd.f32 %v2255_v22, %v6199_v11  ;;  %v2064_v2 = vpop.f32.mrb[65].mxu1  ;;  %v2257_v35 = vpop.f32.mrb[129].mxu0 }
 0x490   :  { %v6214_v52 = vadd.f32 %v2064_v2, %v6203_v42  ;;  %v6217_v50 = vadd.f32 %v2257_v35, %v6205_v19  ;;  %v2066_v51 = vpop.f32.mrb[66].mxu1  ;;  %v2259_v54 = vpop.f32.mrb[130].mxu0 }
 0x491   :  { %v4167_v53 = vmul.f32 -1.442695, %v6208_v26  ;;  %v4169_v48 = vmul.f32 -1.442695, %v6211_v45  ;;  %v6222_v59 = vadd.f32 %v2066_v51, %v6197_v46  ;;  %v6225_v14 = vadd.f32 %v2259_v54, %v6199_v11  ;;  %v2068_v6 = vpop.f32.mrb[67].mxu1  ;;  %v2261_v28 = vpop.f32.mrb[131].mxu0 }
 0x492   :  { %v4168_v8 = vmul.f32 -1.442695, %v6214_v52  ;;  %v4170_v15 = vmul.f32 -1.442695, %v6217_v50  ;;  %v6230_v36 = vadd.f32 %v2068_v6, %v6203_v42  ;;  %v6233_v3 = vadd.f32 %v2261_v28, %v6205_v19 }
 0x493   :  { %5076 = vpow2.f32 %v4167_v53  ;;  %v4171_v30 = vmul.f32 -1.442695, %v6222_v59  ;;  %v4173_v5 = vmul.f32 -1.442695, %v6225_v14 }
 0x494   :  { %5078 = vpow2.f32 %v4169_v48  ;;  %v4172_v40 = vmul.f32 -1.442695, %v6230_v36  ;;  %v4174_v43 = vmul.f32 -1.442695, %v6233_v3 }
 0x495   :  { %5080 = vpow2.f32 %v4168_v8 }
 0x496   :  { %5082 = vpow2.f32 %v4170_v15  ;;  %v2072_v13 = vpop.f32.mrb[68].mxu1  ;;  %v2265_v16 = vpop.f32.mrb[132].mxu0 }
 0x497   :  { %5084 = vpow2.f32 %v4171_v30  ;;  %v6240_v34 = vadd.f32 %v2072_v13, %v6197_v46  ;;  %v6243_v61 = vadd.f32 %v2265_v16, %v6199_v11  ;;  %v2074_v47 = vpop.f32.mrb[69].mxu1  ;;  %v2267_v62 = vpop.f32.mrb[133].mxu0 }
 0x498   :  { %5086 = vpow2.f32 %v4173_v5  ;;  %v6246_v1 = vadd.f32 %v2074_v47, %v6203_v42  ;;  %v6249_v56 = vadd.f32 %v2267_v62, %v6205_v19  ;;  %v2076_v4 = vpop.f32.mrb[70].mxu1  ;;  %v2269_v24 = vpop.f32.mrb[134].mxu0 }
 0x499   :  { %5088 = vpow2.f32 %v4172_v40  ;;  %v4175_v60 = vmul.f32 -1.442695, %v6240_v34  ;;  %v4177_v32 = vmul.f32 -1.442695, %v6243_v61  ;;  %v6254_v41 = vadd.f32 %v2076_v4, %v6197_v46  ;;  %v2078_v57 = vpop.f32.mrb[71].mxu1  ;;  %v2271_v38 = vpop.f32.mrb[135].mxu0 }
 0x49a   :  { %5090 = vpow2.f32 %v4174_v43  ;;  %v4176_v55 = vmul.f32 -1.442695, %v6246_v1  ;;  %v4178_v49 = vmul.f32 -1.442695, %v6249_v56  ;;  %v6260_v35 = vadd.f32 %v2269_v24, %v6199_v11 }
 0x49b   :  { %5092 = vpow2.f32 %v4175_v60  ;;  %v4179_v25 = vmul.f32 -1.442695, %v6254_v41  ;;  %v6263_v48 = vadd.f32 %v2078_v57, %v6203_v42  ;;  %v6267_v43 = vadd.f32 %v2271_v38, %v6205_v19 }
 0x49c   :  { %5094 = vpow2.f32 %v4177_v32  ;;  %v4181_v40 = vmul.f32 -1.442695, %v6260_v35 }
 0x49d   :  { %v5077_v10 = vpop.eup %5076  ;;  %5096 = vpow2.f32 %v4176_v55  ;;  %v4180_v21 = vmul.f32 -1.442695, %v6263_v48 }
 0x49e   :  { %v5079_v29 = vpop.eup %5078  ;;  %v2798_v23 = vadd.f32 1.0, %v5077_v10  ;;  %5098 = vpow2.f32 %v4178_v49  ;;  %v2082_v27 = vpop.f32.mrb[72].mxu1 }
 0x49f   :  { %v2275_v31 = vpop.f32.mrb[136].mxu0  ;;  %v5081_v58 = vpop.eup %5080  ;;  %v2800_v37 = vadd.f32 1.0, %v5079_v29  ;;  %5100 = vpow2.f32 %v4179_v25  ;;  %v6271_v47 = vadd.f32 %v2082_v27, %v6197_v46 }
 0x4a0   :  { %v2084_v12 = vpop.f32.mrb[73].mxu1  ;;  %v2277_v44 = vpop.f32.mrb[137].mxu0  ;;  %5102 = vrcp.f32 %v2798_v23  ;;  %v2799_v39 = vadd.f32 1.0, %v5081_v58  ;;  %v6276_v60 = vadd.f32 %v2275_v31, %v6199_v11 }
 0x4a1   :  { %v5083_v63 = vpop.eup %5082  ;;  %v2086_v9 = vpop.f32.mrb[74].mxu1  ;;  %5104 = vrcp.f32 %v2800_v37  ;;  %v6279_v32 = vadd.f32 %v2084_v12, %v6203_v42  ;;  %v6286_v25 = vadd.f32 %v2277_v44, %v6205_v19 }
 0x4a2   :  { %v2279_v33 = vpop.f32.mrb[138].mxu0  ;;  %v5085_v7 = vpop.eup %5084  ;;  %v2801_v20 = vadd.f32 1.0, %v5083_v63  ;;  %5106 = vrcp.f32 %v2799_v39  ;;  %v6289_v10 = vadd.f32 %v2086_v9, %v6197_v46  ;;  %v4182_v63 = vmul.f32 -1.442695, %v6267_v43 }
 0x4a3   :  { %v2088_v0 = vpop.f32.mrb[75].mxu1  ;;  %v5087_v22 = vpop.eup %5086  ;;  %v2802_v2 = vadd.f32 1.0, %v5085_v7  ;;  %v6296_v58 = vadd.f32 %v2279_v33, %v6199_v11  ;;  %v4183_v9 = vmul.f32 -1.442695, %v6271_v47  ;;  %v4185_v7 = vmul.f32 -1.442695, %v6276_v60 }
 0x4a4   :  { %v2281_v51 = vpop.f32.mrb[139].mxu0  ;;  %v5089_v54 = vpop.eup %5088  ;;  %5108 = vrcp.f32 %v2801_v20  ;;  %v2804_v53 = vadd.f32 1.0, %v5087_v22  ;;  %v6299_v37 = vadd.f32 %v2088_v0, %v6203_v42  ;;  %v4184_v33 = vmul.f32 -1.442695, %v6279_v32 }
 0x4a5   :  { %v5091_v6 = vpop.eup %5090  ;;  %5110 = vrcp.f32 %v2802_v2  ;;  %v2803_v28 = vadd.f32 1.0, %v5089_v54  ;;  %v4186_v22 = vmul.f32 -1.442695, %v6286_v25  ;;  %v4187_v0 = vmul.f32 -1.442695, %v6289_v10 }
 0x4a6   :  { %v5093_v8 = vpop.eup %5092  ;;  %5112 = vrcp.f32 %v2804_v53  ;;  %v2805_v15 = vadd.f32 1.0, %v5091_v6  ;;  %v2092_v13 = vpop.f32.mrb[76].mxu1  ;;  %v4189_v54 = vmul.f32 -1.442695, %v6296_v58  ;;  %v4188_v53 = vmul.f32 -1.442695, %v6299_v37 }
 0x4a7   :  { %v5095_v30 = vpop.eup %5094  ;;  %5114 = vrcp.f32 %v2803_v28  ;;  %v2806_v5 = vadd.f32 1.0, %v5093_v8  ;;  %v2285_v62 = vpop.f32.mrb[140].mxu0  ;;  %v6312_v6 = vadd.f32 %v2281_v51, %v6205_v19 }
 0x4a8   :  { %v5097_v16 = vpop.eup %5096  ;;  %5116 = vrcp.f32 %v2805_v15  ;;  %v2808_v17 = vadd.f32 1.0, %v5095_v30  ;;  %v6273_v18 = vpop.f32.mrb[77].mxu1 }
 0x4a9   :  { %v5099_v4 = vpop.eup %5098  ;;  %5118 = vrcp.f32 %v2806_v5  ;;  %v2807_v24 = vadd.f32 1.0, %v5097_v16  ;;  %v6281_v57 = vpop.f32.mrb[141].mxu0 }
 0x4aa   :  { %v6283_v38 = vpop.f32.mrb[78].mxu1  ;;  %v5101_v55 = vpop.eup %5100  ;;  %5120 = vrcp.f32 %v2808_v17  ;;  %v2809_v49 = vadd.f32 1.0, %v5099_v4 }
 0x4ab   :  { %v6291_v29 = vpop.f32.mrb[142].mxu0  ;;  %v6293_v23 = vpop.f32.mrb[79].mxu1  ;;  %5122 = vrcp.f32 %v2807_v24  ;;  %v2810_v31 = vadd.f32 1.0, %v5101_v55  ;;  %v6330_v24 = vadd.f32 %v2285_v62, %v6199_v11 }
 0x4ac   :  { %v5103_v27 = vpop.eup %5102  ;;  %v6301_v12 = vpop.f32.mrb[143].mxu0  ;;  %5124 = vrcp.f32 %v2809_v49 }
 0x4ad   :  { %v5105_v44 = vpop.eup %5104  ;;  %5126 = vrcp.f32 %v2810_v31  ;;  %v3182_v30 = vmul.f32 %v5103_v27, %v6208_v26 }
 0x4ae   :  { %v5107_v39 = vpop.eup %5106  ;;  %5128 = vpow2.f32 %v4181_v40  ;;  %v6314_v28 = vpop.f32.mrb[80].mxu1  ;;  %v6321_v40 = vadd.f32 %v2092_v13, %v6197_v46  ;;  %v3184_v51 = vmul.f32 %v5105_v44, %v6211_v45 }
 0x4af   :  { %v5109_v20 = vpop.eup %5108  ;;  %5130 = vpow2.f32 %v4180_v21  ;;  %v6316_v8 = vpop.f32.mrb[144].mxu0  ;;  %v3183_v13 = vmul.f32 %v5107_v39, %v6214_v52  ;;  %v4190_v52 = vmul.f32 -1.442695, %v6312_v6 }
 0x4b0   :  { %v5111_v2 = vpop.eup %5110  ;;  %5132 = vpow2.f32 %v4182_v63  ;;  %v6323_v16 = vpop.f32.mrb[81].mxu1  ;;  %v3185_v44 = vmul.f32 %v5109_v20, %v6217_v50  ;;  %v4193_v20 = vmul.f32 -1.442695, %v6330_v24 }
 0x4b1   :  { %v5113_v15 = vpop.eup %5112  ;;  %v3186_v5 = vmul.f32 %v5111_v2, %v6222_v59  ;;  %v6325_v17 = vpop.f32.mrb[145].mxu0  ;;  %5134 = vpow2.f32 %v4183_v9 }
 0x4b2   :  { %v5115_v21 = vpop.eup %5114  ;;  %v3188_v4 = vmul.f32 %v5113_v15, %v6225_v14  ;;  %v6332_v26 = vpop.f32.mrb[82].mxu1  ;;  %5136 = vpow2.f32 %v4185_v7 }
 0x4b3   :  { %v6334_v59 = vpop.f32.mrb[146].mxu0  ;;  %v5117_v55 = vpop.eup %5116  ;;  %v3503_v49 = vmax.f32 %v3182_v30, %v3186_v5  ;;  %v3187_v27 = vmul.f32 %v5115_v21, %v6230_v36  ;;  %5138 = vpow2.f32 %v4184_v33  ;;  %v4191_v30 = vmul.f32 -1.442695, %v6321_v40 }
 0x4b4   :  { %v6338_v31 = vpop.f32.mrb[83].mxu1  ;;  %v6340_v45 = vpop.f32.mrb[147].mxu0  ;;  %v3577_v62 = vmax.f32 %v3184_v51, %v3188_v4  ;;  %v3189_v63 = vmul.f32 %v5117_v55, %v6233_v3  ;;  %5140 = vpow2.f32 %v4186_v22 }
 0x4b5   :  { %v5119_v14 = vpop.eup %5118  ;;  %v3540_v2 = vmax.f32 %v3183_v13, %v3187_v27  ;;  %5142 = vpow2.f32 %v4187_v0 }
 0x4b6   :  { %v5121_v9 = vpop.eup %5120  ;;  %v3190_v15 = vmul.f32 %v5119_v14, %v6240_v34  ;;  %v3614_v39 = vmax.f32 %v3185_v44, %v3189_v63  ;;  %5144 = vpow2.f32 %v4189_v54  ;;  %v6355_v21 = vpop.f32.mrb[84].mxu1  ;;  %v6432_v14 = vadd.f32 %v6323_v16, %v6203_v42 }
 0x4b7   :  { %v5123_v36 = vpop.eup %5122  ;;  %v3192_v7 = vmul.f32 %v5121_v9, %v6243_v61  ;;  %5146 = vpow2.f32 %v4188_v53  ;;  %v6357_v61 = vpop.f32.mrb[148].mxu0 }
 0x4b8   :  { %v5125_v5 = vpop.eup %5124  ;;  %v6348_v50 = vmax.f32 %v3503_v49, %v3190_v15  ;;  %v3191_v3 = vmul.f32 %v5123_v36, %v6246_v1  ;;  %5148 = vpow2.f32 %v4190_v52  ;;  %v6364_v1 = vpop.f32.mrb[85].mxu1  ;;  %v6382_v52 = vadd.f32 %v6273_v18, %v6203_v42 }
 0x4b9   :  { %v5127_v33 = vpop.eup %5126  ;;  %v6352_v34 = vmax.f32 %v3577_v62, %v3192_v7  ;;  %v3193_v22 = vmul.f32 %v5125_v5, %v6249_v56  ;;  %v6366_v54 = vpop.f32.mrb[149].mxu0  ;;  %5150 = vpow2.f32 %v4191_v30  ;;  %v6391_v18 = vadd.f32 %v6281_v57, %v6205_v19 }
 0x4ba   :  { %v5129_v0 = vpop.eup %5128  ;;  %v6359_v51 = vmax.f32 %v3540_v2, %v3191_v3  ;;  %v6362_v4 = vmul.f32 %v5127_v33, %v6254_v41  ;;  %v6370_v53 = vpop.f32.mrb[86].mxu1  ;;  %5152 = vpow2.f32 %v4193_v20 }
 0x4bb   :  { %v5131_v55 = vpop.eup %5130  ;;  %v6368_v13 = vmax.f32 %v3614_v39, %v3193_v22  ;;  %v2812_v56 = vadd.f32 1.0, %v5129_v0  ;;  %v6372_v49 = vpop.f32.mrb[150].mxu0 }
 0x4bc   :  { %v5133_v27 = vpop.eup %5132  ;;  %v2811_v41 = vadd.f32 1.0, %v5131_v55  ;;  %v6376_v44 = vpop.f32.mrb[87].mxu1  ;;  %v4192_v55 = vmul.f32 -1.442695, %v6382_v52 }
 0x4bd   :  { %v6378_v62 = vpop.f32.mrb[151].mxu0  ;;  %v5135_v63 = vpop.eup %5134  ;;  %5154 = vrcp.f32 %v2812_v56  ;;  %v2813_v9 = vadd.f32 1.0, %v5133_v27 }
 0x4be   :  { %v5137_v2 = vpop.eup %5136  ;;  %5156 = vrcp.f32 %v2811_v41  ;;  %v2814_v15 = vadd.f32 1.0, %v5135_v63  ;;  %v6384_v20 = vpop.f32.mrb[88].mxu1 }
 0x4bf   :  { %v5139_v36 = vpop.eup %5138  ;;  %5158 = vrcp.f32 %v2813_v9  ;;  %v2816_v39 = vadd.f32 1.0, %v5137_v2  ;;  %v6386_v33 = vpop.f32.mrb[152].mxu0  ;;  %v6399_v9 = vadd.f32 %v6283_v38, %v6197_v46  ;;  %v6403_v2 = vadd.f32 %v6291_v29, %v6199_v11 }
 0x4c0   :  { %v5141_v7 = vpop.eup %5140  ;;  %5160 = vrcp.f32 %v2814_v15  ;;  %v2815_v30 = vadd.f32 1.0, %v5139_v36  ;;  %v6393_v56 = vpop.f32.mrb[89].mxu1 }
 0x4c1   :  { %v5143_v5 = vpop.eup %5142  ;;  %5162 = vrcp.f32 %v2816_v39  ;;  %v2817_v3 = vadd.f32 1.0, %v5141_v7  ;;  %7122 = vst [vmem:[#allocation19_spill] sm:$0xff] %v6393_v56  ;;  %v6395_v27 = vpop.f32.mrb[153].mxu0  ;;  %v6411_v7 = vadd.f32 %v6293_v23, %v6203_v42 }
 0x4c2   :  { %v5145_v22 = vpop.eup %5144  ;;  %5164 = vrcp.f32 %v2815_v30  ;;  %v2818_v0 = vadd.f32 1.0, %v5143_v5  ;;  %7123 = vst [vmem:[#allocation20_spill] sm:$0xff] %v6395_v27  ;;  %v6405_v15 = vpop.f32.mrb[90].mxu1  ;;  %v6415_v30 = vadd.f32 %v6301_v12, %v6205_v19  ;;  %v4194_v12 = vmul.f32 -1.442695, %v6391_v18 }
 0x4c3   :  { %v5147_v41 = vpop.eup %5146  ;;  %5166 = vrcp.f32 %v2817_v3  ;;  %v2820_v63 = vadd.f32 1.0, %v5145_v22  ;;  %7124 = vst [vmem:[#allocation21_spill] sm:$0xff] %v6405_v15  ;;  %v6407_v36 = vpop.f32.mrb[154].mxu0  ;;  %v6423_v22 = vadd.f32 %v6314_v28, %v6197_v46  ;;  %v4197_v28 = vmul.f32 -1.442695, %v6403_v2 }
 0x4c4   :  { %7125 = vst [vmem:[#allocation22_spill] sm:$0xff] %v6407_v36  ;;  %v5149_v57 = vpop.eup %5148  ;;  %5168 = vrcp.f32 %v2818_v0  ;;  %v2819_v39 = vadd.f32 1.0, %v5147_v41  ;;  %7126 = vst [vmem:[#allocation23_spill] sm:$0xff] %v6415_v30  ;;  %v6417_v38 = vpop.f32.mrb[91].mxu1  ;;  %v6427_v0 = vadd.f32 %v6316_v8, %v6199_v11 }
 0x4c5   :  { %7127 = vst [vmem:[#allocation24_spill] sm:$0xff] %v6417_v38  ;;  %v6419_v5 = vpop.f32.mrb[155].mxu0  ;;  %v5151_v29 = vpop.eup %5150  ;;  %5170 = vrcp.f32 %v2820_v63  ;;  %v2821_v3 = vadd.f32 1.0, %v5149_v57  ;;  %v4195_v57 = vmul.f32 -1.442695, %v6399_v9 }
 0x4c6   :  { %7128 = vst [vmem:[#allocation25_spill] sm:$0xff] %v6419_v5  ;;  %7129 = vst [vmem:[#allocation26_spill] sm:$0xff] %v6427_v0  ;;  %v5153_v23 = vpop.eup %5152  ;;  %5172 = vrcp.f32 %v2819_v39  ;;  %v2822_v41 = vadd.f32 1.0, %v5151_v29  ;;  %v4196_v39 = vmul.f32 -1.442695, %v6411_v7  ;;  %v6444_v27 = vpop.f32.mrb[156].mxu0 }
 0x4c7   :  { %v5155_v5 = vpop.eup %5154  ;;  %5174 = vrcp.f32 %v2821_v3  ;;  %v2824_v63 = vadd.f32 1.0, %v5153_v23  ;;  %v4198_v29 = vmul.f32 -1.442695, %v6415_v30  ;;  %v4199_v16 = vmul.f32 -1.442695, %v6423_v22  ;;  %v6442_v23 = vpop.f32.mrb[92].mxu1 }
 0x4c8   :  { %v5157_v38 = vpop.eup %5156  ;;  %v3196_v8 = vmul.f32 %v5155_v5, %v6260_v35  ;;  %5176 = vrcp.f32 %v2822_v41  ;;  %v4201_v3 = vmul.f32 -1.442695, %v6427_v0  ;;  %7130 = vst [vmem:[#allocation27_spill] sm:$0xff] %v6444_v27  ;;  %v4200_v41 = vmul.f32 -1.442695, %v6432_v14  ;;  %v6449_v30 = vpop.f32.mrb[93].mxu1 }
 0x4c9   :  { %v5159_v36 = vpop.eup %5158  ;;  %v3195_v15 = vmul.f32 %v5157_v38, %v6263_v48  ;;  %5178 = vrcp.f32 %v2824_v63  ;;  %v6451_v48 = vpop.f32.mrb[157].mxu0  ;;  %v6457_v27 = vadd.f32 %v6325_v17, %v6205_v19 }
 0x4ca   :  { %v5161_v56 = vpop.eup %5160  ;;  %v3579_v35 = vmax.f32 %v6352_v34, %v3196_v8  ;;  %v3197_v5 = vmul.f32 %v5159_v36, %v6267_v43  ;;  %5180 = vpow2.f32 %v4192_v55  ;;  %v6459_v34 = vpop.f32.mrb[94].mxu1 }
 0x4cb   :  { %v5163_v38 = vpop.eup %5162  ;;  %v3542_v63 = vmax.f32 %v6359_v51, %v3195_v15  ;;  %v3198_v0 = vmul.f32 %v5161_v56, %v6271_v47  ;;  %5182 = vpow2.f32 %v4194_v12  ;;  %v6461_v43 = vpop.f32.mrb[158].mxu0  ;;  %v6467_v51 = vadd.f32 %v6332_v26, %v6197_v46 }
 0x4cc   :  { %7131 = vst [vmem:[#allocation28_spill] sm:$0xff] %v6461_v43  ;;  %v5165_v55 = vpop.eup %5164  ;;  %v3616_v36 = vmax.f32 %v6368_v13, %v3197_v5  ;;  %v3200_v8 = vmul.f32 %v5163_v38, %v6276_v60  ;;  %5184 = vpow2.f32 %v4195_v57  ;;  %v6469_v47 = vpop.f32.mrb[95].mxu1  ;;  %v7133_v15 = vmax.f32 %v6348_v50, %v6362_v4 }
 0x4cd   :  { %v6471_v56 = vpop.f32.mrb[159].mxu0  ;;  %v5167_v17 = vpop.eup %5166  ;;  %v3199_v43 = vmul.f32 %v5165_v55, %v6279_v32  ;;  %5186 = vpow2.f32 %v4197_v28  ;;  %v6479_v60 = vadd.f32 %v6334_v59, %v6199_v11  ;;  %v6484_v5 = vadd.f32 %v6338_v31, %v6203_v42 }
 0x4ce   :  { %7132 = vst [vmem:[#allocation29_spill] sm:$0xff] %v6471_v56  ;;  %v3506_v12 = vmax.f32 %v7133_v15, %v3198_v0  ;;  %v5169_v13 = vpop.eup %5168  ;;  %v3580_v57 = vmax.f32 %v3579_v35, %v3200_v8  ;;  %v3201_v26 = vmul.f32 %v5167_v17, %v6286_v25  ;;  %5188 = vpow2.f32 %v4196_v39 }
 0x4cf   :  { %v5171_v38 = vpop.eup %5170  ;;  %v6486_v56 = vmax.f32 %v3542_v63, %v3199_v43  ;;  %v3202_v50 = vmul.f32 %v5169_v13, %v6289_v10  ;;  %5190 = vpow2.f32 %v4198_v29  ;;  %v4202_v32 = vmul.f32 -1.442695, %v6457_v27  ;;  %v6498_v10 = vpop.f32.mrb[96].mxu1 }
 0x4d0   :  { %v5173_v4 = vpop.eup %5172  ;;  %v6490_v59 = vmax.f32 %v3616_v36, %v3201_v26  ;;  %v3204_v0 = vmul.f32 %v5171_v38, %v6296_v58  ;;  %5192 = vpow2.f32 %v4199_v16  ;;  %v4203_v25 = vmul.f32 -1.442695, %v6467_v51  ;;  %v6500_v29 = vpop.f32.mrb[160].mxu0 }
 0x4d1   :  { %v5175_v28 = vpop.eup %5174  ;;  %v3507_v39 = vmax.f32 %v3506_v12, %v3202_v50  ;;  %v6495_v31 = vmul.f32 %v5173_v4, %v6299_v37  ;;  %5194 = vpow2.f32 %v4201_v3  ;;  %v4205_v35 = vmul.f32 -1.442695, %v6479_v60  ;;  %v6506_v16 = vpop.f32.mrb[97].mxu1 }
 0x4d2   :  { %v5177_v63 = vpop.eup %5176  ;;  %v3581_v43 = vmax.f32 %v3580_v57, %v3204_v0  ;;  %v6503_v55 = vmul.f32 %v5175_v28, %v6312_v6  ;;  %5196 = vpow2.f32 %v4200_v41  ;;  %v4204_v58 = vmul.f32 -1.442695, %v6484_v5  ;;  %v6508_v36 = vpop.f32.mrb[161].mxu0 }
 0x4d3   :  { %v5179_v37 = vpop.eup %5178  ;;  %v3206_v8 = vmul.f32 %v5177_v63, %v6321_v40  ;;  %5198 = vpow2.f32 %v4202_v32  ;;  %v6513_v17 = vpop.f32.mrb[98].mxu1  ;;  %v6562_v41 = vadd.f32 %v6366_v54, %v6205_v19 }
 0x4d4   :  { %v6515_v15 = vpop.f32.mrb[162].mxu0  ;;  %v5181_v6 = vpop.eup %5180  ;;  %v3208_v12 = vmul.f32 %v5179_v37, %v6330_v24  ;;  %5200 = vpow2.f32 %v4203_v25  ;;  %v6530_v25 = vadd.f32 %v6340_v45, %v6205_v19 }
 0x4d5   :  { %7134 = vst [vmem:[#allocation30_spill] sm:$0xff] %v6515_v15  ;;  %v6520_v13 = vpop.f32.mrb[99].mxu1  ;;  %v6522_v57 = vpop.f32.mrb[163].mxu0  ;;  %v6524_v38 = vmax.f32 %v3507_v39, %v3206_v8  ;;  %v2823_v40 = vadd.f32 1.0, %v5181_v6  ;;  %5202 = vpow2.f32 %v4205_v35  ;;  %v6534_v35 = vadd.f32 %v6355_v21, %v6197_v46 }
 0x4d6   :  { %7135 = vst [vmem:[#allocation31_spill] sm:$0xff] %v6520_v13  ;;  %7136 = vst [vmem:[#allocation32_spill] sm:$0xff] %v6522_v57  ;;  %v5183_v26 = vpop.eup %5182  ;;  %v6526_v32 = vmax.f32 %v3581_v43, %v3208_v12  ;;  %5204 = vpow2.f32 %v4204_v58  ;;  %v6536_v43 = vpop.f32.mrb[100].mxu1 }
 0x4d7   :  { %v5185_v50 = vpop.eup %5184  ;;  %v2825_v4 = vadd.f32 1.0, %v5183_v26  ;;  %5206 = vrcp.f32 %v2823_v40  ;;  %7137 = vst [vmem:[#allocation33_spill] sm:$0xff] %v6536_v43  ;;  %v6538_v58 = vpop.f32.mrb[164].mxu0  ;;  %v6544_v40 = vadd.f32 %v6357_v61, %v6199_v11 }
 0x4d8   :  { %v5187_v0 = vpop.eup %5186  ;;  %v2826_v28 = vadd.f32 1.0, %v5185_v50  ;;  %7138 = vst [vmem:[#allocation34_spill] sm:$0xff] %v6538_v58  ;;  %v6540_v12 = vpop.f32.mrb[101].mxu1  ;;  %v3656_v58 = vld [vmem:[#allocation10 + $0x28] sm:$0xff] }
 0x4d9   :  { %v5189_v63 = vpop.eup %5188  ;;  %5208 = vrcp.f32 %v2825_v4  ;;  %v2828_v24 = vadd.f32 1.0, %v5187_v0  ;;  %7139 = vst [vmem:[#allocation35_spill] sm:$0xff] %v6540_v12  ;;  %v6546_v50 = vpop.f32.mrb[165].mxu0  ;;  %v4209_v54 = vmul.f32 -1.442695, %v6544_v40  ;;  %v3655_v12 = vld [vmem:[#allocation10 + $0x20] sm:$0xff] }
 0x4da   :  { %v5191_v37 = vpop.eup %5190  ;;  %5210 = vrcp.f32 %v2826_v28  ;;  %v2827_v39 = vadd.f32 1.0, %v5189_v63  ;;  %7140 = vst [vmem:[#allocation36_spill] sm:$0xff] %v6546_v50  ;;  %v6548_v21 = vpop.f32.mrb[102].mxu1  ;;  %v4206_v28 = vmul.f32 -1.442695, %v6530_v25  ;;  %v6553_v63 = vadd.f32 %v6364_v1, %v6203_v42 }
 0x4db   :  { %v5193_v8 = vpop.eup %5192  ;;  %5212 = vrcp.f32 %v2828_v24  ;;  %v2829_v6 = vadd.f32 1.0, %v5191_v37  ;;  %7141 = vst [vmem:[#allocation37_spill] sm:$0xff] %v6548_v21  ;;  %v6555_v24 = vpop.f32.mrb[166].mxu0  ;;  %v6577_v50 = vadd.f32 %v6376_v44, %v6203_v42 }
 0x4dc   :  { %v5195_v26 = vpop.eup %5194  ;;  %5214 = vrcp.f32 %v2827_v39  ;;  %v2830_v45 = vadd.f32 1.0, %v5193_v8  ;;  %7142 = vst [vmem:[#allocation38_spill] sm:$0xff] %v6555_v24  ;;  %v6557_v37 = vpop.f32.mrb[103].mxu1  ;;  %v4207_v8 = vmul.f32 -1.442695, %v6534_v35  ;;  %v6568_v24 = vadd.f32 %v6370_v53, %v6197_v46 }
 0x4dd   :  { %v5197_v4 = vpop.eup %5196  ;;  %5216 = vrcp.f32 %v2829_v6  ;;  %v2832_v0 = vadd.f32 1.0, %v5195_v26  ;;  %7143 = vst [vmem:[#allocation39_spill] sm:$0xff] %v6557_v37  ;;  %v3671_v6 = vld [vmem:[#allocation10 + $0xa0] sm:$0xff]  ;;  %v3672_v26 = vld [vmem:[#allocation10 + $0xa8] sm:$0xff]  ;;  %v6564_v3 = vpop.f32.mrb[167].mxu0 }
 0x4de   :  { %v5199_v39 = vpop.eup %5198  ;;  %5218 = vrcp.f32 %v2830_v45  ;;  %v2831_v61 = vadd.f32 1.0, %v5197_v4  ;;  %7144 = vst [vmem:[#allocation40_spill] sm:$0xff] %v6564_v3  ;;  %v6572_v45 = vadd.f32 %v6372_v49, %v6199_v11  ;;  %v4539_v53 = vpack.c.bf16 %v3672_v26, %v3671_v6  ;;  %v6585_v57 = vpop.f32.mrb[104].mxu1 }
 0x4df   :  { %v5201_v21 = vpop.eup %5200  ;;  %5220 = vrcp.f32 %v2832_v0  ;;  %v2833_v1 = vadd.f32 1.0, %v5199_v39  ;;  %v4208_v39 = vmul.f32 -1.442695, %v6553_v63  ;;  %7145 = vst [vmem:[#allocation41_spill] sm:$0xff] %v6585_v57  ;;  %v6587_v44 = vpop.f32.mrb[168].mxu0 }
 0x4e0   :  { %v5203_v4 = vpop.eup %5202  ;;  %5222 = vrcp.f32 %v2831_v61  ;;  %v2834_v37 = vadd.f32 1.0, %v5201_v21  ;;  %v4210_v61 = vmul.f32 -1.442695, %v6562_v41  ;;  %v6583_v21 = vadd.f32 %v6378_v62, %v6205_v19  ;;  %7146 = vst [vmem:[#allocation42_spill] sm:$0xff] %v6587_v44  ;;  %4540 = vmatprep.subr.bf16.mxu1 %v4539_v53 }
 0x4e1   :  { %v5205_v3 = vpop.eup %5204  ;;  %5224 = vrcp.f32 %v2833_v1  ;;  %v2836_v0 = vadd.f32 1.0, %v5203_v4  ;;  %v4211_v6 = vmul.f32 -1.442695, %v6568_v24  ;;  %v4213_v26 = vmul.f32 -1.442695, %v6572_v45 }
 0x4e2   :  { %v5207_v43 = vpop.eup %5206  ;;  %5226 = vrcp.f32 %v2834_v37  ;;  %v2835_v49 = vadd.f32 1.0, %v5205_v3  ;;  %v6592_v3 = vpop.f32.mrb[105].mxu1  ;;  %v4212_v57 = vmul.f32 -1.442695, %v6577_v50  ;;  %v4541_v44 = vpack.c.bf16 %v3656_v58, %v3655_v12 }
 0x4e3   :  { %v5209_v1 = vpop.eup %5208  ;;  %v3207_v4 = vmul.f32 %v5207_v43, %v6382_v52  ;;  %5228 = vrcp.f32 %v2836_v0  ;;  %7147 = vst [vmem:[#allocation43_spill] sm:$0xff] %v6592_v3  ;;  %v6594_v37 = vpop.f32.mrb[169].mxu0  ;;  %v7150_v0 = vmax.f32 %v6486_v56, %v6495_v31  ;;  %v7153_v12 = vmax.f32 %v6490_v59, %v6503_v55  ;;  %v7154_v55 = vld [vmem:[#allocation23_spill] sm:$0xff] }
 0x4e4   :  { %7148 = vst [vmem:[#allocation44_spill] sm:$0xff] %v6594_v37  ;;  %v5211_v13 = vpop.eup %5210  ;;  %v3209_v62 = vmul.f32 %v5209_v1, %v6391_v18  ;;  %5230 = vrcp.f32 %v2835_v49  ;;  %v6598_v15 = vpop.f32.mrb[106].mxu1  ;;  %v6608_v37 = vadd.f32 %v6384_v20, %v6197_v46  ;;  %v4214_v56 = vmul.f32 -1.442695, %v6583_v21  ;;  %4542 = vmatpush3.bf16.msra.mxu1 %v4541_v44 }
 0x4e5   :  { %v6600_v52 = vpop.f32.mrb[170].mxu0  ;;  %v5213_v43 = vpop.eup %5212  ;;  %v3545_v53 = vmax.f32 %v7150_v0, %v3207_v4  ;;  %v3210_v3 = vmul.f32 %v5211_v13, %v6399_v9  ;;  %5232 = vpow2.f32 %v4206_v28  ;;  %v6623_v13 = vadd.f32 %v6386_v33, %v6199_v11 }
 0x4e6   :  { %7149 = vst [vmem:[#allocation45_spill] sm:$0xff] %v6600_v52  ;;  %v6610_v18 = vpop.f32.mrb[107].mxu1  ;;  %v6612_v49 = vpop.f32.mrb[171].mxu0  ;;  %v3619_v1 = vmax.f32 %v7153_v12, %v3209_v62  ;;  %v3212_v52 = vmul.f32 %v5213_v43, %v6403_v2  ;;  %5234 = vpow2.f32 %v4207_v8  ;;  %v7155_v2 = vld [vmem:[#allocation19_spill] sm:$0xff]  ;;  %v7157_v43 = vld [vmem:[#allocation26_spill] sm:$0xff] }
 0x4e7   :  { %7151 = vst [vmem:[#allocation46_spill] sm:$0xff] %v6610_v18  ;;  %7152 = vst [vmem:[#allocation47_spill] sm:$0xff] %v6612_v49  ;;  %v5215_v58 = vpop.eup %5214  ;;  %v3509_v31 = vmax.f32 %v6524_v38, %v3210_v3  ;;  %5236 = vpow2.f32 %v4209_v54  ;;  %v6629_v8 = vadd.f32 %v7155_v2, %v6203_v42  ;;  %v6640_v0 = vpop.f32.mrb[172].mxu0 }
 0x4e8   :  { %v5217_v9 = vpop.eup %5216  ;;  %v3211_v20 = vmul.f32 %v5215_v58, %v6411_v7  ;;  %v3583_v59 = vmax.f32 %v6526_v32, %v3212_v52  ;;  %5238 = vpow2.f32 %v4208_v39  ;;  %v7156_v7 = vld [vmem:[#allocation20_spill] sm:$0xff]  ;;  %v4215_v39 = vmul.f32 -1.442695, %v6608_v37  ;;  %v6638_v52 = vpop.f32.mrb[108].mxu1  ;;  %7159 = vst [vmem:[#allocation19_spill] sm:$0xff] %v6640_v0 }
 0x4e9   :  { %v5219_v28 = vpop.eup %5218  ;;  %v3213_v4 = vmul.f32 %v5217_v9, %v7154_v55  ;;  %5240 = vpow2.f32 %v4210_v61  ;;  %v6634_v54 = vadd.f32 %v7156_v7, %v6205_v19  ;;  %7158 = vst [vmem:[#allocation23_spill] sm:$0xff] %v6638_v52  ;;  %v4217_v61 = vmul.f32 -1.442695, %v6623_v13  ;;  %v6646_v12 = vpop.f32.mrb[109].mxu1 }
 0x4ea   :  { %v5221_v44 = vpop.eup %5220  ;;  %v3546_v62 = vmax.f32 %v3545_v53, %v3211_v20  ;;  %v3214_v38 = vmul.f32 %v5219_v28, %v6423_v22  ;;  %5242 = vpow2.f32 %v4211_v6  ;;  %7160 = vst [vmem:[#allocation20_spill] sm:$0xff] %v6646_v12  ;;  %v4216_v28 = vmul.f32 -1.442695, %v6629_v8  ;;  %v6654_v55 = vpop.f32.mrb[110].mxu1 }
 0x4eb   :  { %v5223_v33 = vpop.eup %5222  ;;  %v3620_v3 = vmax.f32 %v3619_v1, %v3213_v4  ;;  %v3216_v32 = vmul.f32 %v5221_v44, %v7157_v43  ;;  %5244 = vpow2.f32 %v4213_v26  ;;  %v6648_v1 = vpop.f32.mrb[173].mxu0  ;;  %7162 = vst [vmem:[#allocation48_spill] sm:$0xff] %v6654_v55  ;;  %v4218_v2 = vmul.f32 -1.442695, %v6634_v54 }
 0x4ec   :  { %v5225_v58 = vpop.eup %5224  ;;  %v6642_v53 = vmax.f32 %v3509_v31, %v3214_v38  ;;  %v3215_v22 = vmul.f32 %v5223_v33, %v6432_v14  ;;  %7161 = vst [vmem:[#allocation26_spill] sm:$0xff] %v6648_v1  ;;  %5246 = vpow2.f32 %v4212_v57  ;;  %v6656_v31 = vpop.f32.mrb[174].mxu0  ;;  %v6724_v55 = vadd.f32 %v6449_v30, %v6203_v42 }
 0x4ed   :  { %v5227_v9 = vpop.eup %5226  ;;  %v6650_v6 = vmax.f32 %v3583_v59, %v3216_v32  ;;  %v3217_v20 = vmul.f32 %v5225_v58, %v6457_v27  ;;  %7163 = vst [vmem:[#allocation49_spill] sm:$0xff] %v6656_v31  ;;  %5248 = vpow2.f32 %v4214_v56  ;;  %v6664_v59 = vpop.f32.mrb[111].mxu1  ;;  %v3658_v31 = vld [vmem:[#allocation10 + $0x38] sm:$0xff] }
 0x4ee   :  { %v5229_v14 = vpop.eup %5228  ;;  %v6658_v26 = vmax.f32 %v3546_v62, %v3215_v22  ;;  %v6661_v4 = vmul.f32 %v5227_v9, %v6467_v51  ;;  %7164 = vst [vmem:[#allocation50_spill] sm:$0xff] %v6664_v59  ;;  %v6666_v44 = vpop.f32.mrb[175].mxu0  ;;  %5250 = vpow2.f32 %v4215_v39  ;;  %v7166_v39 = vld [vmem:[#allocation21_spill] sm:$0xff] }
 0x4ef   :  { %7165 = vst [vmem:[#allocation51_spill] sm:$0xff] %v6666_v44  ;;  %v5231_v27 = vpop.eup %5230  ;;  %v6668_v57 = vmax.f32 %v3620_v3, %v3217_v20  ;;  %v6671_v38 = vmul.f32 %v5229_v14, %v6479_v60  ;;  %5252 = vpow2.f32 %v4217_v61  ;;  %v6684_v58 = vadd.f32 %v7166_v39, %v6197_v46  ;;  %v7167_v61 = vld [vmem:[#allocation22_spill] sm:$0xff]  ;;  %v6690_v20 = vpop.f32.mrb[112].mxu1  ;;  %v3673_v44 = vld [vmem:[#allocation10 + $0xb0] sm:$0xff] }
 0x4f0   :  { %v5233_v7 = vpop.eup %5232  ;;  %v6676_v51 = vmul.f32 %v5231_v27, %v6484_v5  ;;  %5254 = vpow2.f32 %v4216_v28  ;;  %v6688_v9 = vadd.f32 %v7167_v61, %v6199_v11  ;;  %7168 = vst [vmem:[#allocation21_spill] sm:$0xff] %v6690_v20  ;;  %v6692_v28 = vpop.f32.mrb[176].mxu0  ;;  %v7173_v61 = vld [vmem:[#allocation25_spill] sm:$0xff] }
 0x4f1   :  { %v5235_v56 = vpop.eup %5234  ;;  %v2837_v43 = vadd.f32 1.0, %v5233_v7  ;;  %5256 = vpow2.f32 %v4218_v2  ;;  %7169 = vst [vmem:[#allocation22_spill] sm:$0xff] %v6692_v28  ;;  %v7170_v2 = vld [vmem:[#allocation24_spill] sm:$0xff]  ;;  %v6700_v39 = vpop.f32.mrb[177].mxu0  ;;  %v6704_v60 = vadd.f32 %v7173_v61, %v6205_v19 }
 0x4f2   :  { %v5237_v3 = vpop.eup %5236  ;;  %v2838_v32 = vadd.f32 1.0, %v5235_v56  ;;  %v6696_v7 = vadd.f32 %v7170_v2, %v6203_v42  ;;  %v6698_v56 = vpop.f32.mrb[113].mxu1  ;;  %7172 = vst [vmem:[#allocation52_spill] sm:$0xff] %v6700_v39  ;;  %v6710_v39 = vmul.f32 -1.442695, %v6688_v9 }
 0x4f3   :  { %v5239_v22 = vpop.eup %5238  ;;  %5258 = vrcp.f32 %v2837_v43  ;;  %v2840_v5 = vadd.f32 1.0, %v5237_v3  ;;  %7171 = vst [vmem:[#allocation24_spill] sm:$0xff] %v6698_v56  ;;  %v2186_v33 = vpop.f32.mrb[114].mxu1 }
 0x4f4   :  { %v5241_v14 = vpop.eup %5240  ;;  %5260 = vrcp.f32 %v2838_v32  ;;  %v2839_v27 = vadd.f32 1.0, %v5239_v22  ;;  %v6707_v22 = vmul.f32 -1.442695, %v6684_v58  ;;  %v2379_v2 = vpop.f32.mrb[178].mxu0  ;;  %v4220_v33 = vmul.f32 -1.442695, %v6696_v7 }
 0x4f5   :  { %v5243_v43 = vpop.eup %5242  ;;  %5262 = vrcp.f32 %v2840_v5  ;;  %v2841_v3 = vadd.f32 1.0, %v5241_v14  ;;  %v2188_v5 = vpop.f32.mrb[115].mxu1  ;;  %v4222_v2 = vmul.f32 -1.442695, %v6704_v60 }
 0x4f6   :  { %v5245_v62 = vpop.eup %5244  ;;  %5264 = vrcp.f32 %v2839_v27  ;;  %v2842_v32 = vadd.f32 1.0, %v5243_v43  ;;  %v2381_v14 = vpop.f32.mrb[179].mxu0  ;;  %v3674_v27 = vld [vmem:[#allocation10 + $0xb8] sm:$0xff] }
 0x4f7   :  { %v5247_v28 = vpop.eup %5246  ;;  %5266 = vrcp.f32 %v2841_v3  ;;  %v2844_v56 = vadd.f32 1.0, %v5245_v62  ;;  %v6716_v62 = vadd.f32 %v6442_v23, %v6197_v46  ;;  %v3657_v3 = vld [vmem:[#allocation10 + $0x30] sm:$0xff]  ;;  %v6728_v23 = vadd.f32 %v6451_v48, %v6205_v19  ;;  %v2192_v12 = vpop.f32.mrb[116].mxu1 }
 0x4f8   :  { %v5249_v20 = vpop.eup %5248  ;;  %5268 = vrcp.f32 %v2842_v32  ;;  %v2843_v61 = vadd.f32 1.0, %v5247_v28  ;;  %v7174_v28 = vld [vmem:[#allocation27_spill] sm:$0xff]  ;;  %v4543_v1 = vpack.c.bf16 %v3674_v27, %v3673_v44  ;;  %v2385_v0 = vpop.f32.mrb[180].mxu0  ;;  %v4545_v52 = vpack.c.bf16 %v3658_v31, %v3657_v3 }
 0x4f9   :  { %v5251_v43 = vpop.eup %5250  ;;  %5270 = vrcp.f32 %v2844_v56  ;;  %v2845_v59 = vadd.f32 1.0, %v5249_v20  ;;  %v6720_v32 = vadd.f32 %v7174_v28, %v6199_v11  ;;  %v6732_v28 = vadd.f32 %v6459_v34, %v6197_v46  ;;  %v2194_v30 = vpop.f32.mrb[117].mxu1  ;;  %v7175_v34 = vld [vmem:[#allocation28_spill] sm:$0xff] }
 0x4fa   :  { %v5253_v5 = vpop.eup %5252  ;;  %5272 = vrcp.f32 %v2843_v61  ;;  %v2846_v14 = vadd.f32 1.0, %v5251_v43  ;;  %v2387_v49 = vpop.f32.mrb[181].mxu0  ;;  %4544 = vmatprep.subr.bf16.mxu1 %v4543_v1  ;;  %v4224_v1 = vmul.f32 -1.442695, %v6724_v55  ;;  %v7176_v30 = vmax.f32 %v6642_v53, %v6661_v4 }
 0x4fb   :  { %v5255_v20 = vpop.eup %5254  ;;  %5274 = vrcp.f32 %v2845_v59  ;;  %v2848_v56 = vadd.f32 1.0, %v5253_v5  ;;  %v4223_v5 = vmul.f32 -1.442695, %v6716_v62  ;;  %v2196_v48 = vpop.f32.mrb[118].mxu1  ;;  %v4225_v27 = vmul.f32 -1.442695, %v6720_v32  ;;  %4546 = vmatpush3.bf16.msra.mxu1 %v4545_v52 }
 0x4fc   :  { %v5257_v61 = vpop.eup %5256  ;;  %5276 = vrcp.f32 %v2846_v14  ;;  %v2847_v43 = vadd.f32 1.0, %v5255_v20  ;;  %v2389_v44 = vpop.f32.mrb[182].mxu0  ;;  %v6739_v14 = vadd.f32 %v7175_v34, %v6199_v11 }
 0x4fd   :  { %v5259_v18 = vpop.eup %5258  ;;  %5278 = vrcp.f32 %v2848_v56  ;;  %v2849_v59 = vadd.f32 1.0, %v5257_v61  ;;  %v2198_v49 = vpop.f32.mrb[119].mxu1  ;;  %v4226_v56 = vmul.f32 -1.442695, %v6728_v23 }
 0x4fe   :  { %v5261_v12 = vpop.eup %5260  ;;  %v3221_v0 = vmul.f32 %v5259_v18, %v6530_v25  ;;  %5280 = vrcp.f32 %v2847_v43  ;;  %v2391_v31 = vpop.f32.mrb[183].mxu0  ;;  %v4227_v43 = vmul.f32 -1.442695, %v6732_v28 }
 0x4ff   :  { %v5263_v3 = vpop.eup %5262  ;;  %v3222_v20 = vmul.f32 %v5261_v12, %v6534_v35  ;;  %5282 = vrcp.f32 %v2849_v59  ;;  %v6755_v59 = vadd.f32 %v6469_v47, %v6203_v42  ;;  %v4229_v12 = vmul.f32 -1.442695, %v6739_v14  ;;  %v7179_v47 = vld [vmem:[#allocation29_spill] sm:$0xff]  ;;  %v2202_v34 = vpop.f32.mrb[120].mxu1 }
 0x500   :  { %v5265_v61 = vpop.eup %5264  ;;  %v3622_v25 = vmax.f32 %v6668_v57, %v3221_v0  ;;  %v3224_v18 = vmul.f32 %v5263_v3, %v6544_v40  ;;  %5284 = vpow2.f32 %v6707_v22  ;;  %v7177_v40 = vmax.f32 %v6650_v6, %v6671_v38  ;;  %v2395_v6 = vpop.f32.mrb[184].mxu0 }
 0x501   :  { %v5267_v52 = vpop.eup %5266  ;;  %v3512_v48 = vmax.f32 %v7176_v30, %v3222_v20  ;;  %v3223_v35 = vmul.f32 %v5265_v61, %v6553_v63  ;;  %5286 = vpow2.f32 %v6710_v39  ;;  %v7178_v63 = vmax.f32 %v6658_v26, %v6676_v51  ;;  %v2204_v26 = vpop.f32.mrb[121].mxu1 }
 0x502   :  { %v5269_v57 = vpop.eup %5268  ;;  %v3586_v22 = vmax.f32 %v7177_v40, %v3224_v18  ;;  %v3225_v44 = vmul.f32 %v5267_v52, %v6562_v41  ;;  %5288 = vpow2.f32 %v4220_v33  ;;  %v6768_v0 = vadd.f32 %v7179_v47, %v6205_v19  ;;  %v2397_v3 = vpop.f32.mrb[185].mxu0 }
 0x503   :  { %v5271_v53 = vpop.eup %5270  ;;  %v3549_v4 = vmax.f32 %v7178_v63, %v3223_v35  ;;  %v3226_v39 = vmul.f32 %v5269_v57, %v6568_v24  ;;  %5290 = vpow2.f32 %v4222_v2  ;;  %v6773_v33 = vadd.f32 %v6498_v10, %v6197_v46  ;;  %v2206_v20 = vpop.f32.mrb[122].mxu1 }
 0x504   :  { %v5273_v38 = vpop.eup %5272  ;;  %v3623_v49 = vmax.f32 %v3622_v25, %v3225_v44  ;;  %v3228_v41 = vmul.f32 %v5271_v53, %v6572_v45  ;;  %5292 = vpow2.f32 %v4223_v5  ;;  %v4228_v2 = vmul.f32 -1.442695, %v6755_v59  ;;  %v2399_v10 = vpop.f32.mrb[186].mxu0 }
 0x505   :  { %v5275_v51 = vpop.eup %5274  ;;  %v3513_v31 = vmax.f32 %v3512_v48, %v3226_v39  ;;  %v3227_v24 = vmul.f32 %v5273_v38, %v6577_v50  ;;  %5294 = vpow2.f32 %v4225_v27  ;;  %v6780_v45 = vadd.f32 %v6500_v29, %v6199_v11  ;;  %v2208_v5 = vpop.f32.mrb[123].mxu1 }
 0x506   :  { %v5277_v61 = vpop.eup %5276  ;;  %v3587_v18 = vmax.f32 %v3586_v22, %v3228_v41  ;;  %v3229_v25 = vmul.f32 %v5275_v51, %v6583_v21  ;;  %5296 = vpow2.f32 %v4224_v1  ;;  %v4230_v27 = vmul.f32 -1.442695, %v6768_v0  ;;  %v2401_v48 = vpop.f32.mrb[187].mxu0 }
 0x507   :  { %v5279_v52 = vpop.eup %5278  ;;  %v3550_v30 = vmax.f32 %v3549_v4, %v3227_v24  ;;  %v3230_v50 = vmul.f32 %v5277_v61, %v6608_v37  ;;  %5298 = vpow2.f32 %v4226_v56  ;;  %v4231_v21 = vmul.f32 -1.442695, %v6773_v33  ;;  %v3675_v24 = vld [vmem:[#allocation10 + $0xc0] sm:$0xff]  ;;  %v3676_v61 = vld [vmem:[#allocation10 + $0xc8] sm:$0xff] }
 0x508   :  { %v5281_v35 = vpop.eup %5280  ;;  %v3624_v57 = vmax.f32 %v3623_v49, %v3229_v25  ;;  %v3232_v40 = vmul.f32 %v5279_v52, %v6623_v13  ;;  %5300 = vpow2.f32 %v4227_v43  ;;  %v6791_v37 = vadd.f32 %v6506_v16, %v6203_v42  ;;  %v3660_v25 = vld [vmem:[#allocation10 + $0x48] sm:$0xff] }
 0x509   :  { %v5283_v1 = vpop.eup %5282  ;;  %v6786_v29 = vmax.f32 %v3513_v31, %v3230_v50  ;;  %v3231_v22 = vmul.f32 %v5281_v35, %v6629_v8  ;;  %5302 = vpow2.f32 %v4229_v12  ;;  %v6798_v13 = vadd.f32 %v6508_v36, %v6205_v19  ;;  %v2212_v8 = vpop.f32.mrb[124].mxu1  ;;  %v3677_v35 = vld [vmem:[#allocation10 + $0xd0] sm:$0xff] }
 0x50a   :  { %v5285_v56 = vpop.eup %5284  ;;  %v6793_v44 = vmax.f32 %v3587_v18, %v3232_v40  ;;  %v3233_v53 = vmul.f32 %v5283_v1, %v6634_v54  ;;  %5304 = vpow2.f32 %v4228_v2  ;;  %v2405_v12 = vpop.f32.mrb[188].mxu0  ;;  %v6806_v54 = vadd.f32 %v6513_v17, %v6197_v46  ;;  %v3659_v18 = vld [vmem:[#allocation10 + $0x40] sm:$0xff] }
 0x50b   :  { %v5287_v43 = vpop.eup %5286  ;;  %v6800_v63 = vmax.f32 %v3550_v30, %v3231_v22  ;;  %v2850_v4 = vadd.f32 1.0, %v5285_v56  ;;  %5306 = vpow2.f32 %v4230_v27  ;;  %v2214_v34 = vpop.f32.mrb[125].mxu1  ;;  %v6809_v38 = vmul.f32 -1.442695, %v6780_v45  ;;  %v7180_v27 = vld [vmem:[#allocation30_spill] sm:$0xff]  ;;  %v7181_v1 = vld [vmem:[#allocation31_spill] sm:$0xff] }
 0x50c   :  { %v5289_v39 = vpop.eup %5288  ;;  %v6802_v16 = vmax.f32 %v3624_v57, %v3233_v53  ;;  %v2852_v47 = vadd.f32 1.0, %v5287_v43  ;;  %5308 = vpow2.f32 %v4231_v21  ;;  %v6812_v49 = vmul.f32 -1.442695, %v6791_v37  ;;  %v2407_v41 = vpop.f32.mrb[189].mxu0  ;;  %v3678_v57 = vld [vmem:[#allocation10 + $0xd8] sm:$0xff]  ;;  %v7182_v56 = vld [vmem:[#allocation32_spill] sm:$0xff] }
 0x50d   :  { %v5291_v6 = vpop.eup %5290  ;;  %5310 = vrcp.f32 %v2850_v4  ;;  %v2851_v36 = vadd.f32 1.0, %v5289_v39  ;;  %v6815_v31 = vmul.f32 -1.442695, %v6798_v13  ;;  %v2216_v17 = vpop.f32.mrb[126].mxu1  ;;  %v6818_v50 = vmul.f32 -1.442695, %v6806_v54 }
 0x50e   :  { %v5293_v26 = vpop.eup %5292  ;;  %5312 = vrcp.f32 %v2852_v47  ;;  %v2853_v51 = vadd.f32 1.0, %v5291_v6  ;;  %v2409_v2 = vpop.f32.mrb[190].mxu0  ;;  %v6822_v48 = vadd.f32 %v7180_v27, %v6199_v11  ;;  %v6826_v22 = vadd.f32 %v7181_v1, %v6203_v42  ;;  %v3661_v39 = vld [vmem:[#allocation10 + $0x50] sm:$0xff]  ;;  %v3662_v47 = vld [vmem:[#allocation10 + $0x58] sm:$0xff]  ;;  %v3680_v17 = vld [vmem:[#allocation10 + $0xe8] sm:$0xff] }
 0x50f   :  { %v5295_v3 = vpop.eup %5294  ;;  %5314 = vrcp.f32 %v2851_v36  ;;  %v2854_v20 = vadd.f32 1.0, %v5293_v26  ;;  %v2218_v10 = vpop.f32.mrb[127].mxu1  ;;  %v6830_v53 = vadd.f32 %v7182_v56, %v6205_v19  ;;  %v4547_v8 = vpack.c.bf16 %v3676_v61, %v3675_v24  ;;  %v7183_v36 = vld [vmem:[#allocation33_spill] sm:$0xff]  ;;  %v7184_v24 = vld [vmem:[#allocation34_spill] sm:$0xff] }
 0x510   :  { %v2411_v5 = vpop.f32.mrb[191].mxu0  ;;  %v5297_v52 = vpop.eup %5296  ;;  %5316 = vrcp.f32 %v2853_v51  ;;  %v2856_v30 = vadd.f32 1.0, %v5295_v3  ;;  %v4549_v12 = vpack.c.bf16 %v3660_v25, %v3659_v18  ;;  %v6834_v41 = vadd.f32 %v7183_v36, %v6197_v46  ;;  %v3679_v51 = vld [vmem:[#allocation10 + $0xe0] sm:$0xff] }
 0x511   :  { %v5299_v40 = vpop.eup %5298  ;;  %5318 = vrcp.f32 %v2854_v20  ;;  %v2855_v21 = vadd.f32 1.0, %v5297_v52  ;;  %v4551_v26 = vpack.c.bf16 %v3678_v57, %v3677_v35  ;;  %v6837_v20 = vmul.f32 -1.442695, %v6822_v48  ;;  %4548 = vmatprep.subr.bf16.mxu1 %v4547_v8  ;;  %v3663_v57 = vld [vmem:[#allocation10 + $0x60] sm:$0xff] }
 0x512   :  { %v5301_v43 = vpop.eup %5300  ;;  %5320 = vrcp.f32 %v2856_v30  ;;  %v2857_v4 = vadd.f32 1.0, %v5299_v40  ;;  %v6841_v61 = vadd.f32 %v7184_v24, %v6199_v11  ;;  %v6844_v10 = vmul.f32 -1.442695, %v6826_v22  ;;  %4550 = vmatpush3.bf16.msra.mxu1 %v4549_v12  ;;  %v3664_v40 = vld [vmem:[#allocation10 + $0x68] sm:$0xff] }
 0x513   :  { %v5303_v34 = vpop.eup %5302  ;;  %5322 = vrcp.f32 %v2855_v21  ;;  %v2858_v6 = vadd.f32 1.0, %v5301_v43  ;;  %v4553_v5 = vpack.c.bf16 %v3662_v47, %v3661_v39  ;;  %v4238_v27 = vmul.f32 -1.442695, %v6830_v53  ;;  %4552 = vmatprep.subr.bf16.mxu1 %v4551_v26  ;;  %v3681_v43 = vld [vmem:[#allocation10 + $0xf0] sm:$0xff]  ;;  %v7185_v47 = vld [vmem:[#allocation35_spill] sm:$0xff] }
 0x514   :  { %v5305_v2 = vpop.eup %5304  ;;  %5324 = vrcp.f32 %v2857_v4  ;;  %v2860_v3 = vadd.f32 1.0, %v5303_v34  ;;  %v4555_v35 = vpack.c.bf16 %v3680_v17, %v3679_v51  ;;  %v4239_v56 = vmul.f32 -1.442695, %v6834_v41  ;;  %v3682_v4 = vld [vmem:[#allocation10 + $0xf8] sm:$0xff]  ;;  %v7186_v26 = vld [vmem:[#allocation36_spill] sm:$0xff] }
 0x515   :  { %v5307_v18 = vpop.eup %5306  ;;  %5326 = vrcp.f32 %v2858_v6  ;;  %v2859_v25 = vadd.f32 1.0, %v5305_v2  ;;  %v4241_v39 = vmul.f32 -1.442695, %v6841_v61  ;;  %v6852_v34 = vadd.f32 %v7185_v47, %v6203_v42 }
 0x516   :  { %v5309_v52 = vpop.eup %5308  ;;  %5328 = vrcp.f32 %v2860_v3  ;;  %v2861_v30 = vadd.f32 1.0, %v5307_v18  ;;  %v6857_v51 = vadd.f32 %v7186_v26, %v6205_v19  ;;  %4554 = vmatpush3.bf16.msra.mxu1 %v4553_v5  ;;  %v4557_v17 = vpack.c.bf16 %v3664_v40, %v3663_v57  ;;  %v3665_v18 = vld [vmem:[#allocation10 + $0x70] sm:$0xff]  ;;  %v3700_v40 = vld [vmem:[#allocation10 + $0x188] sm:$0xff] }
 0x517   :  { %v5311_v21 = vpop.eup %5310  ;;  %5330 = vrcp.f32 %v2859_v25  ;;  %v2862_v1 = vadd.f32 1.0, %v5309_v52  ;;  %4556 = vmatprep.subr.bf16.mxu1 %v4555_v35  ;;  %v4559_v24 = vpack.c.bf16 %v3682_v4, %v3681_v43  ;;  %v3666_v25 = vld [vmem:[#allocation10 + $0x78] sm:$0xff] }
 0x518   :  { %v5313_v8 = vpop.eup %5312  ;;  %v3234_v12 = vmul.f32 %v5311_v21, %v6684_v58  ;;  %5332 = vrcp.f32 %v2861_v30  ;;  %v7187_v5 = vld [vmem:[#allocation37_spill] sm:$0xff]  ;;  %v7188_v21 = vld [vmem:[#allocation38_spill] sm:$0xff]  ;;  %v4561_v43 = vpack.c.bf16 %v3666_v25, %v3665_v18 }
 0x519   :  { %v5315_v6 = vpop.eup %5314  ;;  %v3236_v36 = vmul.f32 %v5313_v8, %v6688_v9  ;;  %5334 = vrcp.f32 %v2862_v1  ;;  %v6867_v57 = vadd.f32 %v7187_v5, %v6197_v46 }
 0x51a   :  { %v5317_v2 = vpop.eup %5316  ;;  %v3515_v58 = vmax.f32 %v6786_v29, %v3234_v12  ;;  %v3235_v3 = vmul.f32 %v5315_v6, %v6696_v7  ;;  %5336 = vpow2.f32 %v6809_v38  ;;  %v3699_v29 = vld [vmem:[#allocation10 + $0x180] sm:$0xff]  ;;  %4558 = vmatpush3.bf16.msra.mxu1 %v4557_v17 }
 0x51b   :  { %v5319_v52 = vpop.eup %5318  ;;  %v3589_v9 = vmax.f32 %v6793_v44, %v3236_v36  ;;  %v3237_v30 = vmul.f32 %v5317_v2, %v6704_v60  ;;  %5338 = vpow2.f32 %v6812_v49  ;;  %v6874_v44 = vadd.f32 %v7188_v21, %v6199_v11  ;;  %4560 = vmatprep.subr.bf16.mxu1 %v4559_v24 }
 0x51c   :  { %v5321_v7 = vpop.eup %5320  ;;  %v3552_v38 = vmax.f32 %v6800_v63, %v3235_v3  ;;  %v3238_v35 = vmul.f32 %v5319_v52, %v6716_v62  ;;  %5340 = vpow2.f32 %v6815_v31  ;;  %v4563_v62 = vpack.c.bf16 %v3700_v40, %v3699_v29 }
 0x51d   :  { %v5323_v60 = vpop.eup %5322  ;;  %v3626_v49 = vmax.f32 %v6802_v16, %v3237_v30  ;;  %v3240_v1 = vmul.f32 %v5321_v7, %v6720_v32  ;;  %5342 = vpow2.f32 %v6818_v50  ;;  %v4240_v32 = vmul.f32 -1.442695, %v6852_v34  ;;  %v7189_v7 = vld [vmem:[#allocation39_spill] sm:$0xff] }
 0x51e   :  { %v5325_v4 = vpop.eup %5324  ;;  %v3516_v8 = vmax.f32 %v3515_v58, %v3238_v35  ;;  %v3239_v63 = vmul.f32 %v5323_v60, %v6724_v55  ;;  %5344 = vpow2.f32 %v6837_v20  ;;  %v4242_v55 = vmul.f32 -1.442695, %v6857_v51  ;;  %4562 = vmatpush3.bf16.msra.mxu1 %v4561_v43 }
 0x51f   :  { %v5327_v31 = vpop.eup %5326  ;;  %v6881_v12 = vmax.f32 %v3589_v9, %v3240_v1  ;;  %v3241_v47 = vmul.f32 %v5325_v4, %v6728_v23  ;;  %5346 = vpow2.f32 %v6844_v10  ;;  %v4243_v23 = vmul.f32 -1.442695, %v6867_v57  ;;  %4564 = vmatprep.subr.bf16.mxu1 %v4563_v62  ;;  %v7190_v4 = vld [vmem:[#allocation40_spill] sm:$0xff] }
 0x520   :  { %v5329_v16 = vpop.eup %5328  ;;  %v6886_v50 = vmax.f32 %v3552_v38, %v3239_v63  ;;  %v3242_v6 = vmul.f32 %v5327_v31, %v6732_v28  ;;  %5348 = vpow2.f32 %v4238_v27  ;;  %v4245_v28 = vmul.f32 -1.442695, %v6874_v44  ;;  %v7191_v63 = vld [vmem:[#allocation41_spill] sm:$0xff] }
 0x521   :  { %v5331_v20 = vpop.eup %5330  ;;  %v6890_v36 = vmax.f32 %v3626_v49, %v3241_v47  ;;  %v6893_v26 = vmul.f32 %v5329_v16, %v6739_v14  ;;  %5350 = vpow2.f32 %v4239_v56  ;;  %v6914_v38 = vadd.f32 %v7189_v7, %v6203_v42  ;;  %v7192_v16 = vld [vmem:[#allocation42_spill] sm:$0xff] }
 0x522   :  { %v5333_v10 = vpop.eup %5332  ;;  %v3517_v17 = vmax.f32 %v3516_v8, %v3242_v6  ;;  %v6897_v2 = vmul.f32 %v5331_v20, %v6755_v59  ;;  %5352 = vpow2.f32 %v4241_v39  ;;  %v6918_v8 = vadd.f32 %v7190_v4, %v6205_v19 }
 0x523   :  { %v5335_v27 = vpop.eup %5334  ;;  %v3591_v58 = vmax.f32 %v6881_v12, %v6893_v26  ;;  %v6903_v14 = vmul.f32 %v5333_v10, %v6768_v0  ;;  %5354 = vpow2.f32 %v4240_v32  ;;  %v6922_v62 = vadd.f32 %v7191_v63, %v6197_v46  ;;  %v7198_v26 = vld [vmem:[#allocation23_spill] sm:$0xff] }
 0x524   :  { %v5337_v56 = vpop.eup %5336  ;;  %v3554_v3 = vmax.f32 %v6886_v50, %v6897_v2  ;;  %v3246_v24 = vmul.f32 %v5335_v27, %v6773_v33  ;;  %5356 = vpow2.f32 %v4242_v55  ;;  %v4244_v32 = vmul.f32 -1.442695, %v6914_v38  ;;  %v7199_v2 = vld [vmem:[#allocation19_spill] sm:$0xff] }
 0x525   :  { %v5339_v59 = vpop.eup %5338  ;;  %v3628_v39 = vmax.f32 %v6890_v36, %v6903_v14  ;;  %v2864_v18 = vadd.f32 1.0, %v5337_v56  ;;  %5358 = vpow2.f32 %v4243_v23  ;;  %v6927_v6 = vadd.f32 %v7192_v16, %v6199_v11  ;;  %v7193_v23 = vld [vmem:[#allocation43_spill] sm:$0xff] }
 0x526   :  { %v5341_v25 = vpop.eup %5340  ;;  %v6910_v52 = vmax.f32 %v3517_v17, %v3246_v24  ;;  %v2863_v9 = vadd.f32 1.0, %v5339_v59  ;;  %5360 = vpow2.f32 %v4245_v28  ;;  %v6931_v10 = vadd.f32 %v7193_v23, %v6203_v42  ;;  %v7194_v17 = vld [vmem:[#allocation44_spill] sm:$0xff]  ;;  %v7195_v59 = vld [vmem:[#allocation45_spill] sm:$0xff] }
 0x527   :  { %v5343_v0 = vpop.eup %5342  ;;  %5362 = vrcp.f32 %v2864_v18  ;;  %v2865_v30 = vadd.f32 1.0, %v5341_v25  ;;  %v6935_v28 = vadd.f32 %v7194_v17, %v6205_v19  ;;  %v6939_v24 = vadd.f32 %v6598_v15, %v6197_v46 }
 0x528   :  { %v5345_v5 = vpop.eup %5344  ;;  %5364 = vrcp.f32 %v2863_v9  ;;  %v2866_v29 = vadd.f32 1.0, %v5343_v0  ;;  %v6943_v18 = vadd.f32 %v7195_v59, %v6199_v11  ;;  %v4246_v0 = vmul.f32 -1.442695, %v6918_v8 }
 0x529   :  { %v5347_v40 = vpop.eup %5346  ;;  %5366 = vrcp.f32 %v2865_v30  ;;  %v2868_v33 = vadd.f32 1.0, %v5345_v5  ;;  %v4247_v30 = vmul.f32 -1.442695, %v6922_v62 }
 0x52a   :  { %v5349_v35 = vpop.eup %5348  ;;  %5368 = vrcp.f32 %v2866_v29  ;;  %v2867_v21 = vadd.f32 1.0, %v5347_v40  ;;  %v4249_v40 = vmul.f32 -1.442695, %v6927_v6  ;;  %v4253_v4 = vmul.f32 -1.442695, %v6943_v18 }
 0x52b   :  { %v5351_v60 = vpop.eup %5350  ;;  %5370 = vrcp.f32 %v2868_v33  ;;  %v2869_v49 = vadd.f32 1.0, %v5349_v35  ;;  %v7196_v33 = vld [vmem:[#allocation46_spill] sm:$0xff] }
 0x52c   :  { %v5353_v1 = vpop.eup %5352  ;;  %5372 = vrcp.f32 %v2867_v21  ;;  %v2870_v43 = vadd.f32 1.0, %v5351_v60  ;;  %v6950_v15 = vadd.f32 %v7196_v33, %v6203_v42  ;;  %v4248_v21 = vmul.f32 -1.442695, %v6931_v10 }
 0x52d   :  { %v5355_v31 = vpop.eup %5354  ;;  %5374 = vrcp.f32 %v2869_v49  ;;  %v2872_v47 = vadd.f32 1.0, %v5353_v1  ;;  %v4250_v60 = vmul.f32 -1.442695, %v6935_v28 }
 0x52e   :  { %v5357_v55 = vpop.eup %5356  ;;  %5376 = vrcp.f32 %v2870_v43  ;;  %v2871_v20 = vadd.f32 1.0, %v5355_v31  ;;  %v4251_v43 = vmul.f32 -1.442695, %v6939_v24  ;;  %v4252_v23 = vmul.f32 -1.442695, %v6950_v15 }
 0x52f   :  { %v5359_v27 = vpop.eup %5358  ;;  %5378 = vrcp.f32 %v2872_v47  ;;  %v2873_v56 = vadd.f32 1.0, %v5357_v55  ;;  %v7197_v47 = vld [vmem:[#allocation47_spill] sm:$0xff] }
 0x530   :  { %v5361_v25 = vpop.eup %5360  ;;  %5380 = vrcp.f32 %v2871_v20  ;;  %v2874_v9 = vadd.f32 1.0, %v5359_v27  ;;  %v6964_v16 = vadd.f32 %v7197_v47, %v6205_v19 }
 0x531   :  { %v5363_v5 = vpop.eup %5362  ;;  %5382 = vrcp.f32 %v2873_v56  ;;  %v2876_v29 = vadd.f32 1.0, %v5361_v25 }
 0x532   :  { %v5365_v7 = vpop.eup %5364  ;;  %v3248_v35 = vmul.f32 %v5363_v5, %v6780_v45  ;;  %5384 = vrcp.f32 %v2874_v9 }
 0x533   :  { %v5367_v49 = vpop.eup %5366  ;;  %v3247_v1 = vmul.f32 %v5365_v7, %v6791_v37  ;;  %5386 = vrcp.f32 %v2876_v29 }
 0x534   :  { %v5369_v63 = vpop.eup %5368  ;;  %v3592_v31 = vmax.f32 %v3591_v58, %v3248_v35  ;;  %v3249_v45 = vmul.f32 %v5367_v49, %v6798_v13  ;;  %5388 = vpow2.f32 %v4244_v32  ;;  %v6977_v58 = vadd.f32 %v7198_v26, %v6197_v46 }
 0x535   :  { %v5371_v55 = vpop.eup %5370  ;;  %v3555_v37 = vmax.f32 %v3554_v3, %v3247_v1  ;;  %v3250_v20 = vmul.f32 %v5369_v63, %v6806_v54  ;;  %5390 = vpow2.f32 %v4246_v0  ;;  %v6983_v3 = vadd.f32 %v7199_v2, %v6199_v11  ;;  %v7202_v2 = vld [vmem:[#allocation48_spill] sm:$0xff] }
 0x536   :  { %v5373_v17 = vpop.eup %5372  ;;  %v3629_v13 = vmax.f32 %v3628_v39, %v3249_v45  ;;  %v3252_v12 = vmul.f32 %v5371_v55, %v6822_v48  ;;  %5392 = vpow2.f32 %v4247_v30  ;;  %v7200_v48 = vld [vmem:[#allocation20_spill] sm:$0xff]  ;;  %v4255_v30 = vmul.f32 -1.442695, %v6977_v58 }
 0x537   :  { %v5375_v32 = vpop.eup %5374  ;;  %v3519_v50 = vmax.f32 %v6910_v52, %v3250_v20  ;;  %v3251_v54 = vmul.f32 %v5373_v17, %v6826_v22  ;;  %5394 = vpow2.f32 %v4249_v40  ;;  %v6988_v39 = vadd.f32 %v7200_v48, %v6203_v42  ;;  %v7203_v48 = vld [vmem:[#allocation49_spill] sm:$0xff] }
 0x538   :  { %v5377_v27 = vpop.eup %5376  ;;  %v3593_v36 = vmax.f32 %v3592_v31, %v3252_v12  ;;  %v3253_v14 = vmul.f32 %v5375_v32, %v6830_v53  ;;  %5396 = vpow2.f32 %v4248_v21  ;;  %v4254_v22 = vmul.f32 -1.442695, %v6964_v16 }
 0x539   :  { %v5379_v56 = vpop.eup %5378  ;;  %v3556_v59 = vmax.f32 %v3555_v37, %v3251_v54  ;;  %v3254_v52 = vmul.f32 %v5377_v27, %v6834_v41  ;;  %5398 = vpow2.f32 %v4250_v60  ;;  %v4257_v40 = vmul.f32 -1.442695, %v6983_v3 }
 0x53a   :  { %v5381_v25 = vpop.eup %5380  ;;  %v3630_v9 = vmax.f32 %v3629_v13, %v3253_v14  ;;  %v3256_v0 = vmul.f32 %v5379_v56, %v6841_v61  ;;  %5400 = vpow2.f32 %v4251_v43  ;;  %v4256_v35 = vmul.f32 -1.442695, %v6988_v39 }
 0x53b   :  { %v5383_v53 = vpop.eup %5382  ;;  %v6994_v5 = vmax.f32 %v3519_v50, %v3254_v52  ;;  %v3255_v29 = vmul.f32 %v5381_v25, %v6852_v34  ;;  %5402 = vpow2.f32 %v4253_v4  ;;  %v7201_v50 = vld [vmem:[#allocation26_spill] sm:$0xff]  ;;  %v7022_v27 = vadd.f32 %v7202_v2, %v6197_v46 }
 0x53c   :  { %v5385_v33 = vpop.eup %5384  ;;  %v6998_v41 = vmax.f32 %v3593_v36, %v3256_v0  ;;  %v3257_v7 = vmul.f32 %v5383_v53, %v6857_v51  ;;  %5404 = vpow2.f32 %v4252_v23  ;;  %v7018_v54 = vadd.f32 %v7201_v50, %v6205_v19 }
 0x53d   :  { %v5387_v61 = vpop.eup %5386  ;;  %v7002_v21 = vmax.f32 %v3556_v59, %v3255_v29  ;;  %v7005_v60 = vmul.f32 %v5385_v33, %v6867_v57  ;;  %5406 = vpow2.f32 %v4254_v22  ;;  %v7026_v56 = vadd.f32 %v7203_v48, %v6199_v11  ;;  %v7204_v22 = vld [vmem:[#allocation50_spill] sm:$0xff] }
 0x53e   :  { %v5389_v49 = vpop.eup %5388  ;;  %v7007_v34 = vmax.f32 %v3630_v9, %v3257_v7  ;;  %v7010_v1 = vmul.f32 %v5387_v61, %v6874_v44  ;;  %5408 = vpow2.f32 %v4255_v30  ;;  %v7030_v25 = vadd.f32 %v7204_v22, %v6203_v42  ;;  %v7205_v30 = vld [vmem:[#allocation51_spill] sm:$0xff] }
 0x53f   :  { %v5391_v43 = vpop.eup %5390  ;;  %v3521_v51 = vmax.f32 %v6994_v5, %v7005_v60  ;;  %v2875_v4 = vadd.f32 1.0, %v5389_v49  ;;  %5410 = vpow2.f32 %v4257_v40  ;;  %v7034_v53 = vadd.f32 %v7205_v30, %v6205_v19 }
 0x540   :  { %v5393_v63 = vpop.eup %5392  ;;  %v3595_v31 = vmax.f32 %v6998_v41, %v7010_v1  ;;  %v2877_v57 = vadd.f32 1.0, %v5391_v43  ;;  %5412 = vpow2.f32 %v4256_v35  ;;  %v4258_v33 = vmul.f32 -1.442695, %v7018_v54  ;;  %v7206_v43 = vld [vmem:[#allocation21_spill] sm:$0xff] }
 0x541   :  { %v5395_v45 = vpop.eup %5394  ;;  %5414 = vrcp.f32 %v2875_v4  ;;  %v2878_v47 = vadd.f32 1.0, %v5393_v63  ;;  %v4259_v7 = vmul.f32 -1.442695, %v7022_v27  ;;  %v4261_v49 = vmul.f32 -1.442695, %v7026_v56 }
 0x542   :  { %v5397_v55 = vpop.eup %5396  ;;  %5416 = vrcp.f32 %v2877_v57  ;;  %v2880_v44 = vadd.f32 1.0, %v5395_v45  ;;  %v7041_v4 = vadd.f32 %v7206_v43, %v6197_v46  ;;  %v4260_v45 = vmul.f32 -1.442695, %v7030_v25 }
 0x543   :  { %v5399_v37 = vpop.eup %5398  ;;  %5418 = vrcp.f32 %v2878_v47  ;;  %v2879_v20 = vadd.f32 1.0, %v5397_v55  ;;  %v7207_v47 = vld [vmem:[#allocation22_spill] sm:$0xff] }
 0x544   :  { %v5401_v23 = vpop.eup %5400  ;;  %5420 = vrcp.f32 %v2880_v44  ;;  %v2881_v17 = vadd.f32 1.0, %v5399_v37  ;;  %v7047_v55 = vadd.f32 %v7207_v47, %v6199_v11  ;;  %v4263_v50 = vmul.f32 -1.442695, %v7041_v4 }
 0x545   :  { %v5403_v13 = vpop.eup %5402  ;;  %5422 = vrcp.f32 %v2879_v20  ;;  %v2882_v12 = vadd.f32 1.0, %v5401_v23  ;;  %v4262_v20 = vmul.f32 -1.442695, %v7034_v53  ;;  %v7208_v23 = vld [vmem:[#allocation24_spill] sm:$0xff] }
 0x546   :  { %v5405_v26 = vpop.eup %5404  ;;  %5424 = vrcp.f32 %v2881_v17  ;;  %v2884_v32 = vadd.f32 1.0, %v5403_v13  ;;  %v7053_v46 = vadd.f32 %v7208_v23, %v6203_v42  ;;  %v4265_v2 = vmul.f32 -1.442695, %v7047_v55 }
 0x547   :  { %v5407_v36 = vpop.eup %5406  ;;  %5426 = vrcp.f32 %v2882_v12  ;;  %v2883_v14 = vadd.f32 1.0, %v5405_v26  ;;  %v7209_v12 = vld [vmem:[#allocation52_spill] sm:$0xff] }
 0x548   :  { %v5409_v59 = vpop.eup %5408  ;;  %5428 = vrcp.f32 %v2884_v32  ;;  %v2885_v52 = vadd.f32 1.0, %v5407_v36  ;;  %v7059_v11 = vadd.f32 %v7209_v12, %v6205_v19  ;;  %v4264_v36 = vmul.f32 -1.442695, %v7053_v46 }
 0x549   :  { %v5411_v9 = vpop.eup %5410  ;;  %5430 = vrcp.f32 %v2883_v14  ;;  %v2886_v0 = vadd.f32 1.0, %v5409_v59 }
 0x54a   :  { %v5413_v29 = vpop.eup %5412  ;;  %5432 = vrcp.f32 %v2885_v52  ;;  %v2888_v40 = vadd.f32 1.0, %v5411_v9 }
 0x54b   :  { %v5415_v35 = vpop.eup %5414  ;;  %5434 = vrcp.f32 %v2886_v0  ;;  %v2887_v61 = vadd.f32 1.0, %v5413_v29 }
 0x54c   :  { %v5417_v63 = vpop.eup %5416  ;;  %v3259_v57 = vmul.f32 %v5415_v35, %v6914_v38  ;;  %5436 = vrcp.f32 %v2888_v40 }
 0x54d   :  { %v5419_v44 = vpop.eup %5418  ;;  %v3261_v37 = vmul.f32 %v5417_v63, %v6918_v8  ;;  %5438 = vrcp.f32 %v2887_v61 }
 0x54e   :  { %v5421_v17 = vpop.eup %5420  ;;  %v3558_v38 = vmax.f32 %v7002_v21, %v3259_v57  ;;  %v3262_v13 = vmul.f32 %v5419_v44, %v6922_v62  ;;  %5440 = vpow2.f32 %v4258_v33 }
 0x54f   :  { %v5423_v26 = vpop.eup %5422  ;;  %v3632_v8 = vmax.f32 %v7007_v34, %v3261_v37  ;;  %v3264_v32 = vmul.f32 %v5421_v17, %v6927_v6  ;;  %5442 = vpow2.f32 %v4259_v7 }
 0x550   :  { %v5425_v42 = vpop.eup %5424  ;;  %v3522_v21 = vmax.f32 %v3521_v51, %v3262_v13  ;;  %v3263_v62 = vmul.f32 %v5423_v26, %v6931_v10  ;;  %5444 = vpow2.f32 %v4261_v49  ;;  %v4266_v10 = vmul.f32 -1.442695, %v7059_v11 }
 0x551   :  { %v5427_v19 = vpop.eup %5426  ;;  %v3596_v34 = vmax.f32 %v3595_v31, %v3264_v32  ;;  %v3265_v6 = vmul.f32 %v5425_v42, %v6935_v28  ;;  %5446 = vpow2.f32 %v4260_v45 }
 0x552   :  { %v5429_v14 = vpop.eup %5428  ;;  %v3559_v48 = vmax.f32 %v3558_v38, %v3263_v62  ;;  %v3266_v5 = vmul.f32 %v5427_v19, %v6939_v24  ;;  %5448 = vpow2.f32 %v4262_v20 }
 0x553   :  { %v5431_v60 = vpop.eup %5430  ;;  %v3633_v51 = vmax.f32 %v3632_v8, %v3265_v6  ;;  %v3268_v59 = vmul.f32 %v5429_v14, %v6943_v18  ;;  %5450 = vpow2.f32 %v4263_v50 }
 0x554   :  { %v5433_v52 = vpop.eup %5432  ;;  %v3523_v41 = vmax.f32 %v3522_v21, %v3266_v5  ;;  %v3267_v1 = vmul.f32 %v5431_v60, %v6950_v15  ;;  %5452 = vpow2.f32 %v4265_v2 }
 0x555   :  { %v5435_v28 = vpop.eup %5434  ;;  %v3597_v31 = vmax.f32 %v3596_v34, %v3268_v59  ;;  %v3269_v22 = vmul.f32 %v5433_v52, %v6964_v16  ;;  %5454 = vpow2.f32 %v4264_v36 }
 0x556   :  { %v5437_v9 = vpop.eup %5436  ;;  %v3560_v24 = vmax.f32 %v3559_v48, %v3267_v1  ;;  %v3270_v0 = vmul.f32 %v5435_v28, %v6977_v58  ;;  %5456 = vpow2.f32 %v4266_v10 }
 0x557   :  { %v5439_v30 = vpop.eup %5438  ;;  %v3634_v29 = vmax.f32 %v3633_v51, %v3269_v22  ;;  %v3272_v18 = vmul.f32 %v5437_v9, %v6983_v3 }
 0x558   :  { %v5441_v40 = vpop.eup %5440  ;;  %v3524_v33 = vmax.f32 %v3523_v41, %v3270_v0  ;;  %v3271_v7 = vmul.f32 %v5439_v30, %v6988_v39 }
 0x559   :  { %v5443_v15 = vpop.eup %5442  ;;  %v3598_v35 = vmax.f32 %v3597_v31, %v3272_v18  ;;  %v2889_v61 = vadd.f32 1.0, %v5441_v40 }
 0x55a   :  { %v5445_v49 = vpop.eup %5444  ;;  %v3561_v43 = vmax.f32 %v3560_v24, %v3271_v7  ;;  %v2890_v16 = vadd.f32 1.0, %v5443_v15 }
 0x55b   :  { %v5447_v63 = vpop.eup %5446  ;;  %5458 = vrcp.f32 %v2889_v61  ;;  %v2892_v57 = vadd.f32 1.0, %v5445_v49 }
 0x55c   :  { %v5449_v45 = vpop.eup %5448  ;;  %5460 = vrcp.f32 %v2890_v16  ;;  %v2891_v58 = vadd.f32 1.0, %v5447_v63 }
 0x55d   :  { %v5451_v47 = vpop.eup %5450  ;;  %5462 = vrcp.f32 %v2892_v57  ;;  %v2893_v44 = vadd.f32 1.0, %v5449_v45 }
 0x55e   :  { %v5453_v3 = vpop.eup %5452  ;;  %5464 = vrcp.f32 %v2891_v58  ;;  %v2894_v37 = vadd.f32 1.0, %v5451_v47 }
 0x55f   :  { %v5455_v20 = vpop.eup %5454  ;;  %5466 = vrcp.f32 %v2893_v44  ;;  %v2896_v39 = vadd.f32 1.0, %v5453_v3 }
 0x560   :  { %v5457_v23 = vpop.eup %5456  ;;  %5468 = vrcp.f32 %v2894_v37  ;;  %v2895_v17 = vadd.f32 1.0, %v5455_v20 }
 0x561   :  { %5470 = vrcp.f32 %v2896_v39  ;;  %v2897_v38 = vadd.f32 1.0, %v5457_v23 }
 0x562   :  { %5472 = vrcp.f32 %v2895_v17 }
 0x563   :  { %5474 = vrcp.f32 %v2897_v38 }
 0x565   :  { %v5459_v13 = vpop.eup %5458 }
 0x566   :  { %v5461_v12 = vpop.eup %5460  ;;  %v3273_v26 = vmul.f32 %v5459_v13, %v7018_v54  ;;  %v3683_v13 = vld [vmem:[#allocation10 + $0x100] sm:$0xff] }
 0x567   :  { %v5463_v8 = vpop.eup %5462  ;;  %v3274_v32 = vmul.f32 %v5461_v12, %v7022_v27  ;;  %v3684_v12 = vld [vmem:[#allocation10 + $0x108] sm:$0xff] }
 0x568   :  { %v5465_v50 = vpop.eup %5464  ;;  %v3635_v42 = vmax.f32 %v3634_v29, %v3273_v26  ;;  %v3276_v21 = vmul.f32 %v5463_v8, %v7026_v56 }
 0x569   :  { %v5467_v62 = vpop.eup %5466  ;;  %v3525_v2 = vmax.f32 %v3524_v33, %v3274_v32  ;;  %v3275_v19 = vmul.f32 %v5465_v50, %v7030_v25  ;;  %v3701_v32 = vld [vmem:[#allocation10 + $0x190] sm:$0xff]  ;;  %v3702_v50 = vld [vmem:[#allocation10 + $0x198] sm:$0xff] }
 0x56a   :  { %v5469_v34 = vpop.eup %5468  ;;  %v3599_v6 = vmax.f32 %v3598_v35, %v3276_v21  ;;  %v3277_v36 = vmul.f32 %v5467_v62, %v7034_v53  ;;  %v4565_v62 = vpack.c.bf16 %v3684_v12, %v3683_v13  ;;  %v3865_v13 = vld [vmem:[#allocation11 + $0x10] sm:$0xff]  ;;  %v3866_v12 = vld [vmem:[#allocation11 + $0x18] sm:$0xff] }
 0x56b   :  { %v5471_v14 = vpop.eup %5470  ;;  %v3562_v48 = vmax.f32 %v3561_v43, %v3275_v19  ;;  %v3278_v5 = vmul.f32 %v5469_v34, %v7041_v4  ;;  %v4567_v34 = vpack.c.bf16 %v3702_v50, %v3701_v32  ;;  %v3868_v32 = vld [vmem:[#allocation11 + $0x28] sm:$0xff] }
 0x56c   :  { %v5473_v54 = vpop.eup %5472  ;;  %v3636_v10 = vmax.f32 %v3635_v42, %v3277_v36  ;;  %v3280_v27 = vmul.f32 %v5471_v14, %v7047_v55  ;;  %v3686_v36 = vld [vmem:[#allocation10 + $0x118] sm:$0xff] }
 0x56d   :  { %v5475_v60 = vpop.eup %5474  ;;  %v3526_v51 = vmax.f32 %v3525_v2, %v3278_v5  ;;  %v3279_v56 = vmul.f32 %v5473_v54, %v7053_v46  ;;  %v3704_v5 = vld [vmem:[#allocation10 + $0x1a8] sm:$0xff] }
 0x56e   :  { %v3600_v59 = vmax.f32 %v3599_v6, %v3280_v27  ;;  %v3281_v52 = vmul.f32 %v5475_v60, %v7059_v11  ;;  %v3685_v6 = vld [vmem:[#allocation10 + $0x110] sm:$0xff]  ;;  %v3687_v60 = vld [vmem:[#allocation10 + $0x120] sm:$0xff] }
 0x56f   :  { %v3527_v25 = vmax.f32 %v3526_v51, -3e+38  ;;  %v3563_v41 = vmax.f32 %v3562_v48, %v3279_v56  ;;  %v3703_v48 = vld [vmem:[#allocation10 + $0x1a0] sm:$0xff]  ;;  %v4569_v54 = vpack.c.bf16 %v3686_v36, %v3685_v6  ;;  %v3688_v51 = vld [vmem:[#allocation10 + $0x128] sm:$0xff]  ;;  %v3705_v56 = vld [vmem:[#allocation10 + $0x1b0] sm:$0xff] }
 0x570   :  { %v3637_v1 = vmax.f32 %v3636_v10, %v3281_v52  ;;  %v3601_v33 = vmax.f32 %v3600_v59, -3e+38  ;;  %v4571_v27 = vpack.c.bf16 %v3704_v5, %v3703_v48  ;;  %v3706_v59 = vld [vmem:[#allocation10 + $0x1b8] sm:$0xff]  ;;  %v4573_v52 = vpack.c.bf16 %v3688_v51, %v3687_v60  ;;  %v3873_v6 = vld [vmem:[#allocation11 + $0x50] sm:$0xff]  ;;  %v3875_v48 = vld [vmem:[#allocation11 + $0x60] sm:$0xff] }
 0x571   :  { %v3528_v28 = vmax.f32 %v3527_v25, -3e+38  ;;  %v3564_v53 = vmax.f32 %v3563_v41, -3e+38  ;;  %v4575_v41 = vpack.c.bf16 %v3706_v59, %v3705_v56  ;;  %v3874_v36 = vld [vmem:[#allocation11 + $0x58] sm:$0xff]  ;;  %v3876_v5 = vld [vmem:[#allocation11 + $0x68] sm:$0xff] }
 0x572   :  { %v3638_v31 = vmax.f32 %v3637_v1, -3e+38  ;;  %v3602_v43 = vmax.f32 %v3601_v33, -3e+38  ;;  %v3689_v1 = vld [vmem:[#allocation10 + $0x130] sm:$0xff]  ;;  %v3694_v33 = vld [vmem:[#allocation10 + $0x158] sm:$0xff] }
 0x573   :  { %v3529_v22 = vmax.f32 %v3528_v28, -3e+38  ;;  %v3565_v9 = vmax.f32 %v3564_v53, -3e+38  ;;  %v3690_v28 = vld [vmem:[#allocation10 + $0x138] sm:$0xff]  ;;  %v3707_v53 = vld [vmem:[#allocation10 + $0x1c0] sm:$0xff] }
 0x574   :  { %v3639_v4 = vmax.f32 %v3638_v31, -3e+38  ;;  %v3603_v44 = vmax.f32 %v3602_v43, -3e+38  ;;  %v3708_v31 = vld [vmem:[#allocation10 + $0x1c8] sm:$0xff]  ;;  %v5694_v51 = vmov 0.0  }
 0x575   :  { %v3530_v24 = vmax.f32 %v3529_v22, -3e+38  ;;  %v3566_v0 = vmax.f32 %v3565_v9, -3e+38  ;;  %v4577_v22 = vpack.c.bf16 %v3690_v28, %v3689_v1 }
 0x576   :  { %v3640_v30 = vmax.f32 %v3639_v4, -3e+38  ;;  %v3604_v17 = vmax.f32 %v3603_v44, -3e+38  ;;  %v4579_v4 = vpack.c.bf16 %v3708_v31, %v3707_v53 }
 0x577   :  { %v3531_v55 = vmax.f32 %v3530_v24, -3e+38  ;;  %v3567_v29 = vmax.f32 %v3566_v0, -3e+38  ;;  %v3691_v24 = vld [vmem:[#allocation10 + $0x140] sm:$0xff]  ;;  %v3692_v0 = vld [vmem:[#allocation10 + $0x148] sm:$0xff] }
 0x578   :  { %v3641_v18 = vmax.f32 %v3640_v30, -3e+38  ;;  %v3605_v2 = vmax.f32 %v3604_v17, -3e+38  ;;  %v3709_v30 = vld [vmem:[#allocation10 + $0x1d0] sm:$0xff] }
 0x579   :  { %v3532_v40 = vmax.f32 %v3531_v55, -3e+38  ;;  %v3568_v46 = vmax.f32 %v3567_v29, -3e+38  ;;  %v3710_v55 = vld [vmem:[#allocation10 + $0x1d8] sm:$0xff]  ;;  %v4581_v29 = vpack.c.bf16 %v3692_v0, %v3691_v24 }
 0x57a   :  { %v3642_v7 = vmax.f32 %v3641_v18, -3e+38  ;;  %v3606_v10 = vmax.f32 %v3605_v2, -3e+38  ;;  %v3871_v2 = vld [vmem:[#allocation11 + $0x40] sm:$0xff] }
 0x57b   :  { %v3533_v11 = vmax.f32 %v3532_v40, -3e+38  ;;  %v3569_v15 = vmax.f32 %v3568_v46, -3e+38  ;;  %v4583_v40 = vpack.c.bf16 %v3710_v55, %v3709_v30  ;;  %v3693_v46 = vld [vmem:[#allocation10 + $0x150] sm:$0xff] }
 0x57c   :  { %v3643_v35 = vmax.f32 %v3642_v7, -3e+38  ;;  %v3607_v25 = vmax.f32 %v3606_v10, -3e+38  ;;  %v3711_v7 = vld [vmem:[#allocation10 + $0x1e0] sm:$0xff]  ;;  %v3877_v10 = vld [vmem:[#allocation11 + $0x70] sm:$0xff] }
 0x57d   :  { %v3534_v61 = vrot.slane %v3533_v11, 4  ;;  %v3570_v49 = vmax.f32 %v3569_v15, -3e+38  ;;  %v4585_v15 = vpack.c.bf16 %v3694_v33, %v3693_v46  ;;  %v3879_v30 = vld [vmem:[%s7118_s9] sm:$0x1] }
 0x57e   :  { %v3644_v16 = vmax.f32 %v3643_v35, -3e+38  ;;  %v3608_v9 = vrot.slane %v3607_v25, 4 }
 0x57f   :  { %v3535_v63 = vmax.f32 %v3533_v11, %v3534_v61  ;;  %v3571_v57 = vrot.slane %v3570_v49, 4  ;;  %v3712_v11 = vld [vmem:[#allocation10 + $0x1e8] sm:$0xff]  ;;  %v3695_v61 = vld [vmem:[#allocation10 + $0x160] sm:$0xff] }
 0x580   :  { %v3645_v45 = vrot.slane %v3644_v16, 4  ;;  %v3609_v18 = vmax.f32 %v3607_v25, %v3608_v9  ;;  %v4587_v35 = vpack.c.bf16 %v3712_v11, %v3711_v7  ;;  %v3715_v25 = vld [vmem:[%s7116_s7] sm:$0x1]  ;;  %s5695_s7 = smov [#allocation13]  }
 0x581   :  { %v3536_v58 = vrot.slane %v3535_v63, 2  ;;  %v3572_v47 = vmax.f32 %v3570_v49, %v3571_v57  ;;  %v3696_v49 = vld [vmem:[#allocation10 + $0x168] sm:$0xff]  ;;  %s3963_s27 = sshll.u32 %s5695_s7, 4  ;;  %s3964_s27 = int_to_ptr.vmem [resolvable:$true] %s3963_s27 }
 0x582   :  { %v3646_v3 = vmax.f32 %v3644_v16, %v3645_v45  ;;  %v3610_v43 = vrot.slane %v3609_v18, 2  ;;  %v3713_v16 = vld [vmem:[#allocation10 + $0x1f0] sm:$0xff]  ;;  %v4589_v57 = vpack.c.bf16 %v3696_v49, %v3695_v61  ;;  %s5647_s29 = scalar_lea.vmem %s3964_s27, 16  ;;  %s5651_s30 = scalar_lea.vmem %s3964_s27, 32 }
 0x583   :  { %v3537_v37 = vmax.f32 %v3535_v63, %v3536_v58  ;;  %v3573_v20 = vrot.slane %v3572_v47, 2  ;;  %v3714_v63 = vld [vmem:[#allocation10 + $0x1f8] sm:$0xff]  ;;  %v3697_v58 = vld [vmem:[#allocation10 + $0x170] sm:$0xff]  ;;  %p5648_p6 = scmp.ne.s32.totalorder %s3964_s27, %s5647_s29  ;;  %p5652_p7 = scmp.lt.s32.totalorder %s3964_s27, %s3964_s27 }
 0x584   :  { %v3647_v39 = vrot.slane %v3646_v3, 2  ;;  %v4591_v45 = vpack.c.bf16 %v3714_v63, %v3713_v16  ;;  %v3611_v44 = vmax.f32 %v3609_v18, %v3610_v43  ;;  %p5653_p8 = scmp.lt.s32.totalorder %s5651_s30, %s5647_s29 }
 0x585   :  { %v3574_v23 = vmax.f32 %v3572_v47, %v3573_v20  ;;  %v3538_v38 = vrot.slane %v3537_v37, 1  ;;  %v3698_v47 = vld [vmem:[#allocation10 + $0x178] sm:$0xff] }
 0x586   :  { %v3648_v26 = vmax.f32 %v3646_v3, %v3647_v39  ;;  %v4593_v3 = vpack.c.bf16 %v3698_v47, %v3697_v58  ;;  %v3863_v39 = vld [vmem:[#allocation11] sm:$0xff]  ;;  %p5654_p9 = por %p5653_p8, %p5652_p7 }
 0x587   :  { %v3575_v8 = vrot.slane %v3574_v23, 1  ;;  %v3539_v19 = vmax.f32 %v3537_v37, %v3538_v38  ;;  %v3612_v37 = vrot.slane %v3611_v44, 1  ;;  %v5692_v38 = vmov 0.0|0.0  }
 0x588   :  { %v3649_v42 = vrot.slane %v3648_v26, 1  ;;  %p5655_p10 = pnand %p5654_p9, %p5648_p6 }
 0x589   :  { %v3576_v21 = vmax.f32 %v3574_v23, %v3575_v8  ;;  %v3613_v20 = vmax.f32 %v3611_v44, %v3612_v37  ;;  %v3864_v23 = vld [vmem:[#allocation11 + $0x8] sm:$0xff]  ;;  %v3867_v8 = vld [vmem:[#allocation11 + $0x20] sm:$0xff] }
 0x58a   :  { %v3650_v14 = vmax.f32 %v3648_v26, %v3649_v42  ;;  %v4596_v17 = vpack.c.bf16 %v3864_v23, %v3863_v39  ;;  %v4599_v26 = vpack.c.bf16 %v3866_v12, %v3865_v13  ;;  %v4602_v50 = vpack.c.bf16 %v3868_v32, %v3867_v8  ;;  %v3869_v42 = vld [vmem:[#allocation11 + $0x30] sm:$0xff] }
 0x58b   :  { %3780 = vmatprep.mubr.f32.mxu1 %v3576_v21  ;;  %v3870_v21 = vld [vmem:[#allocation11 + $0x38] sm:$0xff] }
 0x58c   :  { %3781 = vmatmul.mubr.f32.vlgmr.msra.gmra.mrb[128].mxu1 %v3539_v19  ;;  %v3872_v19 = vld [vmem:[#allocation11 + $0x48] sm:$0xff] }
 0x58d   :  { %4566 = vmatpush3.bf16.msra.mxu1 %v4565_v62  ;;  %3850 = vmatprep.mubr.f32.mxu1 %v3650_v14  ;;  %v4605_v62 = vpack.c.bf16 %v3870_v21, %v3869_v42  ;;  %v4611_v14 = vpack.c.bf16 %v3874_v36, %v3873_v6 }
 0x58e   :  { %4568 = vmatprep.subr.bf16.mxu1 %v4567_v34  ;;  %v4608_v34 = vpack.c.bf16 %v3872_v19, %v3871_v2 }
 0x591   :  { %4570 = vmatpush3.bf16.msra.mxu1 %v4569_v54  ;;  %v4614_v54 = vpack.c.bf16 %v3876_v5, %v3875_v48 }
 0x592   :  { %4572 = vmatprep.subr.bf16.mxu1 %v4571_v27  ;;  %v3878_v27 = vld [vmem:[#allocation11 + $0x78] sm:$0xff] }
 0x593   :  { %v4617_v60 = vpack.c.bf16 %v3878_v27, %v3877_v10 }
 0x595   :  { %4574 = vmatpush3.bf16.msra.mxu1 %v4573_v52 }
 0x596   :  { %4576 = vmatprep.subr.bf16.mxu1 %v4575_v41 }
 0x599   :  { %4578 = vmatpush3.bf16.msra.mxu1 %v4577_v22 }
 0x59a   :  { %4580 = vmatprep.subr.bf16.mxu1 %v4579_v4 }
 0x59d   :  { %4582 = vmatpush3.bf16.msra.mxu1 %v4581_v29 }
 0x59e   :  { %4584 = vmatprep.subr.bf16.mxu1 %v4583_v40 }
 0x5a1   :  { %4586 = vmatpush3.bf16.msra.mxu1 %v4585_v15 }
 0x5a2   :  { %4588 = vmatprep.subr.bf16.mxu1 %v4587_v35 }
 0x5a5   :  { %4590 = vmatpush3.bf16.msra.mxu1 %v4589_v57 }
 0x5a6   :  { %4592 = vmatprep.subr.bf16.mxu1 %v4591_v45 }
 0x5a9   :  { %4594 = vmatpush3.bf16.msra.mxu1 %v4593_v3 }
 0x5aa   :  { %4595 = vmatprep.subr.bf16.mxu1 %v5692_v38 }
 0x5ac   :  { %3851 = vmatmul.mubr.f32.vlgmr.msra.gmra.mrb[130].mxu1 %v3613_v20 }
 0x5ad   :  { %4597 = vmatpush3.bf16.msra.mxu1 %v4596_v17  ;;  %4528 = vmatprep.mubr.msk.f32.mxu1 %vm5693_vm0, %v5694_v51 }
 0x5ae   :  { %4598 = vmatprep.subr.bf16.mxu1 %v5692_v38 }
 0x5b1   :  { %4600 = vmatpush3.bf16.msra.mxu1 %v4599_v26 }
 0x5b2   :  { %4601 = vmatprep.subr.bf16.mxu1 %v5692_v38 }
 0x5b5   :  { %4603 = vmatpush3.bf16.msra.mxu1 %v4602_v50 }
 0x5b6   :  { %4604 = vmatprep.subr.bf16.mxu1 %v5692_v38 }
 0x5b9   :  { %4606 = vmatpush3.bf16.msra.mxu1 %v4605_v62 }
 0x5ba   :  { %4607 = vmatprep.subr.bf16.mxu1 %v5692_v38 }
 0x5bd   :  { %4609 = vmatpush3.bf16.msra.mxu1 %v4608_v34 }
 0x5be   :  { %4610 = vmatprep.subr.bf16.mxu1 %v5692_v38 }
 0x5c1   :  { %4612 = vmatpush3.bf16.msra.mxu1 %v4611_v14 }
 0x5c2   :  { %4613 = vmatprep.subr.bf16.mxu1 %v5692_v38 }
 0x5c5   :  { %4615 = vmatpush3.bf16.msra.mxu1 %v4614_v54 }
 0x5c6   :  { %4616 = vmatprep.subr.bf16.mxu1 %v5692_v38 }
 0x5c9   :  { %4618 = vmatpush3.bf16.msra.mxu1 %v4617_v60 }
 0x65f   :  { %v4441_v56 = vpop.f32.mrb[128].mxu1 }
 0x660   :  { %v4442_v59 = vpop.f32.mrb[129].mxu1 }
 0x661   :  { %v4443_v52 = vadd.f32 %v4442_v59, %v4441_v56 }
 0x663   :  { %v3783_v28 = vadd.f32 %v4443_v52, %v3715_v25 }
 0x67f   :  { %v4476_v41 = vpop.f32.mrb[130].mxu1 }
 0x680   :  { %v4477_v1 = vpop.f32.mrb[131].mxu1 }
 0x681   :  { %v4478_v53 = vadd.f32 %v4477_v1, %v4476_v41 }
 0x683   :  { %v3853_v31 = vadd.f32 %v4478_v53, %v3783_v28 }
 0x685   :  { %v4295_v22 = vmul.f32 -1.442695, %v3853_v31 }
 0x687   :  { %5476 = vpow2.f32 %v4295_v22 }
 0x691   :  { %v5477_v9 = vpop.eup %5476 }
 0x692   :  { %v3859_v4 = vadd.f32 1.0, %v5477_v9 }
 0x694   :  { %5478 = vrcp.f32 %v3859_v4 }
 0x69e   :  { %v5479_v24 = vpop.eup %5478 }
 0x69f   :  { %v3862_v0 = vmul.f32 %v5479_v24, %v3853_v31 }
 0x6a1   :  { %4529 = vmatmul.mubr.f32.vlgmr.msra.gmra.mrb[132].mxu1 %v3862_v0 }
 0x774   :  { %v3946_v55 = vpop.f32.mrb[132].mxu1 }
 0x775   :  { %v3947_v29 = vadd.f32 %v3946_v55, %v3879_v30  ;;  %v4530_v18 = vpop.f32.mrb[133].mxu1 }
 0x777   :  { %v4296_v40 = vmul.f32 -1.442695, %v3947_v29 }
 0x779   :  { %5480 = vpow2.f32 %v4296_v40 }
 0x783   :  { %v5481_v46 = vpop.eup %5480 }
 0x784   :  { %v3953_v33 = vadd.f32 1.0, %v5481_v46 }
 0x786   :  { %5482 = vrcp.f32 %v3953_v33 }
 0x790   :  { %v5483_v7 = vpop.eup %5482 }
 0x791   :  { %3956 = vst [vmem:[#allocation13] sm:$0x1] %v5483_v7 }
 0x792   :  { %5658 = shalt.err (!%p5655_p10)
}
 0x793   :  { %s5659_s12 = scalar_lea.hbm %s7119_s10, 16 }
 0x794   :  { %p5660_p11 = scmp.ne.s32.totalorder %s7119_s10, %s5659_s12  ;;  %p5663_p12 = scmp.lt.u32.totalorder %s5659_s12, %s7119_s10 }
 0x796   :  { %p5665_p13 = pnand %p5663_p12, %p5660_p11 }
 0x798   :  { %5668 = shalt.err (!%p5665_p13)
}
 0x799   :  { %3966 = dma.vmem_to_hbm [thread:$0]  %s3964_s27, 16, %s7119_s10, [#allocation4]  }
 0x79a   :  { %5677 = dma.done.wait [#allocation4], 16  }
 0x79b   :  { %5678 = vsyncadd [#allocation4], 4294967280 }
 0x79c   :  { %3970 = vsyncpa [#allocation3], 1 }
 0x79d   :  { %3971 = vsyncpa [#allocation6], 1 }
 0x79e   :  { %3972 = vsyncpa [#allocation9], 1 }
 0x79f   :  { %3973 = vsyncpa [#allocation12], 1 }
 0x7a0   :  { %3974 = vsyncpa [#allocation4], 1 }

</bundles_post_ra>
